<compile_context>
chip_gen: v5e
topology: v5e:2x2
jax: 0.10.0
libtpu: 0.0.40
codegen_flags: <defaults>
</compile_context>

<pallas_src>
import functools

import jax
import jax.numpy as jnp
from jax.experimental import pallas as pl
from jax.experimental.pallas import tpu as pltpu

LN_EPS = 1e-5
F32 = jnp.float32
BF16 = jnp.bfloat16

_LAYER_KEYS = ("ln1_w", "ln1_b", "sa_wqkv", "sa_bqkv", "sa_wo", "sa_bo",
               "ln2_w", "ln2_b", "ca_wq", "ca_bq", "ca_wo", "ca_bo",
               "ln3_w", "ln3_b", "mlp_w1", "mlp_b1", "mlp_w2", "mlp_b2")


# ----------------------------- in-kernel helpers -----------------------------
def _layer_norm(x, w, b):
    # fp16-safe LayerNorm of the module: compute in fp32.
    x32 = x.astype(F32)
    m = jnp.mean(x32, axis=-1, keepdims=True)
    v = jnp.mean((x32 - m) ** 2, axis=-1, keepdims=True)
    return (x32 - m) * jax.lax.rsqrt(v + LN_EPS) * w + b


def _softmax(x):
    m = jnp.max(x, axis=-1, keepdims=True)
    e = jnp.exp(x - m)
    # approx reciprocal runs on the EUP slot; row-sum error is ~1e-4 (checked in main).
    return e * pl.reciprocal(jnp.sum(e, axis=-1, keepdims=True), approx=True)


# ---------------------- call A: encoder projection (parallel over B) ----------------------
def _encoder_proj_kernel(enc_ref, w_enc, b_enc, y_ref):
    y = jnp.dot(enc_ref[0].astype(BF16), w_enc[...],
                preferred_element_type=F32) + b_enc[...]
    y_ref[0] = y.astype(BF16)


# ------------- call B: cross-attn K/V cache precompute (parallel over (L, B)) -------------
def _kv_cache_kernel(y_ref, wk_ref, bk_ref, wv_ref, bv_ref, k_ref, v_ref):
    y = y_ref[0]                                                      # (S, E) bf16
    k = jnp.dot(y, wk_ref[0], preferred_element_type=F32) + bk_ref[0]
    v = jnp.dot(y, wv_ref[0], preferred_element_type=F32) + bv_ref[0]
    k_ref[0, 0] = k.astype(BF16)                                      # lane-dense (S, E)
    v_ref[0, 0] = v.astype(BF16)


# ----------------------- call C: sequential decode over grid (T, L) -----------------------
def _decode_kernel(n_head,
                   dec_ref, w_in, b_in,
                   ln1_w, ln1_b, sa_wqkv, sa_bqkv, sa_wo, sa_bo,
                   ln2_w, ln2_b, ca_wq, ca_bq, ca_wo, ca_bo,
                   ln3_w, ln3_b, mlp_w1, mlp_b1, mlp_w2, mlp_b2,
                   k_cache, v_cache, w_fc, b_fc,
                   out_ref, attn_ref,
                   x_st):
    t = pl.program_id(0)
    l = pl.program_id(1)
    n_layers = pl.num_programs(1)
    H = n_head
    B, E = x_st.shape
    S = k_cache.shape[2]
    Dh = E // H

    # ---- seed the carried decoder state with the fused input projection ----
    @pl.when(jnp.logical_and(t == 0, l == 0))
    def _():
        x_st[...] = (jnp.dot(dec_ref[...].astype(BF16), w_in[...],
                             preferred_element_type=F32) + b_in[...])

    x = x_st[...]                                                     # (B, E) f32

    # ---- self-attention (pre-LN); the batch axis is the attention sequence ----
    x1 = _layer_norm(x, ln1_w[0], ln1_b[0]).astype(BF16)
    qkv = jnp.dot(x1, sa_wqkv[0], preferred_element_type=F32) + sa_bqkv[0]   # (B, 3E)
    sa_ctx = []
    for h in range(H):
        q = qkv[:, h * Dh:(h + 1) * Dh].astype(BF16)                  # scale folded in Wq/bq
        k = qkv[:, E + h * Dh:E + (h + 1) * Dh].astype(BF16)
        v = qkv[:, 2 * E + h * Dh:2 * E + (h + 1) * Dh].astype(BF16)
        s = jnp.einsum("bd,cd->bc", q, k, preferred_element_type=F32)        # (B, B)
        a = _softmax(s)
        sa_ctx.append(jnp.dot(a.astype(BF16), v, preferred_element_type=F32))
    ctx = jnp.concatenate(sa_ctx, axis=-1)                            # (B, E) head-packed
    x = x + jnp.dot(ctx.astype(BF16), sa_wo[0],
                    preferred_element_type=F32) + sa_bo[0]            # drop_path = identity

    # ---- cross-attention: 1 query per batch element against the cached encoder K/V ----
    x2 = _layer_norm(x, ln2_w[0], ln2_b[0]).astype(BF16)
    q_all = jnp.dot(x2, ca_wq[0], preferred_element_type=F32) + ca_bq[0]     # (B, E) scaled
    kc = k_cache[0]                                                   # (B, S, E) bf16
    vc = v_cache[0]
    ca_ctx = []
    attn_sum = None
    for h in range(H):
        qh = q_all[:, None, h * Dh:(h + 1) * Dh].astype(BF16)         # (B, 1, Dh)
        kh = kc[:, :, h * Dh:(h + 1) * Dh]                            # (B, S, Dh)
        vh = vc[:, :, h * Dh:(h + 1) * Dh]
        s3 = jnp.einsum("bqd,bkd->bqk", qh, kh, preferred_element_type=F32)  # (B, 1, S)
        a3 = _softmax(s3)
        o3 = jnp.einsum("bqk,bkd->bqd", a3.astype(BF16), vh,
                        preferred_element_type=F32)                   # (B, 1, Dh)
        ca_ctx.append(o3[:, 0, :])
        a2 = a3[:, 0, :]
        attn_sum = a2 if attn_sum is None else attn_sum + a2
    ctx = jnp.concatenate(ca_ctx, axis=-1)                            # (B, E)
    x = x + jnp.dot(ctx.astype(BF16), ca_wo[0],
                    preferred_element_type=F32) + ca_bo[0]

    # ---- MLP ----
    x3 = _layer_norm(x, ln3_w[0], ln3_b[0]).astype(BF16)
    hid = jnp.maximum(
        jnp.dot(x3, mlp_w1[0], preferred_element_type=F32) + mlp_b1[0], 0.0)
    x = x + jnp.dot(hid.astype(BF16), mlp_w2[0],
                    preferred_element_type=F32) + mlp_b2[0]

    x_st[...] = x

    # ---- last layer of this timestep: fused final fc + head-averaged attn weights ----
    @pl.when(l == n_layers - 1)
    def _():
        out_ref[0] = jnp.dot(x.astype(BF16), w_fc[...],
                             preferred_element_type=F32) + b_fc[...]
        attn_ref[0] = attn_sum * (1.0 / H)        # PyTorch MHA: average_attn_weights=True


# ------------------------------------ wrapper ---------------------------------------------
def transformer_decoder_forward(decoder_input, encoder_outputs, params,
                                max_length, n_head):
    B, S, in_w = encoder_outputs.shape
    E = params["w_in"].shape[1]
    out_w = params["w_fc"].shape[1]
    L = params["ln1_w"].shape[0]

    # ---- call A: encoder projection ----
    y = pl.pallas_call(
        _encoder_proj_kernel,
        out_shape=jax.ShapeDtypeStruct((B, S, E), BF16),
        grid_spec=pltpu.PrefetchScalarGridSpec(
            num_scalar_prefetch=0,
            grid=(B,),
            in_specs=[
                pl.BlockSpec((1, S, in_w), lambda b: (b, 0, 0)),
                pl.BlockSpec((in_w, E), lambda b: (0, 0)),
                pl.BlockSpec((1, E), lambda b: (0, 0)),
            ],
            out_specs=pl.BlockSpec((1, S, E), lambda b: (b, 0, 0)),
        ),
        compiler_params=pltpu.CompilerParams(dimension_semantics=("parallel",)),
    )(encoder_outputs, params["w_enc"], params["b_enc"])

    # ---- call B: per-layer cross-attention K/V cache (written to HBM, bf16, lane-dense) ----
    k_cache, v_cache = pl.pallas_call(
        _kv_cache_kernel,
        out_shape=(jax.ShapeDtypeStruct((L, B, S, E), BF16),
                   jax.ShapeDtypeStruct((L, B, S, E), BF16)),
        grid_spec=pltpu.PrefetchScalarGridSpec(
            num_scalar_prefetch=0,
            grid=(L, B),
            in_specs=[
                pl.BlockSpec((1, S, E), lambda l, b: (b, 0, 0)),
                pl.BlockSpec((1, E, E), lambda l, b: (l, 0, 0)),
                pl.BlockSpec((1, 1, E), lambda l, b: (l, 0, 0)),
                pl.BlockSpec((1, E, E), lambda l, b: (l, 0, 0)),
                pl.BlockSpec((1, 1, E), lambda l, b: (l, 0, 0)),
            ],
            out_specs=(pl.BlockSpec((1, 1, S, E), lambda l, b: (l, b, 0, 0)),
                       pl.BlockSpec((1, 1, S, E), lambda l, b: (l, b, 0, 0))),
        ),
        compiler_params=pltpu.CompilerParams(
            dimension_semantics=("parallel", "parallel")),
    )(y, params["ca_wk"], params["ca_bk"], params["ca_wv"], params["ca_bv"])

    # ---- call C: sequential decode loop over (timestep, layer) ----
    def resident(a):
        return pl.BlockSpec(a.shape, lambda t, l, _n=a.ndim: (0,) * _n)

    def per_layer(a):
        return pl.BlockSpec((1,) + a.shape[1:],
                            lambda t, l, _n=a.ndim: (l,) + (0,) * (_n - 1))

    args = ((decoder_input, params["w_in"], params["b_in"])
            + tuple(params[k] for k in _LAYER_KEYS)
            + (k_cache, v_cache, params["w_fc"], params["b_fc"]))
    in_specs = ([resident(decoder_input), resident(params["w_in"]),
                 resident(params["b_in"])]
                + [per_layer(params[k]) for k in _LAYER_KEYS]
                + [pl.BlockSpec((1, B, S, E), lambda t, l: (l, 0, 0, 0)),
                   pl.BlockSpec((1, B, S, E), lambda t, l: (l, 0, 0, 0)),
                   resident(params["w_fc"]), resident(params["b_fc"])])

    outs, attn = pl.pallas_call(
        functools.partial(_decode_kernel, n_head),
        out_shape=(jax.ShapeDtypeStruct((max_length, B, out_w), F32),
                   jax.ShapeDtypeStruct((max_length, B, S), F32)),
        grid_spec=pltpu.PrefetchScalarGridSpec(
            num_scalar_prefetch=0,
            grid=(max_length, L),
            in_specs=in_specs,
            out_specs=(pl.BlockSpec((1, B, out_w), lambda t, l: (t, 0, 0)),
                       pl.BlockSpec((1, B, S), lambda t, l: (t, 0, 0))),
            scratch_shapes=[pltpu.VMEM((B, E), F32)],      # carried decoder state
        ),
        compiler_params=pltpu.CompilerParams(
            dimension_semantics=("arbitrary", "arbitrary"),  # timestep/layer recurrence
            vmem_limit_bytes=32 * 1024 * 1024),
    )(*args)

    outputs = jnp.transpose(outs, (1, 0, 2))       # (B, T, output_width)
    attention_weights = attn[:, :, None, :]        # (T, B, 1, S) like torch.stack of (B,1,S)
    return outputs, attention_weights


# ----------------------------- parameter init ---------------------------------
def _trunc_normal(key, shape, std=0.02):
    return std * jax.random.truncated_normal(key, -2.0, 2.0, shape, F32)


def init_params(key, input_width, width, layers, heads, output_width):
    E, H, L = width, heads, layers
    assert E % H == 0
    d_head = E // H
    scale = 1.0 / float(d_head) ** 0.5

    keys = jax.random.split(key, 3 + L)

    def linear(k, in_f, out_f):
        # nn.Linear (trunc_normal(0.02) weight, zero bias); stored pre-transposed (in, out).
        w = _trunc_normal(k, (out_f, in_f))
        return w.T, jnp.zeros((1, out_f), F32)

    w_in, b_in = linear(keys[0], input_width, E)
    w_enc, b_enc = linear(keys[1], input_width, E)
    w_fc, b_fc = linear(keys[2], E, output_width)

    lp = {name: [] for name in _LAYER_KEYS + ("ca_wk", "ca_bk", "ca_wv", "ca_bv")}
    for kb in keys[3:]:
        k_sa_in, k_sa_out, k_ca_in, k_ca_out, k_w1, k_w2 = jax.random.split(kb, 6)

        # self-attention: packed in_proj (3E, E) -> (E, 3E); 1/sqrt(Dh) folded into BOTH
        # Wq and bq (checkpoint-safe even with non-zero in_proj bias).
        sa_in = _trunc_normal(k_sa_in, (3 * E, E)).at[:E].multiply(scale)
        sa_bias = jnp.zeros((3 * E,), F32).at[:E].multiply(scale)
        sa_out_w = _trunc_normal(k_sa_out, (E, E))
        lp["sa_wqkv"].append(sa_in.T)
        lp["sa_bqkv"].append(sa_bias[None, :])
        lp["sa_wo"].append(sa_out_w.T)
        lp["sa_bo"].append(jnp.zeros((1, E), F32))

        # cross-attention: q projection used in the decode loop, k/v used in the precompute.
        ca_in = _trunc_normal(k_ca_in, (3 * E, E))
        ca_bias = jnp.zeros((3 * E,), F32)
        ca_out_w = _trunc_normal(k_ca_out, (E, E))
        lp["ca_wq"].append(ca_in[:E].T * scale)
        lp["ca_bq"].append((ca_bias[:E] * scale)[None, :])
        lp["ca_wk"].append(ca_in[E:2 * E].T)
        lp["ca_bk"].append(ca_bias[E:2 * E][None, :])
        lp["ca_wv"].append(ca_in[2 * E:].T)
        lp["ca_bv"].append(ca_bias[2 * E:][None, :])
        lp["ca_wo"].append(ca_out_w.T)
        lp["ca_bo"].append(jnp.zeros((1, E), F32))

        for nm in ("ln1", "ln2", "ln3"):
            lp[nm + "_w"].append(jnp.ones((1, E), F32))
            lp[nm + "_b"].append(jnp.zeros((1, E), F32))

        w1, b1 = linear(k_w1, E, 4 * E)
        w2, b2 = linear(k_w2, 4 * E, E)
        lp["mlp_w1"].append(w1); lp["mlp_b1"].append(b1)
        lp["mlp_w2"].append(w2); lp["mlp_b2"].append(b2)

    matmul_w = {"sa_wqkv", "sa_wo", "ca_wq", "ca_wk", "ca_wv", "ca_wo",
                "mlp_w1", "mlp_w2"}
    params = {"w_in": w_in.astype(BF16), "b_in": b_in,
              "w_enc": w_enc.astype(BF16), "b_enc": b_enc,
              "w_fc": w_fc.astype(BF16), "b_fc": b_fc}
    for name, vals in lp.items():
        arr = jnp.stack(vals, 0)
        params[name] = arr.astype(BF16) if name in matmul_w else arr
    return params


# --------------------------- pure-JAX reference --------------------------------
def reference_forward(decoder_input, encoder_outputs, params, max_length, n_head):
    W = lambda k: params[k].astype(F32)
    B, S, _ = encoder_outputs.shape
    E = params["w_in"].shape[1]
    L = params["ln1_w"].shape[0]
    H = n_head
    Dh = E // H

    def ln(x, w, b):
        m = jnp.mean(x, -1, keepdims=True)
        v = jnp.mean((x - m) ** 2, -1, keepdims=True)
        return (x - m) * jax.lax.rsqrt(v + LN_EPS) * w + b

    def softmax(x):
        e = jnp.exp(x - jnp.max(x, -1, keepdims=True))
        return e / jnp.sum(e, -1, keepdims=True)

    x = decoder_input @ W("w_in") + params["b_in"]
    y = jnp.einsum("bsi,ie->bse", encoder_outputs, W("w_enc")) + params["b_enc"]

    outs, attns = [], []
    for _ in range(max_length):
        attn_last = None
        for l in range(L):
            x1 = ln(x, params["ln1_w"][l], params["ln1_b"][l])
            qkv = x1 @ W("sa_wqkv")[l] + params["sa_bqkv"][l]
            ctx = []
            for h in range(H):
                q = qkv[:, h * Dh:(h + 1) * Dh]
                k = qkv[:, E + h * Dh:E + (h + 1) * Dh]
                v = qkv[:, 2 * E + h * Dh:2 * E + (h + 1) * Dh]
                ctx.append(softmax(q @ k.T) @ v)
            x = x + jnp.concatenate(ctx, -1) @ W("sa_wo")[l] + params["sa_bo"][l]

            x2 = ln(x, params["ln2_w"][l], params["ln2_b"][l])
            qa = x2 @ W("ca_wq")[l] + params["ca_bq"][l]
            kc = y @ W("ca_wk")[l] + params["ca_bk"][l]
            vc = y @ W("ca_wv")[l] + params["ca_bv"][l]
            ctx, attn_sum = [], 0.0
            for h in range(H):
                qh = qa[:, h * Dh:(h + 1) * Dh]
                kh = kc[:, :, h * Dh:(h + 1) * Dh]
                vh = vc[:, :, h * Dh:(h + 1) * Dh]
                a = softmax(jnp.einsum("bd,bsd->bs", qh, kh))
                attn_sum = attn_sum + a
                ctx.append(jnp.einsum("bs,bsd->bd", a, vh))
            x = x + jnp.concatenate(ctx, -1) @ W("ca_wo")[l] + params["ca_bo"][l]
            attn_last = attn_sum / H

            x3 = ln(x, params["ln3_w"][l], params["ln3_b"][l])
            hid = jnp.maximum(x3 @ W("mlp_w1")[l] + params["mlp_b1"][l], 0.0)
            x = x + hid @ W("mlp_w2")[l] + params["mlp_b2"][l]
        outs.append(x)
        attns.append(attn_last)

    outputs = jnp.stack(outs, 1) @ W("w_fc") + params["b_fc"]
    attention_weights = jnp.stack(attns, 0)[:, :, None, :]
    return outputs, attention_weights


# ---------------------------------- main ---------------------------------------
if __name__ == "__main__":
    B, S = 8, 8
    input_width, width, layers, heads, output_width = 16, 32, 2, 4, 16
    max_length = 4

    key = jax.random.PRNGKey(0)
    k_in, k_enc, k_par = jax.random.split(key, 3)
    decoder_input = jax.random.normal(k_in, (B, input_width), F32)
    encoder_outputs = jax.random.normal(k_enc, (B, S, input_width), F32)
    params = init_params(k_par, input_width, width, layers, heads, output_width)

    fwd = jax.jit(functools.partial(transformer_decoder_forward,
                                    max_length=max_length, n_head=heads))
    outputs, attn_w = fwd(decoder_input, encoder_outputs, params)
    jax.block_until_ready((outputs, attn_w))

    assert outputs.shape == (B, max_length, output_width), outputs.shape
    assert attn_w.shape == (max_length, B, 1, S), attn_w.shape
    assert bool(jnp.all(jnp.isfinite(outputs)))
    assert bool(jnp.allclose(jnp.sum(attn_w, axis=-1), 1.0, atol=5e-3))

    # numerics check vs a pure-JAX f32 reference of the same math (kernel uses bf16 MXU
    # operands with f32 accumulation, so tolerances are bf16-sized).
    with jax.default_matmul_precision("highest"):
        ref_out, ref_attn = reference_forward(decoder_input, encoder_outputs, params,
                                              max_length, heads)
    assert bool(jnp.allclose(outputs, ref_out, rtol=5e-2, atol=3e-3)), \
        float(jnp.max(jnp.abs(outputs - ref_out)))
    assert bool(jnp.allclose(attn_w, ref_attn, rtol=5e-2, atol=5e-3)), \
        float(jnp.max(jnp.abs(attn_w - ref_attn)))

    # TODO(synk): DropPath / Dropout are eval-mode identities (module keeps no RNG state here).
    print("KERNEL_OK")
</pallas_src>

<mosaic_0001>
module attributes {stable_mosaic.version = 11 : i64} {
  func.func @_encoder_proj_kernel(%arg0: i32, %arg1: memref<1x8x16xf32, #tpu.memory_space<vmem>>, %arg2: memref<16x32xbf16, #tpu.memory_space<vmem>>, %arg3: memref<1x32xf32, #tpu.memory_space<vmem>>, %arg4: memref<1x8x32xbf16, #tpu.memory_space<vmem>>) attributes {dimension_semantics = [#tpu.dimension_semantics<parallel>], iteration_bounds = array<i64: 8>, scalar_prefetch = 0 : i64, scratch_operands = 0 : i64, tpu.core_type = #tpu.core_type<tc>, window_params = [{transform_indices = @transform_0, window_bounds = array<i64: 1, 8, 16>}, {pipeline_mode = #tpu.pipeline_mode<synchronous>, transform_indices = @transform_1, window_bounds = array<i64: 16, 32>}, {pipeline_mode = #tpu.pipeline_mode<synchronous>, transform_indices = @transform_2, window_bounds = array<i64: 1, 32>}, {transform_indices = @transform_3, window_bounds = array<i64: 1, 8, 32>}]} {
    %c0 = arith.constant 0 : index
    %c0_0 = arith.constant 0 : index
    %c0_1 = arith.constant 0 : index
    %0 = vector.load %arg1[%c0, %c0_0, %c0_1] : memref<1x8x16xf32, #tpu.memory_space<vmem>>, vector<1x8x16xf32>
    %1 = vector.shape_cast %0 : vector<1x8x16xf32> to vector<8x16xf32>
    %2 = arith.truncf %1 : vector<8x16xf32> to vector<8x16xbf16>
    %c0_2 = arith.constant 0 : index
    %c0_3 = arith.constant 0 : index
    %3 = vector.load %arg2[%c0_2, %c0_3] : memref<16x32xbf16, #tpu.memory_space<vmem>>, vector<16x32xbf16>
    %cst = arith.constant dense<0.000000e+00> : vector<8x32xf32>
    %4 = tpu.matmul %2, %3, %cst {dimension_numbers = #tpu.dot_dimension_numbers<[1], [0], [0], [1], [0, 0, 1, 1], [], []>} : vector<8x16xbf16>, vector<16x32xbf16>, vector<8x32xf32> -> vector<8x32xf32>
    %c0_4 = arith.constant 0 : index
    %c0_5 = arith.constant 0 : index
    %5 = vector.load %arg3[%c0_4, %c0_5] : memref<1x32xf32, #tpu.memory_space<vmem>>, vector<1x32xf32>
    %6 = vector.broadcast %5 : vector<1x32xf32> to vector<8x32xf32>
    %7 = arith.addf %4, %6 : vector<8x32xf32>
    %8 = arith.truncf %7 : vector<8x32xf32> to vector<8x32xbf16>
    %c0_6 = arith.constant 0 : index
    %c0_7 = arith.constant 0 : index
    %c0_8 = arith.constant 0 : index
    %9 = vector.load %arg4[%c0_6, %c0_7, %c0_8] : memref<1x8x32xbf16, #tpu.memory_space<vmem>>, vector<1x8x32xbf16>
    %10 = vector.shape_cast %9 : vector<1x8x32xbf16> to vector<8x32xbf16>
    %11 = vector.shape_cast %8 : vector<8x32xbf16> to vector<1x8x32xbf16>
    tpu.vector_store %arg4[%c0_6, %c0_7, %c0_8], %11 {strides = array<i32>} : memref<1x8x32xbf16, #tpu.memory_space<vmem>>, vector<1x8x32xbf16>,
    return
  }
  func.func @transform_0(%arg0: i32) -> (i32, i32, i32) {
    %c0_i32 = arith.constant 0 : i32
    %c0_i32_0 = arith.constant 0 : i32
    %c0_i32_1 = arith.constant 0 : i32
    return %arg0, %c0_i32, %c0_i32_0 : i32, i32, i32
  }
  func.func @transform_1(%arg0: i32) -> (i32, i32) {
    %c0_i32 = arith.constant 0 : i32
    %c0_i32_0 = arith.constant 0 : i32
    %c0_i32_1 = arith.constant 0 : i32
    return %c0_i32, %c0_i32_0 : i32, i32
  }
  func.func @transform_2(%arg0: i32) -> (i32, i32) {
    %c0_i32 = arith.constant 0 : i32
    %c0_i32_0 = arith.constant 0 : i32
    %c0_i32_1 = arith.constant 0 : i32
    return %c0_i32, %c0_i32_0 : i32, i32
  }
  func.func @transform_3(%arg0: i32) -> (i32, i32, i32) {
    %c0_i32 = arith.constant 0 : i32
    %c0_i32_0 = arith.constant 0 : i32
    %c0_i32_1 = arith.constant 0 : i32
    return %arg0, %c0_i32, %c0_i32_0 : i32, i32, i32
  }
}

module attributes {stable_mosaic.version = 11 : i64} {
  func.func @_kv_cache_kernel(%arg0: i32, %arg1: i32, %arg2: memref<1x8x32xbf16, #tpu.memory_space<vmem>>, %arg3: memref<1x32x32xbf16, #tpu.memory_space<vmem>>, %arg4: memref<1x1x32xf32, #tpu.memory_space<vmem>>, %arg5: memref<1x32x32xbf16, #tpu.memory_space<vmem>>, %arg6: memref<1x1x32xf32, #tpu.memory_space<vmem>>, %arg7: memref<1x1x8x32xbf16, #tpu.memory_space<vmem>>, %arg8: memref<1x1x8x32xbf16, #tpu.memory_space<vmem>>) attributes {dimension_semantics = [#tpu.dimension_semantics<parallel>, #tpu.dimension_semantics<parallel>], iteration_bounds = array<i64: 2, 8>, scalar_prefetch = 0 : i64, scratch_operands = 0 : i64, tpu.core_type = #tpu.core_type<tc>, window_params = [{transform_indices = @transform_0, window_bounds = array<i64: 1, 8, 32>}, {transform_indices = @transform_1, window_bounds = array<i64: 1, 32, 32>}, {transform_indices = @transform_2, window_bounds = array<i64: 1, 1, 32>}, {transform_indices = @transform_3, window_bounds = array<i64: 1, 32, 32>}, {transform_indices = @transform_4, window_bounds = array<i64: 1, 1, 32>}, {transform_indices = @transform_5, window_bounds = array<i64: 1, 1, 8, 32>}, {transform_indices = @transform_6, window_bounds = array<i64: 1, 1, 8, 32>}]} {
    %c0 = arith.constant 0 : index
    %c0_0 = arith.constant 0 : index
    %c0_1 = arith.constant 0 : index
    %0 = vector.load %arg2[%c0, %c0_0, %c0_1] : memref<1x8x32xbf16, #tpu.memory_space<vmem>>, vector<1x8x32xbf16>
    %1 = vector.shape_cast %0 : vector<1x8x32xbf16> to vector<8x32xbf16>
    %c0_2 = arith.constant 0 : index
    %c0_3 = arith.constant 0 : index
    %c0_4 = arith.constant 0 : index
    %2 = vector.load %arg3[%c0_2, %c0_3, %c0_4] : memref<1x32x32xbf16, #tpu.memory_space<vmem>>, vector<1x32x32xbf16>
    %3 = vector.shape_cast %2 : vector<1x32x32xbf16> to vector<32x32xbf16>
    %cst = arith.constant dense<0.000000e+00> : vector<8x32xf32>
    %4 = tpu.matmul %1, %3, %cst {dimension_numbers = #tpu.dot_dimension_numbers<[1], [0], [0], [1], [0, 0, 1, 1], [], []>} : vector<8x32xbf16>, vector<32x32xbf16>, vector<8x32xf32> -> vector<8x32xf32>
    %c0_5 = arith.constant 0 : index
    %c0_6 = arith.constant 0 : index
    %c0_7 = arith.constant 0 : index
    %5 = vector.load %arg4[%c0_5, %c0_6, %c0_7] : memref<1x1x32xf32, #tpu.memory_space<vmem>>, vector<1x1x32xf32>
    %6 = vector.shape_cast %5 : vector<1x1x32xf32> to vector<1x32xf32>
    %7 = vector.broadcast %6 : vector<1x32xf32> to vector<8x32xf32>
    %8 = arith.addf %4, %7 : vector<8x32xf32>
    %c0_8 = arith.constant 0 : index
    %c0_9 = arith.constant 0 : index
    %c0_10 = arith.constant 0 : index
    %9 = vector.load %arg5[%c0_8, %c0_9, %c0_10] : memref<1x32x32xbf16, #tpu.memory_space<vmem>>, vector<1x32x32xbf16>
    %10 = vector.shape_cast %9 : vector<1x32x32xbf16> to vector<32x32xbf16>
    %cst_11 = arith.constant dense<0.000000e+00> : vector<8x32xf32>
    %11 = tpu.matmul %1, %10, %cst_11 {dimension_numbers = #tpu.dot_dimension_numbers<[1], [0], [0], [1], [0, 0, 1, 1], [], []>} : vector<8x32xbf16>, vector<32x32xbf16>, vector<8x32xf32> -> vector<8x32xf32>
    %c0_12 = arith.constant 0 : index
    %c0_13 = arith.constant 0 : index
    %c0_14 = arith.constant 0 : index
    %12 = vector.load %arg6[%c0_12, %c0_13, %c0_14] : memref<1x1x32xf32, #tpu.memory_space<vmem>>, vector<1x1x32xf32>
    %13 = vector.shape_cast %12 : vector<1x1x32xf32> to vector<1x32xf32>
    %14 = vector.broadcast %13 : vector<1x32xf32> to vector<8x32xf32>
    %15 = arith.addf %11, %14 : vector<8x32xf32>
    %16 = arith.truncf %8 : vector<8x32xf32> to vector<8x32xbf16>
    %c0_15 = arith.constant 0 : index
    %c0_16 = arith.constant 0 : index
    %c0_17 = arith.constant 0 : index
    %c0_18 = arith.constant 0 : index
    %17 = vector.load %arg7[%c0_15, %c0_16, %c0_17, %c0_18] : memref<1x1x8x32xbf16, #tpu.memory_space<vmem>>, vector<1x1x8x32xbf16>
    %18 = vector.shape_cast %17 : vector<1x1x8x32xbf16> to vector<8x32xbf16>
    %19 = vector.shape_cast %16 : vector<8x32xbf16> to vector<1x1x8x32xbf16>
    tpu.vector_store %arg7[%c0_15, %c0_16, %c0_17, %c0_18], %19 {strides = array<i32>} : memref<1x1x8x32xbf16, #tpu.memory_space<vmem>>, vector<1x1x8x32xbf16>,
    %20 = arith.truncf %15 : vector<8x32xf32> to vector<8x32xbf16>
    %c0_19 = arith.constant 0 : index
    %c0_20 = arith.constant 0 : index
    %c0_21 = arith.constant 0 : index
    %c0_22 = arith.constant 0 : index
    %21 = vector.load %arg8[%c0_19, %c0_20, %c0_21, %c0_22] : memref<1x1x8x32xbf16, #tpu.memory_space<vmem>>, vector<1x1x8x32xbf16>
    %22 = vector.shape_cast %21 : vector<1x1x8x32xbf16> to vector<8x32xbf16>
    %23 = vector.shape_cast %20 : vector<8x32xbf16> to vector<1x1x8x32xbf16>
    tpu.vector_store %arg8[%c0_19, %c0_20, %c0_21, %c0_22], %23 {strides = array<i32>} : memref<1x1x8x32xbf16, #tpu.memory_space<vmem>>, vector<1x1x8x32xbf16>,
    return
  }
  func.func @transform_0(%arg0: i32, %arg1: i32) -> (i32, i32, i32) {
    %c0_i32 = arith.constant 0 : i32
    %c0_i32_0 = arith.constant 0 : i32
    %c0_i32_1 = arith.constant 0 : i32
    return %arg1, %c0_i32, %c0_i32_0 : i32, i32, i32
  }
  func.func @transform_1(%arg0: i32, %arg1: i32) -> (i32, i32, i32) {
    %c0_i32 = arith.constant 0 : i32
    %c0_i32_0 = arith.constant 0 : i32
    %c0_i32_1 = arith.constant 0 : i32
    return %arg0, %c0_i32, %c0_i32_0 : i32, i32, i32
  }
  func.func @transform_2(%arg0: i32, %arg1: i32) -> (i32, i32, i32) {
    %c0_i32 = arith.constant 0 : i32
    %c0_i32_0 = arith.constant 0 : i32
    %c0_i32_1 = arith.constant 0 : i32
    return %arg0, %c0_i32, %c0_i32_0 : i32, i32, i32
  }
  func.func @transform_3(%arg0: i32, %arg1: i32) -> (i32, i32, i32) {
    %c0_i32 = arith.constant 0 : i32
    %c0_i32_0 = arith.constant 0 : i32
    %c0_i32_1 = arith.constant 0 : i32
    return %arg0, %c0_i32, %c0_i32_0 : i32, i32, i32
  }
  func.func @transform_4(%arg0: i32, %arg1: i32) -> (i32, i32, i32) {
    %c0_i32 = arith.constant 0 : i32
    %c0_i32_0 = arith.constant 0 : i32
    %c0_i32_1 = arith.constant 0 : i32
    return %arg0, %c0_i32, %c0_i32_0 : i32, i32, i32
  }
  func.func @transform_5(%arg0: i32, %arg1: i32) -> (i32, i32, i32, i32) {
    %c0_i32 = arith.constant 0 : i32
    %c0_i32_0 = arith.constant 0 : i32
    %c0_i32_1 = arith.constant 0 : i32
    return %arg0, %arg1, %c0_i32, %c0_i32_0 : i32, i32, i32, i32
  }
  func.func @transform_6(%arg0: i32, %arg1: i32) -> (i32, i32, i32, i32) {
    %c0_i32 = arith.constant 0 : i32
    %c0_i32_0 = arith.constant 0 : i32
    %c0_i32_1 = arith.constant 0 : i32
    return %arg0, %arg1, %c0_i32, %c0_i32_0 : i32, i32, i32, i32
  }
}

module attributes {stable_mosaic.version = 11 : i64} {
  func.func @_decode_kernel(%arg0: i32, %arg1: i32, %arg2: memref<8x16xf32, #tpu.memory_space<vmem>>, %arg3: memref<16x32xbf16, #tpu.memory_space<vmem>>, %arg4: memref<1x32xf32, #tpu.memory_space<vmem>>, %arg5: memref<1x1x32xf32, #tpu.memory_space<vmem>>, %arg6: memref<1x1x32xf32, #tpu.memory_space<vmem>>, %arg7: memref<1x32x96xbf16, #tpu.memory_space<vmem>>, %arg8: memref<1x1x96xf32, #tpu.memory_space<vmem>>, %arg9: memref<1x32x32xbf16, #tpu.memory_space<vmem>>, %arg10: memref<1x1x32xf32, #tpu.memory_space<vmem>>, %arg11: memref<1x1x32xf32, #tpu.memory_space<vmem>>, %arg12: memref<1x1x32xf32, #tpu.memory_space<vmem>>, %arg13: memref<1x32x32xbf16, #tpu.memory_space<vmem>>, %arg14: memref<1x1x32xf32, #tpu.memory_space<vmem>>, %arg15: memref<1x32x32xbf16, #tpu.memory_space<vmem>>, %arg16: memref<1x1x32xf32, #tpu.memory_space<vmem>>, %arg17: memref<1x1x32xf32, #tpu.memory_space<vmem>>, %arg18: memref<1x1x32xf32, #tpu.memory_space<vmem>>, %arg19: memref<1x32x128xbf16, #tpu.memory_space<vmem>>, %arg20: memref<1x1x128xf32, #tpu.memory_space<vmem>>, %arg21: memref<1x128x32xbf16, #tpu.memory_space<vmem>>, %arg22: memref<1x1x32xf32, #tpu.memory_space<vmem>>, %arg23: memref<1x8x8x32xbf16, #tpu.memory_space<vmem>>, %arg24: memref<1x8x8x32xbf16, #tpu.memory_space<vmem>>, %arg25: memref<32x16xbf16, #tpu.memory_space<vmem>>, %arg26: memref<1x16xf32, #tpu.memory_space<vmem>>, %arg27: memref<1x8x16xf32, #tpu.memory_space<vmem>>, %arg28: memref<1x8x8xf32, #tpu.memory_space<vmem>>, %arg29: memref<8x32xf32, #tpu.memory_space<vmem>>) attributes {dimension_semantics = [#tpu.dimension_semantics<arbitrary>, #tpu.dimension_semantics<arbitrary>], iteration_bounds = array<i64: 4, 2>, scalar_prefetch = 0 : i64, scratch_operands = 1 : i64, tpu.core_type = #tpu.core_type<tc>, window_params = [{pipeline_mode = #tpu.pipeline_mode<synchronous>, transform_indices = @transform_0, window_bounds = array<i64: 8, 16>}, {pipeline_mode = #tpu.pipeline_mode<synchronous>, transform_indices = @transform_1, window_bounds = array<i64: 16, 32>}, {pipeline_mode = #tpu.pipeline_mode<synchronous>, transform_indices = @transform_2, window_bounds = array<i64: 1, 32>}, {transform_indices = @transform_3, window_bounds = array<i64: 1, 1, 32>}, {transform_indices = @transform_4, window_bounds = array<i64: 1, 1, 32>}, {transform_indices = @transform_5, window_bounds = array<i64: 1, 32, 96>}, {transform_indices = @transform_6, window_bounds = array<i64: 1, 1, 96>}, {transform_indices = @transform_7, window_bounds = array<i64: 1, 32, 32>}, {transform_indices = @transform_8, window_bounds = array<i64: 1, 1, 32>}, {transform_indices = @transform_9, window_bounds = array<i64: 1, 1, 32>}, {transform_indices = @transform_10, window_bounds = array<i64: 1, 1, 32>}, {transform_indices = @transform_11, window_bounds = array<i64: 1, 32, 32>}, {transform_indices = @transform_12, window_bounds = array<i64: 1, 1, 32>}, {transform_indices = @transform_13, window_bounds = array<i64: 1, 32, 32>}, {transform_indices = @transform_14, window_bounds = array<i64: 1, 1, 32>}, {transform_indices = @transform_15, window_bounds = array<i64: 1, 1, 32>}, {transform_indices = @transform_16, window_bounds = array<i64: 1, 1, 32>}, {transform_indices = @transform_17, window_bounds = array<i64: 1, 32, 128>}, {transform_indices = @transform_18, window_bounds = array<i64: 1, 1, 128>}, {transform_indices = @transform_19, window_bounds = array<i64: 1, 128, 32>}, {transform_indices = @transform_20, window_bounds = array<i64: 1, 1, 32>}, {transform_indices = @transform_21, window_bounds = array<i64: 1, 8, 8, 32>}, {transform_indices = @transform_22, window_bounds = array<i64: 1, 8, 8, 32>}, {pipeline_mode = #tpu.pipeline_mode<synchronous>, transform_indices = @transform_23, window_bounds = array<i64: 32, 16>}, {pipeline_mode = #tpu.pipeline_mode<synchronous>, transform_indices = @transform_24, window_bounds = array<i64: 1, 16>}, {transform_indices = @transform_25, window_bounds = array<i64: 1, 8, 16>}, {transform_indices = @transform_26, window_bounds = array<i64: 1, 8, 8>}]} {
    %c0_i32 = arith.constant 0 : i32
    %0 = arith.cmpi eq, %arg0, %c0_i32 : i32
    %c0_i32_0 = arith.constant 0 : i32
    %1 = arith.cmpi eq, %arg1, %c0_i32_0 : i32
    %2 = arith.andi %0, %1 : i1
    %3 = arith.extui %2 : i1 to i32
    %c0_i32_1 = arith.constant 0 : i32
    %4 = arith.cmpi ne, %3, %c0_i32_1 : i32
    scf.if %4 {
      %c0_121 = arith.constant 0 : index
      %c0_122 = arith.constant 0 : index
      %306 = vector.load %arg2[%c0_121, %c0_122] : memref<8x16xf32, #tpu.memory_space<vmem>>, vector<8x16xf32>
      %307 = arith.truncf %306 : vector<8x16xf32> to vector<8x16xbf16>
      %c0_123 = arith.constant 0 : index
      %c0_124 = arith.constant 0 : index
      %308 = vector.load %arg3[%c0_123, %c0_124] : memref<16x32xbf16, #tpu.memory_space<vmem>>, vector<16x32xbf16>
      %cst_125 = arith.constant dense<0.000000e+00> : vector<8x32xf32>
      %309 = tpu.matmul %307, %308, %cst_125 {dimension_numbers = #tpu.dot_dimension_numbers<[1], [0], [0], [1], [0, 0, 1, 1], [], []>} : vector<8x16xbf16>, vector<16x32xbf16>, vector<8x32xf32> -> vector<8x32xf32>
      %c0_126 = arith.constant 0 : index
      %c0_127 = arith.constant 0 : index
      %310 = vector.load %arg4[%c0_126, %c0_127] : memref<1x32xf32, #tpu.memory_space<vmem>>, vector<1x32xf32>
      %311 = vector.broadcast %310 : vector<1x32xf32> to vector<8x32xf32>
      %312 = arith.addf %309, %311 : vector<8x32xf32>
      %c0_128 = arith.constant 0 : index
      %c0_129 = arith.constant 0 : index
      %313 = vector.load %arg29[%c0_128, %c0_129] : memref<8x32xf32, #tpu.memory_space<vmem>>, vector<8x32xf32>
      tpu.vector_store %arg29[%c0_128, %c0_129], %312 {strides = array<i32>} : memref<8x32xf32, #tpu.memory_space<vmem>>, vector<8x32xf32>,
    } else {
    }
    %c0 = arith.constant 0 : index
    %c0_2 = arith.constant 0 : index
    %5 = vector.load %arg29[%c0, %c0_2] : memref<8x32xf32, #tpu.memory_space<vmem>>, vector<8x32xf32>
    %c0_3 = arith.constant 0 : index
    %c0_4 = arith.constant 0 : index
    %c0_5 = arith.constant 0 : index
    %6 = vector.load %arg5[%c0_3, %c0_4, %c0_5] : memref<1x1x32xf32, #tpu.memory_space<vmem>>, vector<1x1x32xf32>
    %7 = vector.shape_cast %6 : vector<1x1x32xf32> to vector<1x32xf32>
    %c0_6 = arith.constant 0 : index
    %c0_7 = arith.constant 0 : index
    %c0_8 = arith.constant 0 : index
    %8 = vector.load %arg6[%c0_6, %c0_7, %c0_8] : memref<1x1x32xf32, #tpu.memory_space<vmem>>, vector<1x1x32xf32>
    %9 = vector.shape_cast %8 : vector<1x1x32xf32> to vector<1x32xf32>
    %cst = arith.constant dense<0.000000e+00> : vector<8xf32>
    %10 = vector.multi_reduction <add>, %5, %cst [1] : vector<8x32xf32> to vector<8xf32>
    %11 = vector.shape_cast %10 : vector<8xf32> to vector<8x1xf32>
    %cst_9 = arith.constant 3.200000e+01 : f32
    %12 = vector.broadcast %cst_9 : f32 to vector<8x1xf32>
    %13 = arith.divf %11, %12 : vector<8x1xf32>
    %14 = vector.broadcast %13 : vector<8x1xf32> to vector<8x32xf32>
    %15 = arith.subf %5, %14 : vector<8x32xf32>
    %16 = arith.mulf %15, %15 : vector<8x32xf32>
    %cst_10 = arith.constant dense<0.000000e+00> : vector<8xf32>
    %17 = vector.multi_reduction <add>, %16, %cst_10 [1] : vector<8x32xf32> to vector<8xf32>
    %18 = vector.shape_cast %17 : vector<8xf32> to vector<8x1xf32>
    %cst_11 = arith.constant 3.200000e+01 : f32
    %19 = vector.broadcast %cst_11 : f32 to vector<8x1xf32>
    %20 = arith.divf %18, %19 : vector<8x1xf32>
    %21 = vector.broadcast %13 : vector<8x1xf32> to vector<8x32xf32>
    %22 = arith.subf %5, %21 : vector<8x32xf32>
    %cst_12 = arith.constant 9.99999974E-6 : f32
    %23 = vector.broadcast %cst_12 : f32 to vector<8x1xf32>
    %24 = arith.addf %20, %23 : vector<8x1xf32>
    %25 = math.rsqrt %24 : vector<8x1xf32>
    %26 = vector.broadcast %25 : vector<8x1xf32> to vector<8x32xf32>
    %27 = arith.mulf %22, %26 : vector<8x32xf32>
    %28 = vector.broadcast %7 : vector<1x32xf32> to vector<8x32xf32>
    %29 = arith.mulf %27, %28 : vector<8x32xf32>
    %30 = vector.broadcast %9 : vector<1x32xf32> to vector<8x32xf32>
    %31 = arith.addf %29, %30 : vector<8x32xf32>
    %32 = arith.truncf %31 : vector<8x32xf32> to vector<8x32xbf16>
    %c0_13 = arith.constant 0 : index
    %c0_14 = arith.constant 0 : index
    %c0_15 = arith.constant 0 : index
    %33 = vector.load %arg7[%c0_13, %c0_14, %c0_15] : memref<1x32x96xbf16, #tpu.memory_space<vmem>>, vector<1x32x96xbf16>
    %34 = vector.shape_cast %33 : vector<1x32x96xbf16> to vector<32x96xbf16>
    %cst_16 = arith.constant dense<0.000000e+00> : vector<8x96xf32>
    %35 = tpu.matmul %32, %34, %cst_16 {dimension_numbers = #tpu.dot_dimension_numbers<[1], [0], [0], [1], [0, 0, 1, 1], [], []>} : vector<8x32xbf16>, vector<32x96xbf16>, vector<8x96xf32> -> vector<8x96xf32>
    %c0_17 = arith.constant 0 : index
    %c0_18 = arith.constant 0 : index
    %c0_19 = arith.constant 0 : index
    %36 = vector.load %arg8[%c0_17, %c0_18, %c0_19] : memref<1x1x96xf32, #tpu.memory_space<vmem>>, vector<1x1x96xf32>
    %37 = vector.shape_cast %36 : vector<1x1x96xf32> to vector<1x96xf32>
    %38 = vector.broadcast %37 : vector<1x96xf32> to vector<8x96xf32>
    %39 = arith.addf %35, %38 : vector<8x96xf32>
    %40 = vector.extract_strided_slice %39 {offsets = [0, 0], sizes = [8, 8], strides = [1, 1]} : vector<8x96xf32> to vector<8x8xf32>
    %41 = arith.truncf %40 : vector<8x8xf32> to vector<8x8xbf16>
    %42 = vector.extract_strided_slice %39 {offsets = [0, 32], sizes = [8, 8], strides = [1, 1]} : vector<8x96xf32> to vector<8x8xf32>
    %43 = arith.truncf %42 : vector<8x8xf32> to vector<8x8xbf16>
    %44 = vector.extract_strided_slice %39 {offsets = [0, 64], sizes = [8, 8], strides = [1, 1]} : vector<8x96xf32> to vector<8x8xf32>
    %45 = arith.truncf %44 : vector<8x8xf32> to vector<8x8xbf16>
    "tpu.trace_start"() <{level = 10 : i32, message = "bd,cd->bc"}> : () -> ()
    %cst_20 = arith.constant dense<0.000000e+00> : vector<8x8xf32>
    %46 = tpu.matmul %41, %43, %cst_20 {dimension_numbers = #tpu.dot_dimension_numbers<[1], [1], [0], [0], [0, 0, 1, 0], [], []>} : vector<8x8xbf16>, vector<8x8xbf16>, vector<8x8xf32> -> vector<8x8xf32>
    "tpu.trace_stop"() : () -> ()
    %cst_21 = arith.constant dense<0xFF800000> : vector<8xf32>
    %47 = vector.multi_reduction <maximumf>, %46, %cst_21 [1] : vector<8x8xf32> to vector<8xf32>
    %48 = vector.shape_cast %47 : vector<8xf32> to vector<8x1xf32>
    %49 = vector.broadcast %48 : vector<8x1xf32> to vector<8x8xf32>
    %50 = arith.subf %46, %49 : vector<8x8xf32>
    %51 = math.exp %50 : vector<8x8xf32>
    %cst_22 = arith.constant dense<0.000000e+00> : vector<8xf32>
    %52 = vector.multi_reduction <add>, %51, %cst_22 [1] : vector<8x8xf32> to vector<8xf32>
    %53 = vector.shape_cast %52 : vector<8xf32> to vector<8x1xf32>
    %54 = tpu.reciprocal %53 {approx = true} : vector<8x1xf32> -> vector<8x1xf32>
    %55 = vector.broadcast %54 : vector<8x1xf32> to vector<8x8xf32>
    %56 = arith.mulf %51, %55 : vector<8x8xf32>
    %57 = arith.truncf %56 : vector<8x8xf32> to vector<8x8xbf16>
    %cst_23 = arith.constant dense<0.000000e+00> : vector<8x8xf32>
    %58 = tpu.matmul %57, %45, %cst_23 {dimension_numbers = #tpu.dot_dimension_numbers<[1], [0], [0], [1], [0, 0, 1, 1], [], []>} : vector<8x8xbf16>, vector<8x8xbf16>, vector<8x8xf32> -> vector<8x8xf32>
    %59 = vector.extract_strided_slice %39 {offsets = [0, 8], sizes = [8, 8], strides = [1, 1]} : vector<8x96xf32> to vector<8x8xf32>
    %60 = arith.truncf %59 : vector<8x8xf32> to vector<8x8xbf16>
    %61 = vector.extract_strided_slice %39 {offsets = [0, 40], sizes = [8, 8], strides = [1, 1]} : vector<8x96xf32> to vector<8x8xf32>
    %62 = arith.truncf %61 : vector<8x8xf32> to vector<8x8xbf16>
    %63 = vector.extract_strided_slice %39 {offsets = [0, 72], sizes = [8, 8], strides = [1, 1]} : vector<8x96xf32> to vector<8x8xf32>
    %64 = arith.truncf %63 : vector<8x8xf32> to vector<8x8xbf16>
    "tpu.trace_start"() <{level = 10 : i32, message = "bd,cd->bc"}> : () -> ()
    %cst_24 = arith.constant dense<0.000000e+00> : vector<8x8xf32>
    %65 = tpu.matmul %60, %62, %cst_24 {dimension_numbers = #tpu.dot_dimension_numbers<[1], [1], [0], [0], [0, 0, 1, 0], [], []>} : vector<8x8xbf16>, vector<8x8xbf16>, vector<8x8xf32> -> vector<8x8xf32>
    "tpu.trace_stop"() : () -> ()
    %cst_25 = arith.constant dense<0xFF800000> : vector<8xf32>
    %66 = vector.multi_reduction <maximumf>, %65, %cst_25 [1] : vector<8x8xf32> to vector<8xf32>
    %67 = vector.shape_cast %66 : vector<8xf32> to vector<8x1xf32>
    %68 = vector.broadcast %67 : vector<8x1xf32> to vector<8x8xf32>
    %69 = arith.subf %65, %68 : vector<8x8xf32>
    %70 = math.exp %69 : vector<8x8xf32>
    %cst_26 = arith.constant dense<0.000000e+00> : vector<8xf32>
    %71 = vector.multi_reduction <add>, %70, %cst_26 [1] : vector<8x8xf32> to vector<8xf32>
    %72 = vector.shape_cast %71 : vector<8xf32> to vector<8x1xf32>
    %73 = tpu.reciprocal %72 {approx = true} : vector<8x1xf32> -> vector<8x1xf32>
    %74 = vector.broadcast %73 : vector<8x1xf32> to vector<8x8xf32>
    %75 = arith.mulf %70, %74 : vector<8x8xf32>
    %76 = arith.truncf %75 : vector<8x8xf32> to vector<8x8xbf16>
    %cst_27 = arith.constant dense<0.000000e+00> : vector<8x8xf32>
    %77 = tpu.matmul %76, %64, %cst_27 {dimension_numbers = #tpu.dot_dimension_numbers<[1], [0], [0], [1], [0, 0, 1, 1], [], []>} : vector<8x8xbf16>, vector<8x8xbf16>, vector<8x8xf32> -> vector<8x8xf32>
    %78 = vector.extract_strided_slice %39 {offsets = [0, 16], sizes = [8, 8], strides = [1, 1]} : vector<8x96xf32> to vector<8x8xf32>
    %79 = arith.truncf %78 : vector<8x8xf32> to vector<8x8xbf16>
    %80 = vector.extract_strided_slice %39 {offsets = [0, 48], sizes = [8, 8], strides = [1, 1]} : vector<8x96xf32> to vector<8x8xf32>
    %81 = arith.truncf %80 : vector<8x8xf32> to vector<8x8xbf16>
    %82 = vector.extract_strided_slice %39 {offsets = [0, 80], sizes = [8, 8], strides = [1, 1]} : vector<8x96xf32> to vector<8x8xf32>
    %83 = arith.truncf %82 : vector<8x8xf32> to vector<8x8xbf16>
    "tpu.trace_start"() <{level = 10 : i32, message = "bd,cd->bc"}> : () -> ()
    %cst_28 = arith.constant dense<0.000000e+00> : vector<8x8xf32>
    %84 = tpu.matmul %79, %81, %cst_28 {dimension_numbers = #tpu.dot_dimension_numbers<[1], [1], [0], [0], [0, 0, 1, 0], [], []>} : vector<8x8xbf16>, vector<8x8xbf16>, vector<8x8xf32> -> vector<8x8xf32>
    "tpu.trace_stop"() : () -> ()
    %cst_29 = arith.constant dense<0xFF800000> : vector<8xf32>
    %85 = vector.multi_reduction <maximumf>, %84, %cst_29 [1] : vector<8x8xf32> to vector<8xf32>
    %86 = vector.shape_cast %85 : vector<8xf32> to vector<8x1xf32>
    %87 = vector.broadcast %86 : vector<8x1xf32> to vector<8x8xf32>
    %88 = arith.subf %84, %87 : vector<8x8xf32>
    %89 = math.exp %88 : vector<8x8xf32>
    %cst_30 = arith.constant dense<0.000000e+00> : vector<8xf32>
    %90 = vector.multi_reduction <add>, %89, %cst_30 [1] : vector<8x8xf32> to vector<8xf32>
    %91 = vector.shape_cast %90 : vector<8xf32> to vector<8x1xf32>
    %92 = tpu.reciprocal %91 {approx = true} : vector<8x1xf32> -> vector<8x1xf32>
    %93 = vector.broadcast %92 : vector<8x1xf32> to vector<8x8xf32>
    %94 = arith.mulf %89, %93 : vector<8x8xf32>
    %95 = arith.truncf %94 : vector<8x8xf32> to vector<8x8xbf16>
    %cst_31 = arith.constant dense<0.000000e+00> : vector<8x8xf32>
    %96 = tpu.matmul %95, %83, %cst_31 {dimension_numbers = #tpu.dot_dimension_numbers<[1], [0], [0], [1], [0, 0, 1, 1], [], []>} : vector<8x8xbf16>, vector<8x8xbf16>, vector<8x8xf32> -> vector<8x8xf32>
    %97 = vector.extract_strided_slice %39 {offsets = [0, 24], sizes = [8, 8], strides = [1, 1]} : vector<8x96xf32> to vector<8x8xf32>
    %98 = arith.truncf %97 : vector<8x8xf32> to vector<8x8xbf16>
    %99 = vector.extract_strided_slice %39 {offsets = [0, 56], sizes = [8, 8], strides = [1, 1]} : vector<8x96xf32> to vector<8x8xf32>
    %100 = arith.truncf %99 : vector<8x8xf32> to vector<8x8xbf16>
    %101 = vector.extract_strided_slice %39 {offsets = [0, 88], sizes = [8, 8], strides = [1, 1]} : vector<8x96xf32> to vector<8x8xf32>
    %102 = arith.truncf %101 : vector<8x8xf32> to vector<8x8xbf16>
    "tpu.trace_start"() <{level = 10 : i32, message = "bd,cd->bc"}> : () -> ()
    %cst_32 = arith.constant dense<0.000000e+00> : vector<8x8xf32>
    %103 = tpu.matmul %98, %100, %cst_32 {dimension_numbers = #tpu.dot_dimension_numbers<[1], [1], [0], [0], [0, 0, 1, 0], [], []>} : vector<8x8xbf16>, vector<8x8xbf16>, vector<8x8xf32> -> vector<8x8xf32>
    "tpu.trace_stop"() : () -> ()
    %cst_33 = arith.constant dense<0xFF800000> : vector<8xf32>
    %104 = vector.multi_reduction <maximumf>, %103, %cst_33 [1] : vector<8x8xf32> to vector<8xf32>
    %105 = vector.shape_cast %104 : vector<8xf32> to vector<8x1xf32>
    %106 = vector.broadcast %105 : vector<8x1xf32> to vector<8x8xf32>
    %107 = arith.subf %103, %106 : vector<8x8xf32>
    %108 = math.exp %107 : vector<8x8xf32>
    %cst_34 = arith.constant dense<0.000000e+00> : vector<8xf32>
    %109 = vector.multi_reduction <add>, %108, %cst_34 [1] : vector<8x8xf32> to vector<8xf32>
    %110 = vector.shape_cast %109 : vector<8xf32> to vector<8x1xf32>
    %111 = tpu.reciprocal %110 {approx = true} : vector<8x1xf32> -> vector<8x1xf32>
    %112 = vector.broadcast %111 : vector<8x1xf32> to vector<8x8xf32>
    %113 = arith.mulf %108, %112 : vector<8x8xf32>
    %114 = arith.truncf %113 : vector<8x8xf32> to vector<8x8xbf16>
    %cst_35 = arith.constant dense<0.000000e+00> : vector<8x8xf32>
    %115 = tpu.matmul %114, %102, %cst_35 {dimension_numbers = #tpu.dot_dimension_numbers<[1], [0], [0], [1], [0, 0, 1, 1], [], []>} : vector<8x8xbf16>, vector<8x8xbf16>, vector<8x8xf32> -> vector<8x8xf32>
    %116 = tpu.concatenate %58, %77, %96, %115 in 1 : vector<8x8xf32>, vector<8x8xf32>, vector<8x8xf32>, vector<8x8xf32> -> vector<8x32xf32>
    %117 = arith.truncf %116 : vector<8x32xf32> to vector<8x32xbf16>
    %c0_36 = arith.constant 0 : index
    %c0_37 = arith.constant 0 : index
    %c0_38 = arith.constant 0 : index
    %118 = vector.load %arg9[%c0_36, %c0_37, %c0_38] : memref<1x32x32xbf16, #tpu.memory_space<vmem>>, vector<1x32x32xbf16>
    %119 = vector.shape_cast %118 : vector<1x32x32xbf16> to vector<32x32xbf16>
    %cst_39 = arith.constant dense<0.000000e+00> : vector<8x32xf32>
    %120 = tpu.matmul %117, %119, %cst_39 {dimension_numbers = #tpu.dot_dimension_numbers<[1], [0], [0], [1], [0, 0, 1, 1], [], []>} : vector<8x32xbf16>, vector<32x32xbf16>, vector<8x32xf32> -> vector<8x32xf32>
    %121 = arith.addf %5, %120 : vector<8x32xf32>
    %c0_40 = arith.constant 0 : index
    %c0_41 = arith.constant 0 : index
    %c0_42 = arith.constant 0 : index
    %122 = vector.load %arg10[%c0_40, %c0_41, %c0_42] : memref<1x1x32xf32, #tpu.memory_space<vmem>>, vector<1x1x32xf32>
    %123 = vector.shape_cast %122 : vector<1x1x32xf32> to vector<1x32xf32>
    %124 = vector.broadcast %123 : vector<1x32xf32> to vector<8x32xf32>
    %125 = arith.addf %121, %124 : vector<8x32xf32>
    %c0_43 = arith.constant 0 : index
    %c0_44 = arith.constant 0 : index
    %c0_45 = arith.constant 0 : index
    %126 = vector.load %arg11[%c0_43, %c0_44, %c0_45] : memref<1x1x32xf32, #tpu.memory_space<vmem>>, vector<1x1x32xf32>
    %127 = vector.shape_cast %126 : vector<1x1x32xf32> to vector<1x32xf32>
    %c0_46 = arith.constant 0 : index
    %c0_47 = arith.constant 0 : index
    %c0_48 = arith.constant 0 : index
    %128 = vector.load %arg12[%c0_46, %c0_47, %c0_48] : memref<1x1x32xf32, #tpu.memory_space<vmem>>, vector<1x1x32xf32>
    %129 = vector.shape_cast %128 : vector<1x1x32xf32> to vector<1x32xf32>
    %cst_49 = arith.constant dense<0.000000e+00> : vector<8xf32>
    %130 = vector.multi_reduction <add>, %125, %cst_49 [1] : vector<8x32xf32> to vector<8xf32>
    %131 = vector.shape_cast %130 : vector<8xf32> to vector<8x1xf32>
    %cst_50 = arith.constant 3.200000e+01 : f32
    %132 = vector.broadcast %cst_50 : f32 to vector<8x1xf32>
    %133 = arith.divf %131, %132 : vector<8x1xf32>
    %134 = vector.broadcast %133 : vector<8x1xf32> to vector<8x32xf32>
    %135 = arith.subf %125, %134 : vector<8x32xf32>
    %136 = arith.mulf %135, %135 : vector<8x32xf32>
    %cst_51 = arith.constant dense<0.000000e+00> : vector<8xf32>
    %137 = vector.multi_reduction <add>, %136, %cst_51 [1] : vector<8x32xf32> to vector<8xf32>
    %138 = vector.shape_cast %137 : vector<8xf32> to vector<8x1xf32>
    %cst_52 = arith.constant 3.200000e+01 : f32
    %139 = vector.broadcast %cst_52 : f32 to vector<8x1xf32>
    %140 = arith.divf %138, %139 : vector<8x1xf32>
    %141 = vector.broadcast %133 : vector<8x1xf32> to vector<8x32xf32>
    %142 = arith.subf %125, %141 : vector<8x32xf32>
    %cst_53 = arith.constant 9.99999974E-6 : f32
    %143 = vector.broadcast %cst_53 : f32 to vector<8x1xf32>
    %144 = arith.addf %140, %143 : vector<8x1xf32>
    %145 = math.rsqrt %144 : vector<8x1xf32>
    %146 = vector.broadcast %145 : vector<8x1xf32> to vector<8x32xf32>
    %147 = arith.mulf %142, %146 : vector<8x32xf32>
    %148 = vector.broadcast %127 : vector<1x32xf32> to vector<8x32xf32>
    %149 = arith.mulf %147, %148 : vector<8x32xf32>
    %150 = vector.broadcast %129 : vector<1x32xf32> to vector<8x32xf32>
    %151 = arith.addf %149, %150 : vector<8x32xf32>
    %152 = arith.truncf %151 : vector<8x32xf32> to vector<8x32xbf16>
    %c0_54 = arith.constant 0 : index
    %c0_55 = arith.constant 0 : index
    %c0_56 = arith.constant 0 : index
    %153 = vector.load %arg13[%c0_54, %c0_55, %c0_56] : memref<1x32x32xbf16, #tpu.memory_space<vmem>>, vector<1x32x32xbf16>
    %154 = vector.shape_cast %153 : vector<1x32x32xbf16> to vector<32x32xbf16>
    %cst_57 = arith.constant dense<0.000000e+00> : vector<8x32xf32>
    %155 = tpu.matmul %152, %154, %cst_57 {dimension_numbers = #tpu.dot_dimension_numbers<[1], [0], [0], [1], [0, 0, 1, 1], [], []>} : vector<8x32xbf16>, vector<32x32xbf16>, vector<8x32xf32> -> vector<8x32xf32>
    %c0_58 = arith.constant 0 : index
    %c0_59 = arith.constant 0 : index
    %c0_60 = arith.constant 0 : index
    %156 = vector.load %arg14[%c0_58, %c0_59, %c0_60] : memref<1x1x32xf32, #tpu.memory_space<vmem>>, vector<1x1x32xf32>
    %157 = vector.shape_cast %156 : vector<1x1x32xf32> to vector<1x32xf32>
    %158 = vector.broadcast %157 : vector<1x32xf32> to vector<8x32xf32>
    %159 = arith.addf %155, %158 : vector<8x32xf32>
    %c0_61 = arith.constant 0 : index
    %c0_62 = arith.constant 0 : index
    %c0_63 = arith.constant 0 : index
    %c0_64 = arith.constant 0 : index
    %160 = vector.load %arg23[%c0_61, %c0_62, %c0_63, %c0_64] : memref<1x8x8x32xbf16, #tpu.memory_space<vmem>>, vector<1x8x8x32xbf16>
    %161 = vector.shape_cast %160 : vector<1x8x8x32xbf16> to vector<8x8x32xbf16>
    %c0_65 = arith.constant 0 : index
    %c0_66 = arith.constant 0 : index
    %c0_67 = arith.constant 0 : index
    %c0_68 = arith.constant 0 : index
    %162 = vector.load %arg24[%c0_65, %c0_66, %c0_67, %c0_68] : memref<1x8x8x32xbf16, #tpu.memory_space<vmem>>, vector<1x8x8x32xbf16>
    %163 = vector.shape_cast %162 : vector<1x8x8x32xbf16> to vector<8x8x32xbf16>
    %164 = vector.extract_strided_slice %159 {offsets = [0, 0], sizes = [8, 8], strides = [1, 1]} : vector<8x32xf32> to vector<8x8xf32>
    %165 = vector.shape_cast %164 : vector<8x8xf32> to vector<8x1x8xf32>
    %166 = arith.truncf %165 : vector<8x1x8xf32> to vector<8x1x8xbf16>
    %167 = vector.extract_strided_slice %161 {offsets = [0, 0, 0], sizes = [8, 8, 8], strides = [1, 1, 1]} : vector<8x8x32xbf16> to vector<8x8x8xbf16>
    %168 = vector.extract_strided_slice %163 {offsets = [0, 0, 0], sizes = [8, 8, 8], strides = [1, 1, 1]} : vector<8x8x32xbf16> to vector<8x8x8xbf16>
    "tpu.trace_start"() <{level = 10 : i32, message = "bqd,bkd->bqk"}> : () -> ()
    %cst_69 = arith.constant dense<0.000000e+00> : vector<8x1x8xf32>
    %169 = tpu.matmul %166, %167, %cst_69 {dimension_numbers = #tpu.dot_dimension_numbers<[2], [2], [1], [1], [0, 0, 0, 1, 1, 1], [0], [0]>} : vector<8x1x8xbf16>, vector<8x8x8xbf16>, vector<8x1x8xf32> -> vector<8x1x8xf32>
    "tpu.trace_stop"() : () -> ()
    %cst_70 = arith.constant dense<0xFF800000> : vector<8x1xf32>
    %170 = vector.multi_reduction <maximumf>, %169, %cst_70 [2] : vector<8x1x8xf32> to vector<8x1xf32>
    %171 = vector.shape_cast %170 : vector<8x1xf32> to vector<8x1x1xf32>
    %172 = vector.broadcast %171 : vector<8x1x1xf32> to vector<8x1x8xf32>
    %173 = arith.subf %169, %172 : vector<8x1x8xf32>
    %174 = math.exp %173 : vector<8x1x8xf32>
    %cst_71 = arith.constant dense<0.000000e+00> : vector<8x1xf32>
    %175 = vector.multi_reduction <add>, %174, %cst_71 [2] : vector<8x1x8xf32> to vector<8x1xf32>
    %176 = vector.shape_cast %175 : vector<8x1xf32> to vector<8x1x1xf32>
    %177 = tpu.reciprocal %176 {approx = true} : vector<8x1x1xf32> -> vector<8x1x1xf32>
    %178 = vector.broadcast %177 : vector<8x1x1xf32> to vector<8x1x8xf32>
    %179 = arith.mulf %174, %178 : vector<8x1x8xf32>
    %180 = arith.truncf %179 : vector<8x1x8xf32> to vector<8x1x8xbf16>
    "tpu.trace_start"() <{level = 10 : i32, message = "bqk,bkd->bqd"}> : () -> ()
    %cst_72 = arith.constant dense<0.000000e+00> : vector<8x1x8xf32>
    %181 = tpu.matmul %180, %168, %cst_72 {dimension_numbers = #tpu.dot_dimension_numbers<[2], [1], [1], [2], [0, 0, 0, 1, 1, 2], [0], [0]>} : vector<8x1x8xbf16>, vector<8x8x8xbf16>, vector<8x1x8xf32> -> vector<8x1x8xf32>
    "tpu.trace_stop"() : () -> ()
    %182 = vector.shape_cast %181 : vector<8x1x8xf32> to vector<8x8xf32>
    %183 = vector.shape_cast %179 : vector<8x1x8xf32> to vector<8x8xf32>
    %184 = vector.extract_strided_slice %159 {offsets = [0, 8], sizes = [8, 8], strides = [1, 1]} : vector<8x32xf32> to vector<8x8xf32>
    %185 = vector.shape_cast %184 : vector<8x8xf32> to vector<8x1x8xf32>
    %186 = arith.truncf %185 : vector<8x1x8xf32> to vector<8x1x8xbf16>
    %187 = vector.extract_strided_slice %161 {offsets = [0, 0, 8], sizes = [8, 8, 8], strides = [1, 1, 1]} : vector<8x8x32xbf16> to vector<8x8x8xbf16>
    %188 = vector.extract_strided_slice %163 {offsets = [0, 0, 8], sizes = [8, 8, 8], strides = [1, 1, 1]} : vector<8x8x32xbf16> to vector<8x8x8xbf16>
    "tpu.trace_start"() <{level = 10 : i32, message = "bqd,bkd->bqk"}> : () -> ()
    %cst_73 = arith.constant dense<0.000000e+00> : vector<8x1x8xf32>
    %189 = tpu.matmul %186, %187, %cst_73 {dimension_numbers = #tpu.dot_dimension_numbers<[2], [2], [1], [1], [0, 0, 0, 1, 1, 1], [0], [0]>} : vector<8x1x8xbf16>, vector<8x8x8xbf16>, vector<8x1x8xf32> -> vector<8x1x8xf32>
    "tpu.trace_stop"() : () -> ()
    %cst_74 = arith.constant dense<0xFF800000> : vector<8x1xf32>
    %190 = vector.multi_reduction <maximumf>, %189, %cst_74 [2] : vector<8x1x8xf32> to vector<8x1xf32>
    %191 = vector.shape_cast %190 : vector<8x1xf32> to vector<8x1x1xf32>
    %192 = vector.broadcast %191 : vector<8x1x1xf32> to vector<8x1x8xf32>
    %193 = arith.subf %189, %192 : vector<8x1x8xf32>
    %194 = math.exp %193 : vector<8x1x8xf32>
    %cst_75 = arith.constant dense<0.000000e+00> : vector<8x1xf32>
    %195 = vector.multi_reduction <add>, %194, %cst_75 [2] : vector<8x1x8xf32> to vector<8x1xf32>
    %196 = vector.shape_cast %195 : vector<8x1xf32> to vector<8x1x1xf32>
    %197 = tpu.reciprocal %196 {approx = true} : vector<8x1x1xf32> -> vector<8x1x1xf32>
    %198 = vector.broadcast %197 : vector<8x1x1xf32> to vector<8x1x8xf32>
    %199 = arith.mulf %194, %198 : vector<8x1x8xf32>
    %200 = arith.truncf %199 : vector<8x1x8xf32> to vector<8x1x8xbf16>
    "tpu.trace_start"() <{level = 10 : i32, message = "bqk,bkd->bqd"}> : () -> ()
    %cst_76 = arith.constant dense<0.000000e+00> : vector<8x1x8xf32>
    %201 = tpu.matmul %200, %188, %cst_76 {dimension_numbers = #tpu.dot_dimension_numbers<[2], [1], [1], [2], [0, 0, 0, 1, 1, 2], [0], [0]>} : vector<8x1x8xbf16>, vector<8x8x8xbf16>, vector<8x1x8xf32> -> vector<8x1x8xf32>
    "tpu.trace_stop"() : () -> ()
    %202 = vector.shape_cast %201 : vector<8x1x8xf32> to vector<8x8xf32>
    %203 = vector.shape_cast %199 : vector<8x1x8xf32> to vector<8x8xf32>
    %204 = arith.addf %183, %203 : vector<8x8xf32>
    %205 = vector.extract_strided_slice %159 {offsets = [0, 16], sizes = [8, 8], strides = [1, 1]} : vector<8x32xf32> to vector<8x8xf32>
    %206 = vector.shape_cast %205 : vector<8x8xf32> to vector<8x1x8xf32>
    %207 = arith.truncf %206 : vector<8x1x8xf32> to vector<8x1x8xbf16>
    %208 = vector.extract_strided_slice %161 {offsets = [0, 0, 16], sizes = [8, 8, 8], strides = [1, 1, 1]} : vector<8x8x32xbf16> to vector<8x8x8xbf16>
    %209 = vector.extract_strided_slice %163 {offsets = [0, 0, 16], sizes = [8, 8, 8], strides = [1, 1, 1]} : vector<8x8x32xbf16> to vector<8x8x8xbf16>
    "tpu.trace_start"() <{level = 10 : i32, message = "bqd,bkd->bqk"}> : () -> ()
    %cst_77 = arith.constant dense<0.000000e+00> : vector<8x1x8xf32>
    %210 = tpu.matmul %207, %208, %cst_77 {dimension_numbers = #tpu.dot_dimension_numbers<[2], [2], [1], [1], [0, 0, 0, 1, 1, 1], [0], [0]>} : vector<8x1x8xbf16>, vector<8x8x8xbf16>, vector<8x1x8xf32> -> vector<8x1x8xf32>
    "tpu.trace_stop"() : () -> ()
    %cst_78 = arith.constant dense<0xFF800000> : vector<8x1xf32>
    %211 = vector.multi_reduction <maximumf>, %210, %cst_78 [2] : vector<8x1x8xf32> to vector<8x1xf32>
    %212 = vector.shape_cast %211 : vector<8x1xf32> to vector<8x1x1xf32>
    %213 = vector.broadcast %212 : vector<8x1x1xf32> to vector<8x1x8xf32>
    %214 = arith.subf %210, %213 : vector<8x1x8xf32>
    %215 = math.exp %214 : vector<8x1x8xf32>
    %cst_79 = arith.constant dense<0.000000e+00> : vector<8x1xf32>
    %216 = vector.multi_reduction <add>, %215, %cst_79 [2] : vector<8x1x8xf32> to vector<8x1xf32>
    %217 = vector.shape_cast %216 : vector<8x1xf32> to vector<8x1x1xf32>
    %218 = tpu.reciprocal %217 {approx = true} : vector<8x1x1xf32> -> vector<8x1x1xf32>
    %219 = vector.broadcast %218 : vector<8x1x1xf32> to vector<8x1x8xf32>
    %220 = arith.mulf %215, %219 : vector<8x1x8xf32>
    %221 = arith.truncf %220 : vector<8x1x8xf32> to vector<8x1x8xbf16>
    "tpu.trace_start"() <{level = 10 : i32, message = "bqk,bkd->bqd"}> : () -> ()
    %cst_80 = arith.constant dense<0.000000e+00> : vector<8x1x8xf32>
    %222 = tpu.matmul %221, %209, %cst_80 {dimension_numbers = #tpu.dot_dimension_numbers<[2], [1], [1], [2], [0, 0, 0, 1, 1, 2], [0], [0]>} : vector<8x1x8xbf16>, vector<8x8x8xbf16>, vector<8x1x8xf32> -> vector<8x1x8xf32>
    "tpu.trace_stop"() : () -> ()
    %223 = vector.shape_cast %222 : vector<8x1x8xf32> to vector<8x8xf32>
    %224 = vector.shape_cast %220 : vector<8x1x8xf32> to vector<8x8xf32>
    %225 = arith.addf %204, %224 : vector<8x8xf32>
    %226 = vector.extract_strided_slice %159 {offsets = [0, 24], sizes = [8, 8], strides = [1, 1]} : vector<8x32xf32> to vector<8x8xf32>
    %227 = vector.shape_cast %226 : vector<8x8xf32> to vector<8x1x8xf32>
    %228 = arith.truncf %227 : vector<8x1x8xf32> to vector<8x1x8xbf16>
    %229 = vector.extract_strided_slice %161 {offsets = [0, 0, 24], sizes = [8, 8, 8], strides = [1, 1, 1]} : vector<8x8x32xbf16> to vector<8x8x8xbf16>
    %230 = vector.extract_strided_slice %163 {offsets = [0, 0, 24], sizes = [8, 8, 8], strides = [1, 1, 1]} : vector<8x8x32xbf16> to vector<8x8x8xbf16>
    "tpu.trace_start"() <{level = 10 : i32, message = "bqd,bkd->bqk"}> : () -> ()
    %cst_81 = arith.constant dense<0.000000e+00> : vector<8x1x8xf32>
    %231 = tpu.matmul %228, %229, %cst_81 {dimension_numbers = #tpu.dot_dimension_numbers<[2], [2], [1], [1], [0, 0, 0, 1, 1, 1], [0], [0]>} : vector<8x1x8xbf16>, vector<8x8x8xbf16>, vector<8x1x8xf32> -> vector<8x1x8xf32>
    "tpu.trace_stop"() : () -> ()
    %cst_82 = arith.constant dense<0xFF800000> : vector<8x1xf32>
    %232 = vector.multi_reduction <maximumf>, %231, %cst_82 [2] : vector<8x1x8xf32> to vector<8x1xf32>
    %233 = vector.shape_cast %232 : vector<8x1xf32> to vector<8x1x1xf32>
    %234 = vector.broadcast %233 : vector<8x1x1xf32> to vector<8x1x8xf32>
    %235 = arith.subf %231, %234 : vector<8x1x8xf32>
    %236 = math.exp %235 : vector<8x1x8xf32>
    %cst_83 = arith.constant dense<0.000000e+00> : vector<8x1xf32>
    %237 = vector.multi_reduction <add>, %236, %cst_83 [2] : vector<8x1x8xf32> to vector<8x1xf32>
    %238 = vector.shape_cast %237 : vector<8x1xf32> to vector<8x1x1xf32>
    %239 = tpu.reciprocal %238 {approx = true} : vector<8x1x1xf32> -> vector<8x1x1xf32>
    %240 = vector.broadcast %239 : vector<8x1x1xf32> to vector<8x1x8xf32>
    %241 = arith.mulf %236, %240 : vector<8x1x8xf32>
    %242 = arith.truncf %241 : vector<8x1x8xf32> to vector<8x1x8xbf16>
    "tpu.trace_start"() <{level = 10 : i32, message = "bqk,bkd->bqd"}> : () -> ()
    %cst_84 = arith.constant dense<0.000000e+00> : vector<8x1x8xf32>
    %243 = tpu.matmul %242, %230, %cst_84 {dimension_numbers = #tpu.dot_dimension_numbers<[2], [1], [1], [2], [0, 0, 0, 1, 1, 2], [0], [0]>} : vector<8x1x8xbf16>, vector<8x8x8xbf16>, vector<8x1x8xf32> -> vector<8x1x8xf32>
    "tpu.trace_stop"() : () -> ()
    %244 = vector.shape_cast %243 : vector<8x1x8xf32> to vector<8x8xf32>
    %245 = vector.shape_cast %241 : vector<8x1x8xf32> to vector<8x8xf32>
    %246 = arith.addf %225, %245 : vector<8x8xf32>
    %247 = tpu.concatenate %182, %202, %223, %244 in 1 : vector<8x8xf32>, vector<8x8xf32>, vector<8x8xf32>, vector<8x8xf32> -> vector<8x32xf32>
    %248 = arith.truncf %247 : vector<8x32xf32> to vector<8x32xbf16>
    %c0_85 = arith.constant 0 : index
    %c0_86 = arith.constant 0 : index
    %c0_87 = arith.constant 0 : index
    %249 = vector.load %arg15[%c0_85, %c0_86, %c0_87] : memref<1x32x32xbf16, #tpu.memory_space<vmem>>, vector<1x32x32xbf16>
    %250 = vector.shape_cast %249 : vector<1x32x32xbf16> to vector<32x32xbf16>
    %cst_88 = arith.constant dense<0.000000e+00> : vector<8x32xf32>
    %251 = tpu.matmul %248, %250, %cst_88 {dimension_numbers = #tpu.dot_dimension_numbers<[1], [0], [0], [1], [0, 0, 1, 1], [], []>} : vector<8x32xbf16>, vector<32x32xbf16>, vector<8x32xf32> -> vector<8x32xf32>
    %252 = arith.addf %125, %251 : vector<8x32xf32>
    %c0_89 = arith.constant 0 : index
    %c0_90 = arith.constant 0 : index
    %c0_91 = arith.constant 0 : index
    %253 = vector.load %arg16[%c0_89, %c0_90, %c0_91] : memref<1x1x32xf32, #tpu.memory_space<vmem>>, vector<1x1x32xf32>
    %254 = vector.shape_cast %253 : vector<1x1x32xf32> to vector<1x32xf32>
    %255 = vector.broadcast %254 : vector<1x32xf32> to vector<8x32xf32>
    %256 = arith.addf %252, %255 : vector<8x32xf32>
    %c0_92 = arith.constant 0 : index
    %c0_93 = arith.constant 0 : index
    %c0_94 = arith.constant 0 : index
    %257 = vector.load %arg17[%c0_92, %c0_93, %c0_94] : memref<1x1x32xf32, #tpu.memory_space<vmem>>, vector<1x1x32xf32>
    %258 = vector.shape_cast %257 : vector<1x1x32xf32> to vector<1x32xf32>
    %c0_95 = arith.constant 0 : index
    %c0_96 = arith.constant 0 : index
    %c0_97 = arith.constant 0 : index
    %259 = vector.load %arg18[%c0_95, %c0_96, %c0_97] : memref<1x1x32xf32, #tpu.memory_space<vmem>>, vector<1x1x32xf32>
    %260 = vector.shape_cast %259 : vector<1x1x32xf32> to vector<1x32xf32>
    %cst_98 = arith.constant dense<0.000000e+00> : vector<8xf32>
    %261 = vector.multi_reduction <add>, %256, %cst_98 [1] : vector<8x32xf32> to vector<8xf32>
    %262 = vector.shape_cast %261 : vector<8xf32> to vector<8x1xf32>
    %cst_99 = arith.constant 3.200000e+01 : f32
    %263 = vector.broadcast %cst_99 : f32 to vector<8x1xf32>
    %264 = arith.divf %262, %263 : vector<8x1xf32>
    %265 = vector.broadcast %264 : vector<8x1xf32> to vector<8x32xf32>
    %266 = arith.subf %256, %265 : vector<8x32xf32>
    %267 = arith.mulf %266, %266 : vector<8x32xf32>
    %cst_100 = arith.constant dense<0.000000e+00> : vector<8xf32>
    %268 = vector.multi_reduction <add>, %267, %cst_100 [1] : vector<8x32xf32> to vector<8xf32>
    %269 = vector.shape_cast %268 : vector<8xf32> to vector<8x1xf32>
    %cst_101 = arith.constant 3.200000e+01 : f32
    %270 = vector.broadcast %cst_101 : f32 to vector<8x1xf32>
    %271 = arith.divf %269, %270 : vector<8x1xf32>
    %272 = vector.broadcast %264 : vector<8x1xf32> to vector<8x32xf32>
    %273 = arith.subf %256, %272 : vector<8x32xf32>
    %cst_102 = arith.constant 9.99999974E-6 : f32
    %274 = vector.broadcast %cst_102 : f32 to vector<8x1xf32>
    %275 = arith.addf %271, %274 : vector<8x1xf32>
    %276 = math.rsqrt %275 : vector<8x1xf32>
    %277 = vector.broadcast %276 : vector<8x1xf32> to vector<8x32xf32>
    %278 = arith.mulf %273, %277 : vector<8x32xf32>
    %279 = vector.broadcast %258 : vector<1x32xf32> to vector<8x32xf32>
    %280 = arith.mulf %278, %279 : vector<8x32xf32>
    %281 = vector.broadcast %260 : vector<1x32xf32> to vector<8x32xf32>
    %282 = arith.addf %280, %281 : vector<8x32xf32>
    %283 = arith.truncf %282 : vector<8x32xf32> to vector<8x32xbf16>
    %c0_103 = arith.constant 0 : index
    %c0_104 = arith.constant 0 : index
    %c0_105 = arith.constant 0 : index
    %284 = vector.load %arg19[%c0_103, %c0_104, %c0_105] : memref<1x32x128xbf16, #tpu.memory_space<vmem>>, vector<1x32x128xbf16>
    %285 = vector.shape_cast %284 : vector<1x32x128xbf16> to vector<32x128xbf16>
    %cst_106 = arith.constant dense<0.000000e+00> : vector<8x128xf32>
    %286 = tpu.matmul %283, %285, %cst_106 {dimension_numbers = #tpu.dot_dimension_numbers<[1], [0], [0], [1], [0, 0, 1, 1], [], []>} : vector<8x32xbf16>, vector<32x128xbf16>, vector<8x128xf32> -> vector<8x128xf32>
    %c0_107 = arith.constant 0 : index
    %c0_108 = arith.constant 0 : index
    %c0_109 = arith.constant 0 : index
    %287 = vector.load %arg20[%c0_107, %c0_108, %c0_109] : memref<1x1x128xf32, #tpu.memory_space<vmem>>, vector<1x1x128xf32>
    %288 = vector.shape_cast %287 : vector<1x1x128xf32> to vector<1x128xf32>
    %289 = vector.broadcast %288 : vector<1x128xf32> to vector<8x128xf32>
    %290 = arith.addf %286, %289 : vector<8x128xf32>
    %cst_110 = arith.constant 0.000000e+00 : f32
    %291 = vector.broadcast %cst_110 : f32 to vector<8x128xf32>
    %292 = arith.maximumf %290, %291 : vector<8x128xf32>
    %293 = arith.truncf %292 : vector<8x128xf32> to vector<8x128xbf16>
    %c0_111 = arith.constant 0 : index
    %c0_112 = arith.constant 0 : index
    %c0_113 = arith.constant 0 : index
    %294 = vector.load %arg21[%c0_111, %c0_112, %c0_113] : memref<1x128x32xbf16, #tpu.memory_space<vmem>>, vector<1x128x32xbf16>
    %295 = vector.shape_cast %294 : vector<1x128x32xbf16> to vector<128x32xbf16>
    %cst_114 = arith.constant dense<0.000000e+00> : vector<8x32xf32>
    %296 = tpu.matmul %293, %295, %cst_114 {dimension_numbers = #tpu.dot_dimension_numbers<[1], [0], [0], [1], [0, 0, 1, 1], [], []>} : vector<8x128xbf16>, vector<128x32xbf16>, vector<8x32xf32> -> vector<8x32xf32>
    %297 = arith.addf %256, %296 : vector<8x32xf32>
    %c0_115 = arith.constant 0 : index
    %c0_116 = arith.constant 0 : index
    %c0_117 = arith.constant 0 : index
    %298 = vector.load %arg22[%c0_115, %c0_116, %c0_117] : memref<1x1x32xf32, #tpu.memory_space<vmem>>, vector<1x1x32xf32>
    %299 = vector.shape_cast %298 : vector<1x1x32xf32> to vector<1x32xf32>
    %300 = vector.broadcast %299 : vector<1x32xf32> to vector<8x32xf32>
    %301 = arith.addf %297, %300 : vector<8x32xf32>
    %c0_118 = arith.constant 0 : index
    %c0_119 = arith.constant 0 : index
    %302 = vector.load %arg29[%c0_118, %c0_119] : memref<8x32xf32, #tpu.memory_space<vmem>>, vector<8x32xf32>
    tpu.vector_store %arg29[%c0_118, %c0_119], %301 {strides = array<i32>} : memref<8x32xf32, #tpu.memory_space<vmem>>, vector<8x32xf32>,
    %c1_i32 = arith.constant 1 : i32
    %303 = arith.cmpi eq, %arg1, %c1_i32 : i32
    %304 = arith.extui %303 : i1 to i32
    %c0_i32_120 = arith.constant 0 : i32
    %305 = arith.cmpi ne, %304, %c0_i32_120 : i32
    scf.if %305 {
      %306 = arith.truncf %301 : vector<8x32xf32> to vector<8x32xbf16>
      %c0_121 = arith.constant 0 : index
      %c0_122 = arith.constant 0 : index
      %307 = vector.load %arg25[%c0_121, %c0_122] : memref<32x16xbf16, #tpu.memory_space<vmem>>, vector<32x16xbf16>
      %cst_123 = arith.constant dense<0.000000e+00> : vector<8x16xf32>
      %308 = tpu.matmul %306, %307, %cst_123 {dimension_numbers = #tpu.dot_dimension_numbers<[1], [0], [0], [1], [0, 0, 1, 1], [], []>} : vector<8x32xbf16>, vector<32x16xbf16>, vector<8x16xf32> -> vector<8x16xf32>
      %c0_124 = arith.constant 0 : index
      %c0_125 = arith.constant 0 : index
      %309 = vector.load %arg26[%c0_124, %c0_125] : memref<1x16xf32, #tpu.memory_space<vmem>>, vector<1x16xf32>
      %310 = vector.broadcast %309 : vector<1x16xf32> to vector<8x16xf32>
      %311 = arith.addf %308, %310 : vector<8x16xf32>
      %c0_126 = arith.constant 0 : index
      %c0_127 = arith.constant 0 : index
      %c0_128 = arith.constant 0 : index
      %312 = vector.load %arg27[%c0_126, %c0_127, %c0_128] : memref<1x8x16xf32, #tpu.memory_space<vmem>>, vector<1x8x16xf32>
      %313 = vector.shape_cast %312 : vector<1x8x16xf32> to vector<8x16xf32>
      %314 = vector.shape_cast %311 : vector<8x16xf32> to vector<1x8x16xf32>
      tpu.vector_store %arg27[%c0_126, %c0_127, %c0_128], %314 {strides = array<i32>} : memref<1x8x16xf32, #tpu.memory_space<vmem>>, vector<1x8x16xf32>,
      %cst_129 = arith.constant 2.500000e-01 : f32
      %315 = vector.broadcast %cst_129 : f32 to vector<8x8xf32>
      %316 = arith.mulf %246, %315 : vector<8x8xf32>
      %c0_130 = arith.constant 0 : index
      %c0_131 = arith.constant 0 : index
      %c0_132 = arith.constant 0 : index
      %317 = vector.load %arg28[%c0_130, %c0_131, %c0_132] : memref<1x8x8xf32, #tpu.memory_space<vmem>>, vector<1x8x8xf32>
      %318 = vector.shape_cast %317 : vector<1x8x8xf32> to vector<8x8xf32>
      %319 = vector.shape_cast %316 : vector<8x8xf32> to vector<1x8x8xf32>
      tpu.vector_store %arg28[%c0_130, %c0_131, %c0_132], %319 {strides = array<i32>} : memref<1x8x8xf32, #tpu.memory_space<vmem>>, vector<1x8x8xf32>,
    } else {
    }
    return
  }
  func.func @transform_0(%arg0: i32, %arg1: i32) -> (i32, i32) {
    %c0_i32 = arith.constant 0 : i32
    %c0_i32_0 = arith.constant 0 : i32
    %c0_i32_1 = arith.constant 0 : i32
    return %c0_i32, %c0_i32_0 : i32, i32
  }
  func.func @transform_1(%arg0: i32, %arg1: i32) -> (i32, i32) {
    %c0_i32 = arith.constant 0 : i32
    %c0_i32_0 = arith.constant 0 : i32
    %c0_i32_1 = arith.constant 0 : i32
    return %c0_i32, %c0_i32_0 : i32, i32
  }
  func.func @transform_2(%arg0: i32, %arg1: i32) -> (i32, i32) {
    %c0_i32 = arith.constant 0 : i32
    %c0_i32_0 = arith.constant 0 : i32
    %c0_i32_1 = arith.constant 0 : i32
    return %c0_i32, %c0_i32_0 : i32, i32
  }
  func.func @transform_3(%arg0: i32, %arg1: i32) -> (i32, i32, i32) {
    %c0_i32 = arith.constant 0 : i32
    %c0_i32_0 = arith.constant 0 : i32
    %c0_i32_1 = arith.constant 0 : i32
    return %arg1, %c0_i32, %c0_i32_0 : i32, i32, i32
  }
  func.func @transform_4(%arg0: i32, %arg1: i32) -> (i32, i32, i32) {
    %c0_i32 = arith.constant 0 : i32
    %c0_i32_0 = arith.constant 0 : i32
    %c0_i32_1 = arith.constant 0 : i32
    return %arg1, %c0_i32, %c0_i32_0 : i32, i32, i32
  }
  func.func @transform_5(%arg0: i32, %arg1: i32) -> (i32, i32, i32) {
    %c0_i32 = arith.constant 0 : i32
    %c0_i32_0 = arith.constant 0 : i32
    %c0_i32_1 = arith.constant 0 : i32
    return %arg1, %c0_i32, %c0_i32_0 : i32, i32, i32
  }
  func.func @transform_6(%arg0: i32, %arg1: i32) -> (i32, i32, i32) {
    %c0_i32 = arith.constant 0 : i32
    %c0_i32_0 = arith.constant 0 : i32
    %c0_i32_1 = arith.constant 0 : i32
    return %arg1, %c0_i32, %c0_i32_0 : i32, i32, i32
  }
  func.func @transform_7(%arg0: i32, %arg1: i32) -> (i32, i32, i32) {
    %c0_i32 = arith.constant 0 : i32
    %c0_i32_0 = arith.constant 0 : i32
    %c0_i32_1 = arith.constant 0 : i32
    return %arg1, %c0_i32, %c0_i32_0 : i32, i32, i32
  }
  func.func @transform_8(%arg0: i32, %arg1: i32) -> (i32, i32, i32) {
    %c0_i32 = arith.constant 0 : i32
    %c0_i32_0 = arith.constant 0 : i32
    %c0_i32_1 = arith.constant 0 : i32
    return %arg1, %c0_i32, %c0_i32_0 : i32, i32, i32
  }
  func.func @transform_9(%arg0: i32, %arg1: i32) -> (i32, i32, i32) {
    %c0_i32 = arith.constant 0 : i32
    %c0_i32_0 = arith.constant 0 : i32
    %c0_i32_1 = arith.constant 0 : i32
    return %arg1, %c0_i32, %c0_i32_0 : i32, i32, i32
  }
  func.func @transform_10(%arg0: i32, %arg1: i32) -> (i32, i32, i32) {
    %c0_i32 = arith.constant 0 : i32
    %c0_i32_0 = arith.constant 0 : i32
    %c0_i32_1 = arith.constant 0 : i32
    return %arg1, %c0_i32, %c0_i32_0 : i32, i32, i32
  }
  func.func @transform_11(%arg0: i32, %arg1: i32) -> (i32, i32, i32) {
    %c0_i32 = arith.constant 0 : i32
    %c0_i32_0 = arith.constant 0 : i32
    %c0_i32_1 = arith.constant 0 : i32
    return %arg1, %c0_i32, %c0_i32_0 : i32, i32, i32
  }
  func.func @transform_12(%arg0: i32, %arg1: i32) -> (i32, i32, i32) {
    %c0_i32 = arith.constant 0 : i32
    %c0_i32_0 = arith.constant 0 : i32
    %c0_i32_1 = arith.constant 0 : i32
    return %arg1, %c0_i32, %c0_i32_0 : i32, i32, i32
  }
  func.func @transform_13(%arg0: i32, %arg1: i32) -> (i32, i32, i32) {
    %c0_i32 = arith.constant 0 : i32
    %c0_i32_0 = arith.constant 0 : i32
    %c0_i32_1 = arith.constant 0 : i32
    return %arg1, %c0_i32, %c0_i32_0 : i32, i32, i32
  }
  func.func @transform_14(%arg0: i32, %arg1: i32) -> (i32, i32, i32) {
    %c0_i32 = arith.constant 0 : i32
    %c0_i32_0 = arith.constant 0 : i32
    %c0_i32_1 = arith.constant 0 : i32
    return %arg1, %c0_i32, %c0_i32_0 : i32, i32, i32
  }
  func.func @transform_15(%arg0: i32, %arg1: i32) -> (i32, i32, i32) {
    %c0_i32 = arith.constant 0 : i32
    %c0_i32_0 = arith.constant 0 : i32
    %c0_i32_1 = arith.constant 0 : i32
    return %arg1, %c0_i32, %c0_i32_0 : i32, i32, i32
  }
  func.func @transform_16(%arg0: i32, %arg1: i32) -> (i32, i32, i32) {
    %c0_i32 = arith.constant 0 : i32
    %c0_i32_0 = arith.constant 0 : i32
    %c0_i32_1 = arith.constant 0 : i32
    return %arg1, %c0_i32, %c0_i32_0 : i32, i32, i32
  }
  func.func @transform_17(%arg0: i32, %arg1: i32) -> (i32, i32, i32) {
    %c0_i32 = arith.constant 0 : i32
    %c0_i32_0 = arith.constant 0 : i32
    %c0_i32_1 = arith.constant 0 : i32
    return %arg1, %c0_i32, %c0_i32_0 : i32, i32, i32
  }
  func.func @transform_18(%arg0: i32, %arg1: i32) -> (i32, i32, i32) {
    %c0_i32 = arith.constant 0 : i32
    %c0_i32_0 = arith.constant 0 : i32
    %c0_i32_1 = arith.constant 0 : i32
    return %arg1, %c0_i32, %c0_i32_0 : i32, i32, i32
  }
  func.func @transform_19(%arg0: i32, %arg1: i32) -> (i32, i32, i32) {
    %c0_i32 = arith.constant 0 : i32
    %c0_i32_0 = arith.constant 0 : i32
    %c0_i32_1 = arith.constant 0 : i32
    return %arg1, %c0_i32, %c0_i32_0 : i32, i32, i32
  }
  func.func @transform_20(%arg0: i32, %arg1: i32) -> (i32, i32, i32) {
    %c0_i32 = arith.constant 0 : i32
    %c0_i32_0 = arith.constant 0 : i32
    %c0_i32_1 = arith.constant 0 : i32
    return %arg1, %c0_i32, %c0_i32_0 : i32, i32, i32
  }
  func.func @transform_21(%arg0: i32, %arg1: i32) -> (i32, i32, i32, i32) {
    %c0_i32 = arith.constant 0 : i32
    %c0_i32_0 = arith.constant 0 : i32
    %c0_i32_1 = arith.constant 0 : i32
    %c0_i32_2 = arith.constant 0 : i32
    return %arg1, %c0_i32, %c0_i32_0, %c0_i32_1 : i32, i32, i32, i32
  }
  func.func @transform_22(%arg0: i32, %arg1: i32) -> (i32, i32, i32, i32) {
    %c0_i32 = arith.constant 0 : i32
    %c0_i32_0 = arith.constant 0 : i32
    %c0_i32_1 = arith.constant 0 : i32
    %c0_i32_2 = arith.constant 0 : i32
    return %arg1, %c0_i32, %c0_i32_0, %c0_i32_1 : i32, i32, i32, i32
  }
  func.func @transform_23(%arg0: i32, %arg1: i32) -> (i32, i32) {
    %c0_i32 = arith.constant 0 : i32
    %c0_i32_0 = arith.constant 0 : i32
    %c0_i32_1 = arith.constant 0 : i32
    return %c0_i32, %c0_i32_0 : i32, i32
  }
  func.func @transform_24(%arg0: i32, %arg1: i32) -> (i32, i32) {
    %c0_i32 = arith.constant 0 : i32
    %c0_i32_0 = arith.constant 0 : i32
    %c0_i32_1 = arith.constant 0 : i32
    return %c0_i32, %c0_i32_0 : i32, i32
  }
  func.func @transform_25(%arg0: i32, %arg1: i32) -> (i32, i32, i32) {
    %c0_i32 = arith.constant 0 : i32
    %c0_i32_0 = arith.constant 0 : i32
    %c0_i32_1 = arith.constant 0 : i32
    return %arg0, %c0_i32, %c0_i32_0 : i32, i32, i32
  }
  func.func @transform_26(%arg0: i32, %arg1: i32) -> (i32, i32, i32) {
    %c0_i32 = arith.constant 0 : i32
    %c0_i32_0 = arith.constant 0 : i32
    %c0_i32_1 = arith.constant 0 : i32
    return %arg0, %c0_i32, %c0_i32_0 : i32, i32, i32
  }
}

</mosaic_0001>

<bundles_post_ra>
// kernel: transformer_decoder_forward.4
= control target key start
LH: loop header
LB: loop body
LE: loop exit
PB: predicated region body
PF: predicated region fallthrough
CT: control target
= control target key end

     0   :  { %s1260_s0 = inlined_call_operand.vmem [shape: bf16[8,8,32], index: 0, kind: input, shape index: {}]   ;;  %s1261_s1 = inlined_call_operand.hbm [shape: bf16[2,32,32], index: 1, kind: input, shape index: {}]   ;;  %s1262_s2 = inlined_call_operand.hbm [shape: f32[2,1,32], index: 2, kind: input, shape index: {}]   ;;  %s1263_s3 = inlined_call_operand.hbm [shape: bf16[2,32,32], index: 3, kind: input, shape index: {}]   ;;  %s1264_s4 = inlined_call_operand.hbm [shape: f32[2,1,32], index: 4, kind: input, shape index: {}]   ;;  %s1265_s5 = inlined_call_operand.vmem [shape: bf16[2,8,8,32], index: 5, kind: output, shape index: {0}]   ;;  %s1266_s6 = inlined_call_operand.vmem [shape: bf16[2,8,8,32], index: 6, kind: output, shape index: {1}]  }
   0x1   :  { %1271 = sst [smem:[#allocation17_spill]] %s1260_s0 }
   0x2   :  { %1272 = sst [smem:[#allocation18_spill]] %s1261_s1 }
   0x3   :  { %1273 = sst [smem:[#allocation19_spill]] %s1262_s2 }
   0x4   :  { %1274 = sst [smem:[#allocation20_spill]] %s1265_s5 }
   0x5   :  { %1275 = sst [smem:[#allocation21_spill]] %s1266_s6 }
   0x6   :  { %12 = vsyncpa [#allocation3], 0 }
   0x7   :  { %14 = vsyncpa [#allocation3 + $0x1], 0 }
   0x8   :  { %15 = vsyncpa [#allocation5], 0 }
   0x9   :  { %17 = vsyncpa [#allocation5 + $0x1], 0 }
   0xa   :  { %18 = vsyncpa [#allocation8], 0 }
   0xb   :  { %20 = vsyncpa [#allocation8 + $0x1], 0  ;;  %s1094_s21 = smov 0   ;;  %s1096_s22 = smov 0  }
   0xc   :  { %s1098_s23 = smov 0   ;;  %s1100_s24 = smov 0  }
   0xd   :  { %s1102_s25 = smov 0   ;;  %s1104_s26 = smov 0  }
   0xe   :  { %s1106_s27 = smov 0   ;;  %s1108_s28 = smov 0  }
   0xf LB: > { %1276 = sst [smem:[#allocation12_spill]] %s1035_s23  ;;  %s1267_s29 = sadd.s32 4294967295, %s1055_s28   ;;  %s1055_s28 = sphi %s1108_s28, %s26_s28   ;;  %s1051_s27 = sphi %s1106_s27, %s1299_s27   ;;  %s1047_s26 = sphi %s1104_s26, %s1293_s26   ;;  %s1043_s25 = sphi %s1102_s25, %s1298_s25   ;;  %s1039_s24 = sphi %s1100_s24, %s1297_s24   ;;  %s1035_s23 = sphi %s1098_s23, %s1291_s23   ;;  %s1031_s22 = sphi %s1096_s22, %s1296_s22   ;;  %s1027_s21 = sphi %s1094_s21, %s1295_s21  }
  0x10   : > { %1277 = sst [smem:[#allocation13_spill]] %s1047_s26  ;;  %s35_s30 = sadd.s32 1, %s1047_s26 }
  0x11   : > { %p36_p0 = scmp.ge.s32.totalorder %s35_s30, 8  ;;  %s38_s7 = sadd.s32 1, %s1051_s27 }
  0x12   : > { %s71_s8 = sadd.s32 1, %s1035_s23  ;;  %p78_p1 = scmp.ne.s32.totalorder %s1035_s23, %s1031_s22 }
  0x13   : > { %s1301_s30 = smov (%p36_p0, %s35_s30), 0  ;;  %s1303_s7 = smov (!%p36_p0, %s38_s7), %s1051_s27 }
  0x14   : > { %1278 = sst [smem:[#allocation14_spill]] %s1301_s30  ;;  %p79_p2 = scmp.eq.s32.totalorder %s1055_s28, 0 }
  0x15   : > { %p84_p3 = scmp.ne.s32.totalorder %s1031_s22, %s1027_s21  ;;  %p40_p4 = scmp.ge.s32.totalorder %s1303_s7, 2 }
  0x16   : > { %p85_p5 = scmp.eq.s32.totalorder %s1267_s29, 0  ;;  %p80_p6 = por %p79_p2, %p78_p1 }
  0x17   : > { %s1305_s7 = smov (%p40_p4, %s1303_s7), 0  ;;  %p792_p8 = scmp.lt.s32.totalorder %s1055_s28, 16 }
  0x18   : > { %1279 = sst [smem:[#allocation15_spill]] %s1305_s7  ;;  %p1147_p7 = por %p85_p5, %p84_p3 }
  0x19   : > { %s68_s10 = ssub.s32 %s1051_s27, %s1305_s7  ;;  %s1155_s11 = sand.u32 1, %s1035_s23  }
  0x1a   : > { %p69_p9 = scmp.eq.s32.totalorder %s68_s10, 0  ;;  %p1157_p10 = pnand %p792_p8, %p80_p6 }
  0x1b   : > { %s271_s13 = sand.u32 1, %s1055_s28   ;;  %s1283_s2 = sld [smem:[#allocation19_spill]] }
  0x1c   : > { %s1163_s14 = scalar_select %p69_p9, %s1035_s23, %s71_s8  }
  0x1d   : > { %s274_s18 = scalar_lea.vmem [#allocation4], %s1155_s11  ;;  %p737_p11 = scmp.ge.s32.totalorder %s1055_s28, 1 }
  0x1e   : > { %1282 = sst [smem:[#allocation16_spill]] %s1163_s14  ;;  %s281_s19 = sshll.u32 %s274_s18, 4  ;;  %s282_s19 = int_to_ptr.vmem [resolvable:$true] %s281_s19 }
  0x1f   : > { %s272_s21 = scalar_lea.sflag [#allocation5], %s271_s13  ;;  %p325_p12 = scmp.lt.s32.totalorder %s1055_s28, 17 }
  0x20   : > { %s731_s8 = sshll.u32 %s1155_s11, 4  ;;  %s765_s29 = sshll.u32 %s1051_s27, 4 }
  0x21   : > { %s277_s17 = scalar_lea.hbm %s1283_s2, %s1051_s27  ;;  %p1174_p13 = pnand %p737_p11, %p325_p12 }
  0x22   : > { %s279_s20 = sshll.u32 %s277_s17, 4  ;;  %s1285_s1 = sld [smem:[#allocation18_spill]]  ;;  %s280_s20 = int_to_ptr.hbm [resolvable:$true] %s279_s20 }
  0x23   : > { %785 = dma.hbm_to_vmem [thread:$0]  (!%p1157_p10), %s280_s20, 16, %s282_s19, %s272_s21  }
  0x24   : > { %s253_s17 = scalar_lea.vmem [#allocation2], %s731_s8  ;;  %s250_s13 = scalar_lea.sflag [#allocation3], %s1155_s11 }
  0x25   : > { %s261_s2 = sshll.u32 %s253_s17, 4  ;;  %s1057_s19 = smov 64   ;;  %s262_s2 = int_to_ptr.vmem [resolvable:$true] %s261_s2 }
  0x26   : > { %s1058_s20 = smov 4   ;;  %s297_s15 = scalar_lea.hbm %s1263_s3, %s765_s29 }
  0x27   : > { %s292_s16 = scalar_lea.vmem [#allocation6], %s731_s8  ;;  %s298_s14 = sshll.u32 %s297_s15, 4  ;;  %s299_s14 = int_to_ptr.hbm [resolvable:$true] %s298_s14 }
  0x28   : > { %s258_s18 = scalar_lea.hbm %s1285_s1, %s765_s29  ;;  %s300_s1 = sshll.u32 %s292_s16, 4  ;;  %s301_s1 = int_to_ptr.vmem [resolvable:$true] %s300_s1 }
  0x29   : > { %s259_s7 = sshll.u32 %s258_s18, 4  ;;  %s316_s23 = scalar_lea.hbm %s1264_s4, %s1051_s27  ;;  %s260_s7 = int_to_ptr.hbm [resolvable:$true] %s259_s7 }
  0x2a   : > { %782 = dma.hbm_to_vmem [thread:$0]  (!%p1157_p10), %s260_s7, 256, %s262_s2, %s250_s13, %s1057_s19, %s1057_s19, %s1058_s20  }
  0x2b   : > { %788 = dma.hbm_to_vmem [thread:$0]  (!%p1157_p10), %s299_s14, 256, %s301_s1, %s272_s21, %s1057_s19, %s1057_s19, %s1058_s20  }
  0x2c   : > { %s318_s6 = sshll.u32 %s316_s23, 4  ;;  %s313_s5 = scalar_lea.vmem [#allocation7], %s1155_s11  ;;  %s319_s6 = int_to_ptr.hbm [resolvable:$true] %s318_s6 }
  0x2d   : > { %s320_s0 = sshll.u32 %s313_s5, 4  ;;  %s311_s2 = scalar_lea.sflag [#allocation8], %s1155_s11  ;;  %s321_s0 = int_to_ptr.vmem [resolvable:$true] %s320_s0 }
  0x2e   : > { %791 = dma.hbm_to_vmem [thread:$0]  (!%p1157_p10), %s319_s6, 16, %s321_s0, %s311_s2  }
  0x2f   : > { %329 = sbr.rel (%p1174_p13) target bundleno = 203 (0xcb), region = 40  ;;  %s1202_s26 = sand.u32 (!%p1174_p13), 1, %s1031_s22  }
  0x30   : > { %s738_s1 = sshll.u32 (!%p1174_p13), %s1202_s26, 4  ;;  %s332_s29 = scalar_lea.sflag (!%p1174_p13), [#allocation3], %s1202_s26 }
  0x31   : > { %s335_s30 = scalar_lea.vmem (!%p1174_p13), [#allocation2], %s738_s1 }
  0x34   : > { %1014 = dma.done.wait (%p1147_p7), %s332_s29, 256  }
  0x35   : > { %1016 = vsyncadd (%p1147_p7), %s332_s29, 4294967040  ;;  %s1286_s5 = sadd.s32 4294967295, %s1055_s28   ;;  %s344_s23 = scalar_lea.vmem [#allocation4], %s1202_s26 }
  0x36   : > { %s341_s0 = sand.u32 1, %s1286_s5  }
  0x37   : > { %s342_s6 = scalar_lea.sflag [#allocation5], %s341_s0 }
  0x38   : > { %1018 = dma.done.wait (%p1147_p7), %s342_s6, 272  }
  0x39   : > { %1020 = vsyncadd (%p1147_p7), %s342_s6, 4294967024  ;;  %s354_s7 = scalar_lea.vmem [#allocation6], %s738_s1  ;;  %s361_s11 = scalar_lea.sflag [#allocation8], %s1202_s26 }
  0x3a   : > { %s363_s12 = scalar_lea.vmem [#allocation7], %s1202_s26 }
  0x3b   : > { %1022 = dma.done.wait (%p1147_p7), %s361_s11, 16  }
  0x3c   : > { %1024 = vsyncadd (%p1147_p7), %s361_s11, 4294967280  ;;  %p421_p0 = scmp.lt.s32.totalorder %s1039_s24, 7  ;;  %v768_v0 = vld [vmem:[%s335_s30 + $0x8] sm:$0xff]  ;;  %v767_v2 = vld [vmem:[%s335_s30] sm:$0xff]  ;;  %s1287_s8 = sld [smem:[#allocation17_spill]]  ;;  %vm463_vm0 = vcmask 261120  }
  0x3d   : > { %v770_v1 = vld [vmem:[%s354_s7 + $0x8] sm:$0xff]  ;;  %473 = vmatpush.bf16.msra.mxu0 %v768_v0  ;;  %v769_v3 = vld [vmem:[%s354_s7] sm:$0xff]  ;;  %p425_p1 = scmp.lt.s32.totalorder %s1043_s25, 1  ;;  %s1288_s18 = sld [smem:[#allocation20_spill]]  ;;  %vm514_vm1 = vcmask 257024  }
  0x3e   : > { %s1307_s24 = smov (!%p421_p0, %s1039_s24), 7  ;;  %506 = vmatpush.bf16.msra.mxu1 %v770_v1  ;;  %v859_v5 = vld [vmem:[%s344_s23] ss:$0 sm:$0xff]  ;;  %s1289_s1 = sld [smem:[#allocation21_spill]] }
  0x3f   : > { %s740_s14 = sshll.u32 %s1307_s24, 2  ;;  %s1309_s25 = smov (!%p425_p1, %s1043_s25), 1  ;;  %v860_v6 = vld [vmem:[%s363_s12] ss:$0 sm:$0xff] }
  0x40   : > { %s741_s9 = sshll.u32 %s1309_s25, 3 }
  0x41   : > { %474 = vmatpush.bf16.msra.mxu0 %v767_v2  ;;  %s430_s19 = sadd.s32 %s741_s9, %s1307_s24 }
  0x42   : > { %s424_s13 = scalar_lea.vmem %s1287_s8, %s740_s14  ;;  %507 = vmatpush.bf16.msra.mxu1 %v769_v3  ;;  %s742_s20 = sshll.u32 %s430_s19, 2 }
  0x43   : > { %v442_v4 = vld [vmem:[%s424_s13] sm:$0xf]  ;;  %s432_s17 = scalar_lea.vmem %s1288_s18, %s742_s20 }
  0x44   : > { %753 = vmatmul.msk.bf16.vlgmr.msra.gmra.mxu0 %vm463_vm0, %v442_v4  ;;  %s440_s29 = scalar_lea.vmem %s1289_s1, %s742_s20 }
  0x45   : > { %762 = vmatmul.msk.bf16.vlgmr.msra.gmra.mxu1 %vm463_vm0, %v442_v4 }
  0xc1   : > { %v476_v7 = vpop.f32.mrf.mxu0 }
  0xc2   : > { %v509_v8 = vpop.f32.mrf.mxu1  ;;  %v477_v9 = vadd.f32 %v859_v5, %v476_v7 }
  0xc3   : > { %v510_v10 = vadd.f32 %v860_v6, %v509_v8 }
  0xc4   : > { %v513_v11 = vpack.c.bf16 %v477_v9, %v477_v9 }
  0xc5   : > { %v516_v12 = vpack.c.bf16 %v510_v10, %v510_v10 }
  0xc6   : > { %515 = vst.msk [vmem:[%s432_s17] sm:$0xf] %vm514_vm1, %v513_v11 }
  0xc7   : > { %517 = vst.msk [vmem:[%s440_s29] sm:$0xf] %vm514_vm1, %v516_v12 }
  0xc9   : > { %v478_v13 = vpop.f32.mrf.mxu0 }
  0xca   : > { %v511_v14 = vpop.f32.mrf.mxu1 }
  0xcb PF: > { %s26_s28 = sadd.s32 1, %s1055_s28   ;;  %s1290_s24 = sld [smem:[#allocation12_spill]] }
  0xcc   : > { %p23_p2 = scmp.ge.s32.totalorder %s26_s28, 18   ;;  %s1291_s23 = sld [smem:[#allocation16_spill]] }
  0xcd   : > { %s1292_s25 = sld [smem:[#allocation13_spill]]  ;;  %s1295_s21 = smov %s1031_s22 }
  0xce   : > { %s1293_s26 = sld [smem:[#allocation14_spill]] }
  0xcf   : > { %s1294_s30 = sld [smem:[#allocation15_spill]] }
  0xd1   : > { %s1296_s22 = smov %s1290_s24  ;;  %25 = sbr.rel (!%p23_p2) target bundleno = 15 (0xf), region = 132 }
  0xd3   : > { %s1297_s24 = smov %s1292_s25  ;;  %s1298_s25 = smov %s1051_s27 }
  0xd5   : > { %s1299_s27 = smov %s1294_s30 }
  0xd6   :  { %567 = vsyncpa [#allocation3], 1 }
  0xd7   :  { %569 = vsyncpa [#allocation3 + $0x1], 1 }
  0xd8   :  { %570 = vsyncpa [#allocation5], 1 }
  0xd9   :  { %572 = vsyncpa [#allocation5 + $0x1], 1 }
  0xda   :  { %573 = vsyncpa [#allocation8], 1 }
  0xdb   :  { %575 = vsyncpa [#allocation8 + $0x1], 1 }

// kernel: transformer_decoder_forward.3
= control target key start
LH: loop header
LB: loop body
LE: loop exit
PB: predicated region body
PF: predicated region fallthrough
CT: control target
= control target key end

     0   :  { %8 = vsyncpa [#allocation3], 0  ;;  %s609_s0 = inlined_call_operand.hbm [shape: f32[8,8,16], index: 0, kind: input, shape index: {}]   ;;  %s610_s1 = inlined_call_operand.vmem [shape: bf16[16,32], index: 1, kind: input, shape index: {}]   ;;  %s611_s2 = inlined_call_operand.hbm [shape: f32[1,32], index: 2, kind: input, shape index: {}]   ;;  %s612_s3 = inlined_call_operand.vmem [shape: bf16[8,8,32], index: 3, kind: output, shape index: {}]  }
   0x1   :  { %10 = vsyncpa [#allocation3 + $0x1], 0 }
   0x2   :  { %11 = vsyncpa [#allocation5], 0  ;;  %s503_s12 = smov 0   ;;  %s505_s13 = smov 0  }
   0x3   :  { %s507_s14 = smov 0   ;;  %s509_s15 = smov 0  }
   0x4 LB: > { %s522_s16 = sadd.s32 4294967295, %s480_s15   ;;  %p37_p0 = scmp.ne.s32.totalorder %s472_s13, %s468_s12  ;;  %s480_s15 = sphi %s509_s15, %s619_s15   ;;  %s476_s14 = sphi %s507_s14, %s618_s14   ;;  %s472_s13 = sphi %s505_s13, %s617_s13   ;;  %s468_s12 = sphi %s503_s12, %s616_s12  }
   0x5   : > { %p38_p1 = scmp.eq.s32.totalorder %s522_s16, 0  ;;  %p314_p2 = scmp.ge.s32.totalorder %s480_s15, 1 }
   0x6   : > { %p116_p3 = scmp.lt.s32.totalorder %s480_s15, 9  ;;  %s131_s20 = sshll.u32 %s611_s2, 4  ;;  %s132_s20 = int_to_ptr.hbm [resolvable:$true] %s131_s20 }
   0x7   : > { %p530_p4 = por %p38_p1, %p37_p0  ;;  %s482_s22 = smov [#allocation4]  }
   0x8   : > { %p537_p5 = pnand %p314_p2, %p116_p3  ;;  %s133_s23 = sshll.u32 %s482_s22, 4  ;;  %s134_s23 = int_to_ptr.vmem [resolvable:$true] %s133_s23 }
   0x9   : > { %s546_s24 = sadd.s32 1, %s480_s15   ;;  %s24_s25 = sadd.s32 1, %s476_s14 }
   0xa   : > { %p337_p6 = pneg %p537_p5  ;;  %s21_s26 = ssub.s32 %s480_s15, %s546_s24 }
   0xb   : > { %p22_p8 = scmp.eq.s32.totalorder %s21_s26, 0  ;;  %p31_p9 = scmp.ne.s32.totalorder %s476_s14, %s472_s13 }
   0xc   : > { %p338_p7 = pnand %p337_p6, %p38_p1  ;;  %p32_p10 = scmp.eq.s32.totalorder %s480_s15, 0 }
   0xd   : > { %p346_p11 = scmp.lt.s32.totalorder %s480_s15, 8  ;;  %s144_s28 = sand.u32 1, %s476_s14  }
   0xe   : > { %340 = dma.hbm_to_vmem [thread:$0]  (!%p338_p7), %s132_s20, 16, %s134_s23, [#allocation5]  }
   0xf   : > { %s556_s27 = scalar_select %p22_p8, %s476_s14, %s24_s25  }
  0x10   : > { %p33_p12 = por %p32_p10, %p31_p9  ;;  %s317_s29 = sshll.u32 %s144_s28, 3 }
  0x11   : > { %s318_s30 = sshll.u32 %s480_s15, 3  ;;  %s148_s7 = scalar_lea.vmem [#allocation2], %s317_s29 }
  0x12   : > { %s152_s6 = scalar_lea.hbm %s609_s0, %s318_s30  ;;  %s156_s8 = sshll.u32 %s148_s7, 4  ;;  %s157_s8 = int_to_ptr.vmem [resolvable:$true] %s156_s8 }
  0x13   : > { %s154_s9 = sshll.u32 %s152_s6, 4  ;;  %p563_p13 = pnand %p346_p11, %p33_p12  ;;  %s155_s9 = int_to_ptr.hbm [resolvable:$true] %s154_s9 }
  0x14   : > { %s145_s11 = scalar_lea.sflag [#allocation3], %s144_s28  ;;  %s412_s12 = sshra.s32 %s155_s9, 4  ;;  %s413_s12 = int_to_ptr.hbm [resolvable:$true] %s412_s12 }
  0x15   : > { %s414_s18 = scalar_lea.hbm %s413_s12, 8  ;;  %p416_p2 = pneg %p563_p13 }
  0x16   : > { %p415_p0 = scmp.ne.s32.totalorder %s413_s12, %s414_s18  ;;  %s419_s20 = scalar_lea.hbm %s609_s0, 64 }
  0x17   : > { %p420_p7 = scmp.lt.s32.totalorder %s413_s12, %s609_s0  ;;  %p421_p8 = scmp.lt.s32.totalorder %s419_s20, %s414_s18 }
  0x18   : > { %p417_p3 = pnand %p416_p2, %p415_p0 }
  0x19   : > { %p422_p9 = por %p421_p8, %p420_p7 }
  0x1a   : > { %p418_p6 = pneg %p417_p3 }
  0x1c   : > { %p423_p10 = pnand %p422_p9, %p418_p6 }
  0x1e   : > { %426 = shalt.err (!%p423_p10)
}
  0x1f   : > { %344 = dma.hbm_to_vmem [thread:$0]  (!%p563_p13), %s155_s9, 128, %s157_s8, %s145_s11  }
  0x20   : > { %165 = sbr.rel (%p537_p5) target bundleno = 178 (0xb2), region = 32  ;;  %s167_s25 = sand.u32 (!%p537_p5), 1, %s472_s13  }
  0x21   : > { %s320_s26 = sshll.u32 (!%p537_p5), %s167_s25, 3  ;;  %s168_s28 = scalar_lea.sflag (!%p537_p5), [#allocation3], %s167_s25 }
  0x22   : > { %s171_s29 = scalar_lea.vmem (!%p537_p5), [#allocation2], %s320_s26 }
  0x25   : > { %459 = dma.done.wait (%p530_p4), %s168_s28, 128  }
  0x26   : > { %461 = vsyncadd (%p530_p4), %s168_s28, 4294967168 }
  0x27   : > { %463 = dma.done.wait (%p38_p1), [#allocation5], 16  }
  0x28   : > { %465 = vsyncadd (%p38_p1), [#allocation5], 4294967280  ;;  %v330_v0 = vld [vmem:[%s610_s1] sm:$0xff]  ;;  %vm218_vm0 = vcmask 130048   ;;  %p199_p5 = scmp.lt.s32.totalorder %s522_s16, 7  ;;  %vm236_vm1 = vcmask 257024  }
  0x29   : > { %v204_v1 = vld [vmem:[%s171_s29] sm:$0xff]  ;;  %229 = vmatpush.bf16.msra.mxu0 %v330_v0  ;;  %v381_v3 = vld [vmem:[#allocation4] ss:$0 sm:$0xff] }
  0x2a   : > { %v205_v2 = vpack.c.bf16 %v204_v1, %v204_v1  ;;  %s621_s16 = smov (!%p199_p5, %s522_s16), 7 }
  0x2b   : > { %s322_s17 = sshll.u32 %s621_s16, 2 }
  0x2c   : > { %327 = vmatmul.msk.bf16.vlgmr.msra.gmra.mxu0 %vm218_vm0, %v205_v2  ;;  %s202_s6 = scalar_lea.vmem %s612_s3, %s322_s17 }
  0xa9   : > { %v231_v4 = vpop.f32.mrf.mxu0 }
  0xaa   : > { %v232_v5 = vadd.f32 %v381_v3, %v231_v4 }
  0xac   : > { %v235_v6 = vpack.c.bf16 %v232_v5, %v232_v5 }
  0xae   : > { %237 = vst.msk [vmem:[%s202_s6] sm:$0xf] %vm236_vm1, %v235_v6 }
  0xb1   : > { %v233_v7 = vpop.f32.mrf.mxu0 }
  0xb2 PF: > { %p14_p1 = scmp.ge.s32.totalorder %s546_s24, 10   ;;  %s616_s12 = smov %s472_s13 }
  0xb3   : > { %s617_s13 = smov %s476_s14  ;;  %s618_s14 = smov %s556_s27 }
  0xb4   : > { %s619_s15 = smov %s546_s24  ;;  %16 = sbr.rel (!%p14_p1) target bundleno = 4 (0x4), region = 76 }
  0xb9   :  { %257 = vsyncpa [#allocation3], 1 }
  0xba   :  { %259 = vsyncpa [#allocation3 + $0x1], 1 }
  0xbb   :  { %260 = vsyncpa [#allocation5], 1 }

// kernel: transformer_decoder_forward.5
= control target key start
LH: loop header
LB: loop body
LE: loop exit
PB: predicated region body
PF: predicated region fallthrough
CT: control target
= control target key end

     0   :  { %s7342_s0 = inlined_call_operand.hbm [shape: f32[8,16], index: 0, kind: input, shape index: {}]   ;;  %s7343_s1 = inlined_call_operand.hbm [shape: bf16[16,32], index: 1, kind: input, shape index: {}]   ;;  %s7344_s2 = inlined_call_operand.hbm [shape: f32[1,32], index: 2, kind: input, shape index: {}]   ;;  %s7345_s3 = inlined_call_operand.hbm [shape: f32[2,1,32], index: 3, kind: input, shape index: {}]   ;;  %s7346_s4 = inlined_call_operand.hbm [shape: f32[2,1,32], index: 4, kind: input, shape index: {}]   ;;  %s7347_s5 = inlined_call_operand.vmem [shape: bf16[2,32,96], index: 5, kind: input, shape index: {}]   ;;  %s7348_s6 = inlined_call_operand.vmem [shape: f32[2,1,96], index: 6, kind: input, shape index: {}]   ;;  %s7349_s7 = inlined_call_operand.vmem [shape: bf16[2,32,32], index: 7, kind: input, shape index: {}]   ;;  %s7350_s8 = inlined_call_operand.hbm [shape: f32[2,1,32], index: 8, kind: input, shape index: {}]   ;;  %s7351_s9 = inlined_call_operand.hbm [shape: f32[2,1,32], index: 9, kind: input, shape index: {}]   ;;  %s7352_s10 = inlined_call_operand.hbm [shape: f32[2,1,32], index: 10, kind: input, shape index: {}]   ;;  %s7353_s11 = inlined_call_operand.vmem [shape: bf16[2,32,32], index: 11, kind: input, shape index: {}]   ;;  %s7354_s12 = inlined_call_operand.hbm [shape: f32[2,1,32], index: 12, kind: input, shape index: {}]   ;;  %s7355_s13 = inlined_call_operand.vmem [shape: bf16[2,32,32], index: 13, kind: input, shape index: {}]   ;;  %s7356_s14 = inlined_call_operand.hbm [shape: f32[2,1,32], index: 14, kind: input, shape index: {}]   ;;  %s7357_s15 = inlined_call_operand.hbm [shape: f32[2,1,32], index: 15, kind: input, shape index: {}]   ;;  %s7358_s16 = inlined_call_operand.hbm [shape: f32[2,1,32], index: 16, kind: input, shape index: {}]   ;;  %s7359_s17 = inlined_call_operand.vmem [shape: bf16[2,32,128], index: 17, kind: input, shape index: {}]   ;;  %s7360_s18 = inlined_call_operand.hbm [shape: f32[2,1,128], index: 18, kind: input, shape index: {}]   ;;  %s7361_s19 = inlined_call_operand.vmem [shape: bf16[2,128,32], index: 19, kind: input, shape index: {}]   ;;  %s7362_s20 = inlined_call_operand.hbm [shape: f32[2,1,32], index: 20, kind: input, shape index: {}]   ;;  %s7363_s21 = inlined_call_operand.vmem [shape: bf16[2,8,8,32], index: 21, kind: input, shape index: {}]   ;;  %s7364_s22 = inlined_call_operand.vmem [shape: bf16[2,8,8,32], index: 22, kind: input, shape index: {}]   ;;  %s7365_s23 = inlined_call_operand.vmem [shape: bf16[32,16], index: 23, kind: input, shape index: {}]   ;;  %s7366_s24 = inlined_call_operand.hbm [shape: f32[1,16], index: 24, kind: input, shape index: {}]   ;;  %s7367_s25 = inlined_call_operand.vmem [shape: f32[4,8,16], index: 25, kind: output, shape index: {0}]   ;;  %s7368_s26 = inlined_call_operand.hbm [shape: f32[4,8,8], index: 26, kind: output, shape index: {1}]  }
   0x1   :  { %7392 = sst [smem:[#allocation52_spill]] %s7342_s0 }
   0x2   :  { %7393 = sst [smem:[#allocation53_spill]] %s7343_s1 }
   0x3   :  { %7394 = sst [smem:[#allocation54_spill]] %s7344_s2 }
   0x4   :  { %7395 = sst [smem:[#allocation55_spill]] %s7345_s3 }
   0x5   :  { %7396 = sst [smem:[#allocation56_spill]] %s7346_s4 }
   0x6   :  { %7397 = sst [smem:[#allocation57_spill]] %s7347_s5 }
   0x7   :  { %7398 = sst [smem:[#allocation58_spill]] %s7348_s6 }
   0x8   :  { %7399 = sst [smem:[#allocation59_spill]] %s7349_s7 }
   0x9   :  { %7400 = sst [smem:[#allocation60_spill]] %s7350_s8 }
   0xa   :  { %7401 = sst [smem:[#allocation61_spill]] %s7351_s9 }
   0xb   :  { %7402 = sst [smem:[#allocation62_spill]] %s7352_s10 }
   0xc   :  { %7403 = sst [smem:[#allocation63_spill]] %s7353_s11 }
   0xd   :  { %7404 = sst [smem:[#allocation64_spill]] %s7354_s12 }
   0xe   :  { %7405 = sst [smem:[#allocation65_spill]] %s7355_s13 }
   0xf   :  { %7406 = sst [smem:[#allocation66_spill]] %s7356_s14 }
  0x10   :  { %7407 = sst [smem:[#allocation67_spill]] %s7357_s15 }
  0x11   :  { %7408 = sst [smem:[#allocation68_spill]] %s7358_s16 }
  0x12   :  { %7409 = sst [smem:[#allocation69_spill]] %s7359_s17 }
  0x13   :  { %7410 = sst [smem:[#allocation70_spill]] %s7360_s18 }
  0x14   :  { %7411 = sst [smem:[#allocation71_spill]] %s7361_s19 }
  0x15   :  { %7412 = sst [smem:[#allocation72_spill]] %s7362_s20 }
  0x16   :  { %7413 = sst [smem:[#allocation73_spill]] %s7363_s21 }
  0x17   :  { %7414 = sst [smem:[#allocation74_spill]] %s7364_s22 }
  0x18   :  { %7415 = sst [smem:[#allocation75_spill]] %s7365_s23 }
  0x19   :  { %7416 = sst [smem:[#allocation76_spill]] %s7366_s24 }
  0x1a   :  { %7417 = sst [smem:[#allocation77_spill]] %s7367_s25 }
  0x1b   :  { %7418 = sst [smem:[#allocation78_spill]] %s7368_s26 }
  0x1c   :  { %32 = vsyncpa [#allocation4], 0 }
  0x1d   :  { %33 = vsyncpa [#allocation7], 0 }
  0x1e   :  { %34 = vsyncpa [#allocation10], 0 }
  0x1f   :  { %36 = vsyncpa [#allocation10 + $0x1], 0 }
  0x20   :  { %37 = vsyncpa [#allocation13], 0 }
  0x21   :  { %39 = vsyncpa [#allocation13 + $0x1], 0 }
  0x22   :  { %40 = vsyncpa [#allocation16], 0 }
  0x23   :  { %42 = vsyncpa [#allocation16 + $0x1], 0 }
  0x24   :  { %43 = vsyncpa [#allocation19], 0 }
  0x25   :  { %45 = vsyncpa [#allocation19 + $0x1], 0 }
  0x26   :  { %46 = vsyncpa [#allocation22], 0 }
  0x27   :  { %48 = vsyncpa [#allocation22 + $0x1], 0 }
  0x28   :  { %49 = vsyncpa [#allocation25], 0 }
  0x29   :  { %51 = vsyncpa [#allocation25 + $0x1], 0 }
  0x2a   :  { %52 = vsyncpa [#allocation5], 0 }
  0x2b   :  { %54 = vsyncpa [#allocation5 + $0x1], 0  ;;  %s5932_s27 = smov 0   ;;  %s5934_s3 = smov 0  }
  0x2c   :  { %s5936_s7 = smov 0   ;;  %s5938_s28 = smov 0  }
  0x2d   :  { %s5940_s8 = smov 0   ;;  %s5942_s4 = smov 0  }
  0x2e   :  { %s5944_s29 = smov 0   ;;  %s5946_s0 = smov 0  }
  0x2f   :  { %s5948_s9 = smov 0   ;;  %s5950_s30 = smov 0  }
  0x30   :  { %s5952_s2 = smov 0  }
  0x31 LB: > { %7419 = sst [smem:[#allocation38_spill]] %s5734_s27  ;;  %s5986_s5 = sadd.s32 4294967295, %s5774_s2   ;;  %s5774_s2 = sphi %s5952_s2, %s60_s2   ;;  %s5770_s30 = sphi %s5950_s30, %s7499_s30   ;;  %s5766_s9 = sphi %s5948_s9, %s7498_s9   ;;  %s5762_s0 = sphi %s5946_s0, %s7497_s0   ;;  %s5758_s29 = sphi %s5944_s29, %s7496_s29   ;;  %s5754_s4 = sphi %s5942_s4, %s7495_s4   ;;  %s5750_s8 = sphi %s5940_s8, %s7494_s8   ;;  %s5746_s28 = sphi %s5938_s28, %s7493_s28   ;;  %s5742_s7 = sphi %s5936_s7, %s7492_s7   ;;  %s5738_s3 = sphi %s5934_s3, %s7501_s3   ;;  %s5734_s27 = sphi %s5932_s27, %s7500_s27  }
  0x32   : > { %7420 = sst [smem:[#allocation39_spill]] %s5742_s7  ;;  %s4567_s10 = sadd.s32 4294967294, %s5774_s2  }
  0x33   : > { %7421 = sst [smem:[#allocation40_spill]] %s5750_s8  ;;  %s69_s6 = sadd.s32 1, %s5766_s9 }
  0x34   : > { %7422 = sst [smem:[#allocation41_spill]] %s5754_s4  ;;  %s72_s1 = sadd.s32 1, %s5770_s30 }
  0x35   : > { %7423 = sst [smem:[#allocation42_spill]] %s5766_s9  ;;  %p70_p0 = scmp.ge.s32.totalorder %s69_s6, 2 }
  0x36   : > { %7424 = sst [smem:[#allocation43_spill]] %s5770_s30  ;;  %s142_s26 = sadd.s32 1, %s5754_s4 }
  0x37   : > { %7425 = sst [smem:[#allocation44_spill]] %s5774_s2  ;;  %p149_p1 = scmp.ne.s32.totalorder %s5754_s4, %s5750_s8 }
  0x38   : > { %p150_p2 = scmp.eq.s32.totalorder %s5774_s2, 0  ;;  %s7503_s6 = smov (%p70_p0, %s69_s6), 0 }
  0x39   : > { %7426 = sst [smem:[#allocation45_spill]] %s7503_s6  ;;  %s7505_s1 = smov (!%p70_p0, %s72_s1), %s5770_s30 }
  0x3a   : > { %s139_s23 = ssub.s32 %s5766_s9, %s7503_s6  ;;  %p6000_p3 = por %p150_p2, %p149_p1 }
  0x3b   : > { %p74_p4 = scmp.ge.s32.totalorder %s7505_s1, 4  ;;  %p140_p5 = scmp.eq.s32.totalorder %s139_s23, 0 }
  0x3c   : > { %p155_p6 = scmp.ne.s32.totalorder %s5750_s8, %s5746_s28  ;;  %p156_p7 = scmp.eq.s32.totalorder %s5986_s5, 0 }
  0x3d   : > { %s7507_s1 = smov (%p74_p4, %s7505_s1), 0  ;;  %s730_s19 = sadd.s32 1, %s5742_s7 }
  0x3e   : > { %7428 = sst [smem:[#allocation46_spill]] %s7507_s1  ;;  %p6013_p8 = por %p156_p7, %p155_p6 }
  0x3f   : > { %s6009_s22 = scalar_select %p140_p5, %s5754_s4, %s142_s26  }
  0x40   : > { %s727_s21 = ssub.s32 %s5770_s30, %s7507_s1  ;;  %p740_p10 = scmp.ne.s32.totalorder %s5742_s7, %s5738_s3 }
  0x41   : > { %7429 = sst [smem:[#allocation47_spill]] %s6009_s22  ;;  %p728_p9 = scmp.eq.s32.totalorder %s727_s21, 0 }
  0x42   : > { %p741_p11 = scmp.eq.s32.totalorder %s5986_s5, 7  ;;  %p746_p13 = scmp.ne.s32.totalorder %s5738_s3, %s5734_s27 }
  0x43   : > { %s6024_s23 = scalar_select %p728_p9, %s5742_s7, %s730_s19  }
  0x44   : > { %p6026_p12 = por %p741_p11, %p740_p10  ;;  %p747_p0 = scmp.eq.s32.totalorder %s4567_s10, 7 }
  0x45   : > { %7431 = sst [smem:[#allocation48_spill]] %s6024_s23  ;;  %p4568_p1 = scmp.ge.s32.totalorder %s5774_s2, 1 }
  0x46   : > { %s7432_s28 = scalar_select %p6026_p12, 1, 0 }
  0x47   : > { %p754_p2 = scmp.lt.s32.totalorder %s5774_s2, 9  ;;  %p6034_p4 = por %p747_p0, %p746_p13 }
  0x48   : > { %7433 = sst [smem:[#allocation49_spill]] %s7432_s28  ;;  %s5776_s10 = smov [#allocation6]  }
  0x49   : > { %s7434_s26 = scalar_select %p6034_p4, 1, 0 }
  0x4a   : > { %s7436_s30 = sld [smem:[#allocation53_spill]]  ;;  %p6041_p5 = pnand %p4568_p1, %p754_p2 }
  0x4b   : > { %7435 = sst [smem:[#allocation50_spill]] %s7434_s26  ;;  %s779_s23 = sshll.u32 %s5776_s10, 4  ;;  %s780_s23 = int_to_ptr.vmem [resolvable:$true] %s779_s23 }
  0x4c   : > { %p4834_p6 = pneg %p6041_p5  ;;  %p4889_p10 = scmp.lt.s32.totalorder %s5774_s2, 8 }
  0x4d   : > { %s7439_s24 = sld [smem:[#allocation76_spill]]  ;;  %s5777_s27 = smov 64  }
  0x4e   : > { %p6049_p9 = pnand %p4834_p6, %p156_p7  ;;  %s5778_s28 = smov 4  }
  0x4f   : > { %p6064_p11 = pnand %p4889_p10, %p6000_p3  ;;  %s5779_s1 = smov [#allocation26]  }
  0x50   : > { %s777_s22 = sshll.u32 %s7436_s30, 4  ;;  %s6055_s30 = sand.u32 1, %s5754_s4   ;;  %s778_s22 = int_to_ptr.hbm [resolvable:$true] %s777_s22 }
  0x51   : > { %4840 = dma.hbm_to_vmem [thread:$0]  (!%p6049_p9), %s778_s22, 128, %s780_s23, [#allocation7], %s5777_s27, %s5777_s27, %s5778_s28  }
  0x52   : > { %s6069_s4 = sand.u32 1, %s5774_s2   ;;  %s809_s21 = sshll.u32 %s5779_s1, 4  ;;  %s810_s21 = int_to_ptr.vmem [resolvable:$true] %s809_s21 }
  0x53   : > { %s807_s26 = sshll.u32 %s7439_s24, 4  ;;  %s7441_s27 = sld [smem:[#allocation55_spill]]  ;;  %s808_s26 = int_to_ptr.hbm [resolvable:$true] %s807_s26 }
  0x54   : > { %4846 = dma.hbm_to_vmem [thread:$0]  (!%p6049_p9), %s808_s26, 16, %s810_s21, [#allocation25]  }
  0x55   : > { %s823_s24 = scalar_lea.vmem [#allocation9], %s6055_s30  ;;  %s7382_s17 = scalar_lea.sflag [#allocation10], %s6069_s4 }
  0x56   : > { %s830_s2 = sshll.u32 %s823_s24, 4  ;;  %s7442_s21 = sld [smem:[#allocation60_spill]]  ;;  %s831_s2 = int_to_ptr.vmem [resolvable:$true] %s830_s2 }
  0x57   : > { %s879_s25 = scalar_lea.vmem [#allocation12], %s6055_s30  ;;  %s7383_s24 = scalar_lea.sflag [#allocation13], %s6069_s4 }
  0x58   : > { %s7444_s14 = sld [smem:[#allocation66_spill]]  ;;  %s896_s7 = scalar_lea.vmem [#allocation14], %s6055_s30 }
  0x59   : > { %s826_s23 = scalar_lea.hbm %s7441_s27, %s5766_s9  ;;  %s886_s27 = sshll.u32 %s879_s25, 4  ;;  %s887_s27 = int_to_ptr.vmem [resolvable:$true] %s886_s27 }
  0x5a   : > { %s828_s28 = sshll.u32 %s826_s23, 4  ;;  %s7445_s16 = sld [smem:[#allocation68_spill]]  ;;  %s829_s28 = int_to_ptr.hbm [resolvable:$true] %s828_s28 }
  0x5b   : > { %4850 = dma.hbm_to_vmem [thread:$0]  (!%p6064_p11), %s829_s28, 16, %s831_s2, %s7382_s17  }
  0x5c   : > { %s882_s22 = scalar_lea.hbm %s7442_s21, %s5766_s9  ;;  %s7443_s28 = sld [smem:[#allocation62_spill]] }
  0x5d   : > { %s884_s23 = sshll.u32 %s882_s22, 4  ;;  %s913_s21 = scalar_lea.vmem [#allocation15], %s6055_s30  ;;  %s885_s23 = int_to_ptr.hbm [resolvable:$true] %s884_s23 }
  0x5e   : > { %4856 = dma.hbm_to_vmem [thread:$0]  (!%p6064_p11), %s885_s23, 16, %s887_s27, %s7383_s24  }
  0x5f   : > { %s920_s17 = sshll.u32 %s913_s21, 4  ;;  %s7384_s22 = scalar_lea.sflag [#allocation16], %s6069_s4  ;;  %s921_s17 = int_to_ptr.vmem [resolvable:$true] %s920_s17 }
  0x60   : > { %s966_s13 = scalar_lea.hbm %s7444_s14, %s5766_s9  ;;  %s963_s23 = scalar_lea.vmem [#allocation18], %s6055_s30 }
  0x61   : > { %s970_s2 = sshll.u32 %s963_s23, 4  ;;  %s7386_s27 = scalar_lea.sflag [#allocation22], %s6069_s4  ;;  %s971_s2 = int_to_ptr.vmem [resolvable:$true] %s970_s2 }
  0x62   : > { %s916_s1 = scalar_lea.hbm %s7443_s28, %s5766_s9  ;;  %s968_s28 = sshll.u32 %s966_s13, 4  ;;  %s969_s28 = int_to_ptr.hbm [resolvable:$true] %s968_s28 }
  0x63   : > { %s918_s26 = sshll.u32 %s916_s1, 4  ;;  %s7385_s1 = scalar_lea.sflag [#allocation19], %s6069_s4  ;;  %s919_s26 = int_to_ptr.hbm [resolvable:$true] %s918_s26 }
  0x64   : > { %4862 = dma.hbm_to_vmem [thread:$0]  (!%p6064_p11), %s919_s26, 16, %s921_s17, %s7384_s22  }
  0x65   : > { %4868 = dma.hbm_to_vmem [thread:$0]  (!%p6064_p11), %s969_s28, 16, %s971_s2, %s7385_s1  }
  0x66   : > { %s1000_s17 = scalar_lea.hbm %s7445_s16, %s5766_s9  ;;  %s997_s22 = scalar_lea.vmem [#allocation21], %s6055_s30 }
  0x67   : > { %s1002_s26 = sshll.u32 %s1000_s17, 4  ;;  %s1004_s25 = sshll.u32 %s997_s22, 4  ;;  %s1003_s26 = int_to_ptr.hbm [resolvable:$true] %s1002_s26  ;;  %s1005_s25 = int_to_ptr.vmem [resolvable:$true] %s1004_s25 }
  0x68   : > { %4874 = dma.hbm_to_vmem [thread:$0]  (!%p6064_p11), %s1003_s26, 16, %s1005_s25, %s7386_s27  }
  0x69   : > { %s7446_s14 = sld [smem:[#allocation52_spill]]  ;;  %s5780_s28 = smov [#allocation3]  }
  0x6a   : > { %s768_s24 = sshll.u32 %s5780_s28, 4  ;;  %s7447_s17 = sld [smem:[#allocation54_spill]]  ;;  %s769_s24 = int_to_ptr.vmem [resolvable:$true] %s768_s24 }
  0x6b   : > { %s5781_s26 = smov [#allocation8]   ;;  %s7448_s23 = sld [smem:[#allocation56_spill]] }
  0x6c   : > { %s794_s25 = sshll.u32 %s5781_s26, 4  ;;  %s840_s22 = scalar_lea.vmem [#allocation11], %s6055_s30  ;;  %s795_s25 = int_to_ptr.vmem [resolvable:$true] %s794_s25 }
  0x6d   : > { %s847_s21 = sshll.u32 %s840_s22, 4  ;;  %s7450_s26 = sld [smem:[#allocation61_spill]]  ;;  %s848_s21 = int_to_ptr.vmem [resolvable:$true] %s847_s21 }
  0x6e   : > { %s7452_s12 = sld [smem:[#allocation64_spill]] }
  0x6f   : > { %s766_s2 = sshll.u32 %s7446_s14, 4  ;;  %s7454_s15 = sld [smem:[#allocation67_spill]]  ;;  %s767_s2 = int_to_ptr.hbm [resolvable:$true] %s766_s2 }
  0x70   : > { %s792_s1 = sshll.u32 %s7447_s17, 4  ;;  %s7456_s18 = sld [smem:[#allocation70_spill]]  ;;  %s793_s1 = int_to_ptr.hbm [resolvable:$true] %s792_s1 }
  0x71   : > { %4837 = dma.hbm_to_vmem [thread:$0]  (!%p6049_p9), %s767_s2, 128, %s769_s24, [#allocation4]  }
  0x72   : > { %s843_s28 = scalar_lea.hbm %s7448_s23, %s5766_s9  ;;  %s7449_s2 = scalar_lea.sflag [#allocation10], %s6069_s4 }
  0x73   : > { %4843 = dma.hbm_to_vmem [thread:$0]  (!%p6049_p9), %s793_s1, 16, %s795_s25, [#allocation7]  }
  0x74   : > { %s845_s27 = sshll.u32 %s843_s28, 4  ;;  %s899_s14 = scalar_lea.hbm %s7450_s26, %s5766_s9  ;;  %s846_s27 = int_to_ptr.hbm [resolvable:$true] %s845_s27 }
  0x75   : > { %4853 = dma.hbm_to_vmem [thread:$0]  (!%p6064_p11), %s846_s27, 16, %s848_s21, %s7449_s2  }
  0x76   : > { %s901_s13 = sshll.u32 %s899_s14, 4  ;;  %s903_s1 = sshll.u32 %s896_s7, 4  ;;  %s902_s13 = int_to_ptr.hbm [resolvable:$true] %s901_s13  ;;  %s904_s1 = int_to_ptr.vmem [resolvable:$true] %s903_s1 }
  0x77   : > { %s7451_s25 = scalar_lea.sflag [#allocation13], %s6069_s4  ;;  %s941_s27 = scalar_lea.hbm %s7452_s12, %s5766_s9 }
  0x78   : > { %4859 = dma.hbm_to_vmem [thread:$0]  (!%p6064_p11), %s902_s13, 16, %s904_s1, %s7451_s25  }
  0x79   : > { %s943_s22 = sshll.u32 %s941_s27, 4  ;;  %s938_s21 = scalar_lea.vmem [#allocation17], %s6055_s30  ;;  %s944_s22 = int_to_ptr.hbm [resolvable:$true] %s943_s22 }
  0x7a   : > { %s945_s2 = sshll.u32 %s938_s21, 4  ;;  %s7453_s24 = scalar_lea.sflag [#allocation16], %s6069_s4  ;;  %s946_s2 = int_to_ptr.vmem [resolvable:$true] %s945_s2 }
  0x7b   : > { %4865 = dma.hbm_to_vmem [thread:$0]  (!%p6064_p11), %s944_s22, 16, %s946_s2, %s7453_s24  }
  0x7c   : > { %s983_s14 = scalar_lea.hbm %s7454_s15, %s5766_s9  ;;  %s980_s7 = scalar_lea.vmem [#allocation20], %s6055_s30 }
  0x7d   : > { %s985_s13 = sshll.u32 %s983_s14, 4  ;;  %s987_s1 = sshll.u32 %s980_s7, 4  ;;  %s986_s13 = int_to_ptr.hbm [resolvable:$true] %s985_s13  ;;  %s988_s1 = int_to_ptr.vmem [resolvable:$true] %s987_s1 }
  0x7e   : > { %s7455_s25 = scalar_lea.sflag [#allocation19], %s6069_s4  ;;  %s1025_s27 = scalar_lea.hbm %s7456_s18, %s5766_s9 }
  0x7f   : > { %4871 = dma.hbm_to_vmem [thread:$0]  (!%p6064_p11), %s986_s13, 16, %s988_s1, %s7455_s25  }
  0x80   : > { %s1027_s22 = sshll.u32 %s1025_s27, 4  ;;  %s1022_s21 = scalar_lea.vmem [#allocation23], %s6055_s30  ;;  %s1028_s22 = int_to_ptr.hbm [resolvable:$true] %s1027_s22 }
  0x81   : > { %s1029_s2 = sshll.u32 %s1022_s21, 4  ;;  %s7457_s24 = scalar_lea.sflag [#allocation22], %s6069_s4  ;;  %s1030_s2 = int_to_ptr.vmem [resolvable:$true] %s1029_s2 }
  0x82   : > { %4877 = dma.hbm_to_vmem [thread:$0]  (!%p6064_p11), %s1028_s22, 16, %s1030_s2, %s7457_s24  }
  0x83   : > { %s7458_s20 = sld [smem:[#allocation72_spill]]  ;;  %s1047_s7 = scalar_lea.vmem [#allocation24], %s6055_s30 }
  0x84   : > { %s1054_s12 = sshll.u32 %s1047_s7, 4  ;;  %s1045_s13 = scalar_lea.sflag [#allocation25], %s6069_s4  ;;  %s1055_s12 = int_to_ptr.vmem [resolvable:$true] %s1054_s12 }
  0x87   : > { %1079 = sbr.rel (%p6041_p5) target bundleno = 5023 (0x139f), region = 120 }
  0x89   : > { %s1050_s14 = scalar_lea.hbm %s7458_s20, %s5766_s9 }
  0x8a   : > { %s1052_s15 = sshll.u32 %s1050_s14, 4  ;;  %s1053_s15 = int_to_ptr.hbm [resolvable:$true] %s1052_s15 }
  0x8b   : > { %4880 = dma.hbm_to_vmem [thread:$0]  (!%p6064_p11), %s1053_s15, 16, %s1055_s12, %s1045_s13  }
  0x8c   : > { %5693 = dma.done.wait (%p156_p7), [#allocation4], 128  }
  0x8d   : > { %5695 = vsyncadd (%p156_p7), [#allocation4], 4294967168 }
  0x8e   : > { %5697 = dma.done.wait (%p156_p7), [#allocation7], 144  }
  0x8f   : > { %5699 = vsyncadd (%p156_p7), [#allocation7], 4294967152  ;;  %s6197_s4 = sand.u32 1, %s5986_s5   ;;  %s6200_s12 = sand.u32 1, %s5750_s8  }
  0x90   : > { %s1097_s15 = scalar_lea.sflag [#allocation10], %s6197_s4 }
  0x91   : > { %5701 = dma.done.wait (%p6013_p8), %s1097_s15, 32  }
  0x92   : > { %5703 = vsyncadd (%p6013_p8), %s1097_s15, 4294967264  ;;  %s1115_s10 = scalar_lea.sflag [#allocation13], %s6197_s4 }
  0x93   : > { %5705 = dma.done.wait (%p6013_p8), %s1115_s10, 32  }
  0x94   : > { %5707 = vsyncadd (%p6013_p8), %s1115_s10, 4294967264  ;;  %s1133_s23 = scalar_lea.sflag [#allocation16], %s6197_s4 }
  0x95   : > { %5709 = dma.done.wait (%p6013_p8), %s1133_s23, 32  }
  0x96   : > { %5711 = vsyncadd (%p6013_p8), %s1133_s23, 4294967264  ;;  %s1151_s22 = scalar_lea.sflag [#allocation19], %s6197_s4 }
  0x97   : > { %5713 = dma.done.wait (%p6013_p8), %s1151_s22, 32  }
  0x98   : > { %5715 = vsyncadd (%p6013_p8), %s1151_s22, 4294967264  ;;  %s1169_s24 = scalar_lea.sflag [#allocation22], %s6197_s4 }
  0x99   : > { %5717 = dma.done.wait (%p6013_p8), %s1169_s24, 32  }
  0x9a   : > { %5719 = vsyncadd (%p6013_p8), %s1169_s24, 4294967264  ;;  %s1187_s14 = scalar_lea.sflag [#allocation25], %s6197_s4 }
  0x9b   : > { %5721 = dma.done.wait (%p6013_p8), %s1187_s14, 16  }
  0x9c   : > { %5723 = vsyncadd (%p6013_p8), %s1187_s14, 4294967280 }
  0x9d   : > { %5725 = dma.done.wait (%p156_p7), [#allocation25], 16  }
  0x9e   : > { %5727 = vsyncadd (%p156_p7), [#allocation25], 4294967280  ;;  %s7387_s13 = sand.u32 1, %s5738_s3   ;;  %p1350_p3 = scmp.lt.s32.totalorder %s5758_s29, 1 }
  0x9f   : > { %s6251_s4 = sshll.u32 %s7387_s13, 3  ;;  %p1393_p13 = scmp.lt.s32.totalorder %s5762_s0, 3 }
  0xa0   : > { %p1398_p8 = scmp.eq.s32.totalorder %s5762_s0, 0  ;;  %s7460_s7 = sld [smem:[#allocation57_spill]] }
  0xa1   : > { %s6256_s6 = scalar_select %p1350_p3, %s5758_s29, 1 }
  0xa2   : > { %s1394_s5 = scalar_select %p1393_p13, %s5762_s0, 3 }
  0xa3   : > { %s4765_s15 = sshll.u32 %s6256_s6, 4  ;;  %s7461_s21 = sld [smem:[#allocation59_spill]] }
  0xa4   : > { %s7462_s11 = sld [smem:[#allocation63_spill]]  ;;  %s4770_s14 = sshll.u32 %s6256_s6, 6 }
  0xa5   : > { %s7463_s10 = sld [smem:[#allocation65_spill]]  ;;  %s4771_s18 = sshll.u32 %s6256_s6, 5 }
  0xa6   : > { %s6267_s26 = scalar_lea.vmem %s7460_s7, %s4765_s15  ;;  %s7464_s13 = sld [smem:[#allocation69_spill]] }
  0xa7   : > { %s4596_s24 = sshll.u32 %s1394_s5, 3  ;;  %p1399_p7 = scmp.eq.s32.totalorder %s5758_s29, 0 }
  0xa8   : > { %s1349_s16 = scalar_lea.vmem [#allocation27], %s6251_s4 }
  0xa9   : > { %s6272_s27 = scalar_lea.vmem %s7461_s21, %s4765_s15  ;;  %s7465_s21 = sld [smem:[#allocation71_spill]] }
  0xaa   : > { %s6277_s1 = scalar_lea.vmem %s7462_s11, %s4765_s15  ;;  %s7466_s11 = sld [smem:[#allocation73_spill]] }
  0xab   : > { %s6282_s23 = scalar_lea.vmem %s7463_s10, %s4765_s15  ;;  %s7467_s10 = sld [smem:[#allocation74_spill]] }
  0xac   : > { %s6287_s7 = scalar_lea.vmem %s7464_s13, %s4765_s15  ;;  %s7468_s13 = sld [smem:[#allocation77_spill]] }
  0xad   : > { %p1400_p0 = pnand %p1399_p7, %p1398_p8 }
  0xaf   : > { %s6293_s17 = scalar_lea.vmem %s7465_s21, %s4770_s14  ;;  %1403 = sbr.rel (%p1400_p0) target bundleno = 318 (0x13e), region = 184 }
  0xb0   : > { %s6299_s20 = scalar_lea.vmem %s7466_s11, %s4771_s18 }
  0xb1   : > { %s6304_s9 = scalar_lea.vmem %s7467_s10, %s4771_s18 }
  0xb2   : > { %s6310_s8 = scalar_lea.vmem %s7468_s13, %s4596_s24 }
  0xb4   : > { %v4773_v0 = vld [vmem:[#allocation6] sm:$0xff]  ;;  %v1404_v1 = vld [vmem:[#allocation3] sm:$0xff]  ;;  %vm1418_vm0 = vcmask 130048   ;;  %v5004_v3 = vld [vmem:[#allocation8] ss:$0 sm:$0xff]  ;;  %vm1435_vm1 = vcmask 261120  }
  0xb5   : > { %v1405_v2 = vpack.c.bf16 %v1404_v1, %v1404_v1  ;;  %1429 = vmatpush.bf16.msra.mxu0 %v4773_v0 }
  0xb8   : > { %4601 = vmatmul.msk.bf16.vlgmr.msra.gmra.mxu0 %vm1418_vm0, %v1405_v2 }
 0x135   : > { %v1431_v4 = vpop.f32.mrf.mxu0 }
 0x136   : > { %v1432_v5 = vadd.f32 %v5004_v3, %v1431_v4 }
 0x138   : > { %1436 = vst.msk [vmem:[#allocation2] sm:$0xff] %vm1435_vm1, %v1432_v5 }
 0x13d   : > { %v1433_v6 = vpop.f32.mrf.mxu0 }
 0x13e PF: > { %vm1440_vm2 = vcmask 261120   ;;  %v5782_v9 = vmov 32.0   ;;  %v4775_v21 = vld [vmem:[%s6267_s26 + $0x8] sm:$0xff]  ;;  %v4774_v22 = vld [vmem:[%s6267_s26] sm:$0xff]  ;;  %s7470_s11 = scalar_lea.vmem [#allocation9], %s6200_s12  ;;  %s7471_s18 = scalar_lea.vmem [#allocation11], %s6200_s12 }
 0x13f   : > { %v6315_v7 = vld [vmem:[#allocation2] sm:$0xff]  ;;  %5017 = vrcp.f32 %v5782_v9  ;;  %1508 = vmatpush.bf16.msra.mxu1 %v4775_v21  ;;  %s7472_s14 = sld [smem:[#allocation58_spill]]  ;;  %s5783_s21 = smov 104   ;;  %vm1519_vm7 = vcmask 64512   ;;  %vm1556_vm8 = vcmask 1043456   ;;  %vm1754_vm9 = vcmask 130048  }
 0x140   : > { %v1441_v8 = vsel %vm1440_vm2, %v6315_v7, 0.0  ;;  %v5005_v32 = vld [vmem:[%s7470_s11] ss:$0 sm:$0xff]  ;;  %s5784_s25 = smov 120   ;;  %s5785_s28 = smov 96   ;;  %vm1756_vm10 = vcmask 195584  }
 0x141   : > { %1442 = vadd.xlane.f32.xlu0 %v1441_v8  ;;  %v5006_v35 = vld [vmem:[%s7471_s18] ss:$0 sm:$0xff]  ;;  %s5786_s19 = smov 72   ;;  %s5787_s30 = smov 88   ;;  %vm2057_vm14 = vcmask 57344   ;;  %vm3755_vm15 = vcmask 1041409  }
 0x142   : > { %s5788_s10 = smov 112   ;;  %s5790_s24 = smov 64   ;;  %vm3758_vm0 = vcmask 1042434   ;;  %vm3761_vm1 = vcmask 1043459  }
 0x143   : > { %1509 = vmatpush.bf16.msra.mxu1 %v4774_v22  ;;  %s5791_s15 = smov 56   ;;  %s5792_s22 = smov 40  }
 0x144   : > { %s5793_s13 = smov 48   ;;  %s5794_s11 = smov 8  }
 0x145   : > { %v5018_v10 = vpop.eup %5017  ;;  %s7473_s2 = scalar_lea.vmem %s7472_s14, %s6256_s6  ;;  %s5789_s6 = smov 80  }
 0x146   : > { %v1445_v11 = vmul.f32 32.0, %v5018_v10  ;;  %vm1449_vm3 = vweird.f32 %v5018_v10  ;;  %v5007_v39 = vld [vmem:[%s7473_s2] ss:$0 sm:$0xff]  ;;  %s5795_s18 = smov 24   ;;  %s5796_s26 = smov 16  }
 0x147   : > { %s7474_s5 = scalar_lea.vmem [#allocation12], %s6200_s12  ;;  %s7477_s14 = scalar_lea.vmem [#allocation17], %s6200_s12 }
 0x148   : > { %v1446_v12 = vsub.f32 1.0, %v1445_v11  ;;  %s7483_s2 = scalar_lea.vmem [#allocation24], %s6200_s12  ;;  %p4751_p1 = scmp.ne.s32.totalorder %s5758_s29, 1 }
 0x14a   : > { %v1447_v13 = vmul.f32 %v5018_v10, %v1446_v12 }
 0x14c   : > { %v1448_v14 = vadd.f32 %v5018_v10, %v1447_v13 }
 0x14e   : > { %v6319_v15 = vsel %vm1449_vm3, %v5018_v10, %v1448_v14  ;;  %vm3764_vm3 = vcmask 1044484  }
 0x14f   : > { %7469 = vst [vmem:[#allocation51_spill] sm:$0xff] %v6319_v15 }
 0x1b4   : > { %v1443_v16 = vpop.xlane.xlu0 %1442 }
 0x1b5   : > { %v1451_v17 = vmul.f32 %v6319_v15, %v1443_v16 }
 0x1b7   : > { %v1452_v18 = vsub.f32 %v6315_v7, %v1451_v17 }
 0x1b9   : > { %v1453_v19 = vmul.f32 %v1452_v18, %v1452_v18 }
 0x1bb   : > { %v1454_v20 = vsel %vm1440_vm2, %v1453_v19, 0.0 }
 0x1bc   : > { %1455 = vadd.xlane.f32.xlu0 %v1454_v20 }
 0x22f   : > { %v1456_v23 = vpop.xlane.xlu0 %1455 }
 0x230   : > { %v1457_v24 = vmul.f32 %v1456_v23, %v6319_v15 }
 0x232   : > { %v1458_v25 = vadd.f32 1e-05, %v1457_v24 }
 0x234   : > { %5019 = vrsqrt.f32 %v1458_v25  ;;  %vm1465_vm5 = vweird.f32 %v1458_v25 }
 0x23a   : > { %v5020_v26 = vpop.eup %5019 }
 0x23b   : > { %v1460_v27 = vmul.f32 %v5020_v26, %v1458_v25  ;;  %vm1466_vm4 = vweird.f32 %v5020_v26 }
 0x23c   : > { %vm1467_vm6 = vmor %vm1465_vm5, %vm1466_vm4  ;;  %vm3767_vm4 = vcmask 1045509   ;;  %vm3770_vm5 = vcmask 1046534  }
 0x23d   : > { %v1461_v28 = vmul.f32 %v5020_v26, %v1460_v27 }
 0x23f   : > { %v1462_v29 = vmul.f32 0.5, %v1461_v28 }
 0x241   : > { %v1463_v30 = vsub.f32 1.5, %v1462_v29 }
 0x243   : > { %v1464_v31 = vmul.f32 %v5020_v26, %v1463_v30 }
 0x245   : > { %v1468_v33 = vsel %vm1467_vm6, %v5020_v26, %v1464_v31  ;;  %vm3773_vm6 = vcmask 1047559  }
 0x246   : > { %v1469_v34 = vmul.f32 %v1468_v33, %v1452_v18 }
 0x248   : > { %v1473_v36 = vmul.f32 %v5005_v32, %v1469_v34 }
 0x24a   : > { %v1477_v37 = vadd.f32 %v5006_v35, %v1473_v36 }
 0x24c   : > { %v1478_v38 = vpack.c.bf16 %v1477_v37, %v1477_v37 }
 0x24e   : > { %4610 = vmatmul.msk.bf16.vlgmr.msra.gmra.mxu1 %vm1440_vm2, %v1478_v38 }
 0x2cb   : > { %v1511_v40 = vpop.f32.mrf.mxu1 }
 0x2cc   : > { %v1512_v41 = vadd.f32 %v5007_v39, %v1511_v40 }
 0x2ce   : > { %v1515_v42 = vpack.c.bf16 %v1512_v41, %v1512_v41 }
 0x2d0   : > { %1685 = vrot.lane.b32.xlu0 %v1515_v42, %s5783_s21  ;;  %1573 = vrot.lane.b32.xlu2 %v1515_v42, %s5784_s25 }
 0x2d1   : > { %1517 = vrot.lane.b32.xlu1 %v1515_v42, %s5785_s28 }
 0x2d3   : > { %v1513_v43 = vpop.f32.mrf.mxu1 }
 0x2d8   : > { %1687 = vrot.lane.b32.xlu2 %v1515_v42, %s5786_s19 }
 0x2d9   : > { %1575 = vrot.lane.b32.xlu1 %v1515_v42, %s5787_s30 }
 0x2e0   : > { %1629 = vrot.lane.b32.xlu2 %v1515_v42, %s5788_s10 }
 0x2e1   : > { %1631 = vrot.lane.b32.xlu1 %v1515_v42, %s5789_s6 }
 0x32a   : > { %v1574_v44 = vpop.permute.xlu2 %1573 }
 0x332   : > { %v1688_v47 = vpop.permute.xlu2 %1687 }
 0x333   : > { %v1693_v50 = vsel %vm1519_vm7, %v1688_v47, 0 }
 0x33a   : > { %v1630_v53 = vpop.permute.xlu2 %1629 }
 0x342   : > { %v1686_v54 = vpop.permute.xlu0 %1685 }
 0x343   : > { %v1518_v45 = vpop.permute.xlu1 %1517 }
 0x344   : > { %v1524_v46 = vsel %vm1519_vm7, %v1518_v45, 0 }
 0x345   : > { %1533 = vmatpush.bf16.xpose.msrb.mxu1 %v1524_v46 }
 0x34b   : > { %v1576_v48 = vpop.permute.xlu1 %1575 }
 0x34c   : > { %4611 = vmatmul.msk.bf16.vlgmr.msrb.gmra.mxu1 %vm1519_vm7, %v1515_v42  ;;  %v1581_v49 = vsel %vm1519_vm7, %v1576_v48, 0 }
 0x34d   : > { %1590 = vmatpush.bf16.xpose.msra.mxu3 %v1581_v49 }
 0x353   : > { %v1632_v51 = vpop.permute.xlu1 %1631 }
 0x354   : > { %4613 = vmatmul.msk.bf16.vlgmr.msra.gmra.mxu3 %vm1519_vm7, %v1574_v44  ;;  %v1637_v52 = vsel %vm1519_vm7, %v1632_v51, 0 }
 0x355   : > { %1702 = vmatpush.bf16.xpose.msrb.mxu3 %v1693_v50  ;;  %1646 = vmatpush.bf16.xpose.msra.mxu0 %v1637_v52 }
 0x35c   : > { %4615 = vmatmul.msk.bf16.vlgmr.msra.gmra.mxu0 %vm1519_vm7, %v1630_v53 }
 0x364   : > { %4617 = vmatmul.msk.bf16.vlgmr.msrb.gmra.mxu3 %vm1519_vm7, %v1686_v54 }
 0x3c9   : > { %v1535_v55 = vpop.f32.mrf.mxu1 }
 0x3ca   : > { %v1539_v56 = vsel %vm1519_vm7, %v1535_v55, -inf }
 0x3cb   : > { %1540 = vmax.xlane.f32.xlu1 %v1539_v56 }
 0x3d1   : > { %v1537_v57 = vpop.f32.mrf.mxu1 }
 0x3d2   : > { %v4777_v57 = vld [vmem:[%s6272_s27 + $0x8] sm:$0xff] }
 0x3d3   : > { %1784 = vmatpush.bf16.msrb.mxu0 %v4777_v57 }
 0x3d7   : > { %v1592_v58 = vpop.f32.mrf.mxu3 }
 0x3d8   : > { %v1596_v59 = vsel %vm1519_vm7, %v1592_v58, -inf }
 0x3d9   : > { %1597 = vmax.xlane.f32.xlu2 %v1596_v59  ;;  %v1648_v60 = vpop.f32.mrf.mxu0 }
 0x3da   : > { %v1652_v62 = vsel %vm1519_vm7, %v1648_v60, -inf }
 0x3df   : > { %v1594_v61 = vpop.f32.mrf.mxu3 }
 0x3e1   : > { %1653 = vmax.xlane.f32.xlu2 %v1652_v62  ;;  %v1650_v63 = vpop.f32.mrf.mxu0 }
 0x3e7   : > { %v1704_v0 = vpop.f32.mrf.mxu3 }
 0x3e8   : > { %v1708_v1 = vsel %vm1519_vm7, %v1704_v0, -inf }
 0x3e9   : > { %1709 = vmax.xlane.f32.xlu0 %v1708_v1 }
 0x3ef   : > { %v1706_v2 = vpop.f32.mrf.mxu3 }
 0x3f0   : > { %v5008_v2 = vld [vmem:[%s7474_s5] ss:$0 sm:$0xff] }
 0x3f9   : > { %1551 = vrot.lane.b32.xlu2 %v1515_v42, %s5790_s24 }
 0x3fd   : > { %1608 = vrot.lane.b32.xlu0 %v1515_v42, %s5791_s15 }
 0x401   : > { %1720 = vrot.lane.b32.xlu2 %v1515_v42, %s5792_s22 }
 0x405   : > { %1664 = vrot.lane.b32.xlu0 %v1515_v42, %s5793_s13 }
 0x43e   : > { %v1541_v3 = vpop.xlane.xlu1 %1540 }
 0x43f   : > { %v1542_v4 = vsub.f32 %v1535_v55, %v1541_v3 }
 0x441   : > { %v1543_v5 = vmul.f32 1.442695, %v1542_v4 }
 0x443   : > { %5021 = vpow2.f32 %v1543_v5 }
 0x449   : > { %v5022_v6 = vpop.eup %5021 }
 0x44a   : > { %v1545_v8 = vsel %vm1519_vm7, %v5022_v6, 0.0 }
 0x44b   : > { %1546 = vadd.xlane.f32.xlu1 %v1545_v8 }
 0x44c   : > { %v1598_v9 = vpop.xlane.xlu2 %1597 }
 0x44d   : > { %v1599_v10 = vsub.f32 %v1592_v58, %v1598_v9  ;;  %v4776_v58 = vld [vmem:[%s6272_s27] sm:$0xff]  ;;  %s7476_s27 = scalar_lea.vmem [#allocation15], %s6200_s12 }
 0x44e   : > { %1785 = vmatpush.bf16.msrb.mxu0 %v4776_v58 }
 0x44f   : > { %v1600_v11 = vmul.f32 1.442695, %v1599_v10 }
 0x451   : > { %5023 = vpow2.f32 %v1600_v11 }
 0x454   : > { %v1654_v12 = vpop.xlane.xlu2 %1653 }
 0x455   : > { %v1655_v20 = vsub.f32 %v1648_v60, %v1654_v12 }
 0x457   : > { %v5024_v13 = vpop.eup %5023  ;;  %v1656_v22 = vmul.f32 1.442695, %v1655_v20 }
 0x458   : > { %v1602_v14 = vsel %vm1519_vm7, %v5024_v13, 0.0 }
 0x459   : > { %1603 = vadd.xlane.f32.xlu1 %v1602_v14  ;;  %v4779_v14 = vld [vmem:[%s6277_s1 + $0x8] sm:$0xff] }
 0x45c   : > { %v1710_v16 = vpop.xlane.xlu0 %1709  ;;  %v1552_v17 = vpop.permute.xlu2 %1551 }
 0x45d   : > { %v1711_v18 = vsub.f32 %v1704_v0, %v1710_v16  ;;  %v1558_v19 = vsel %vm1556_vm8, %v1552_v17, 0  ;;  %v4778_v16 = vld [vmem:[%s6277_s1] sm:$0xff]  ;;  %s7475_s1 = scalar_lea.vmem [#allocation14], %s6200_s12 }
 0x45e   : > { %1567 = vmatpush.bf16.msra.mxu2 %v1558_v19 }
 0x45f   : > { %v1712_v21 = vmul.f32 1.442695, %v1711_v18 }
 0x461   : > { %5025 = vpow2.f32 %v1712_v21 }
 0x462   : > { %5027 = vpow2.f32 %v1656_v22 }
 0x464   : > { %v1721_v34 = vpop.permute.xlu2 %1720 }
 0x465   : > { %v1726_v36 = vsel %vm1556_vm8, %v1721_v34, 0  ;;  %v6397_v34 = vld [vmem:[%s6299_s20 + $0x4] sm:$0xf] }
 0x467   : > { %v5026_v23 = vpop.eup %5025 }
 0x468   : > { %v1714_v24 = vsel %vm1519_vm7, %v5026_v23, 0.0  ;;  %v5028_v25 = vpop.eup %5027 }
 0x469   : > { %1715 = vadd.xlane.f32.xlu1 %v1714_v24  ;;  %v1658_v28 = vsel %vm1519_vm7, %v5028_v25, 0.0 }
 0x46f   : > { %v1609_v26 = vpop.permute.xlu0 %1608 }
 0x470   : > { %v1614_v27 = vsel %vm1556_vm8, %v1609_v26, 0 }
 0x471   : > { %1623 = vmatpush.bf16.msrb.mxu2 %v1614_v27  ;;  %1659 = vadd.xlane.f32.xlu1 %v1658_v28  ;;  %v5009_v27 = vld [vmem:[%s7475_s1] ss:$0 sm:$0xff] }
 0x477   : > { %v1665_v29 = vpop.permute.xlu0 %1664 }
 0x478   : > { %v1670_v30 = vsel %vm1556_vm8, %v1665_v29, 0 }
 0x479   : > { %1679 = vmatpush.bf16.msra.mxu1 %v1670_v30  ;;  %v5010_v30 = vld [vmem:[%s7476_s27] ss:$0 sm:$0xff] }
 0x47d   : > { %1859 = vmatpush.bf16.msrb.mxu1 %v4779_v14 }
 0x481   : > { %1860 = vmatpush.bf16.msrb.mxu1 %v4778_v16 }
 0x4be   : > { %v1547_v31 = vpop.xlane.xlu1 %1546 }
 0x4bf   : > { %5029 = vrcp.f32 %v1547_v31 }
 0x4c5   : > { %v5030_v32 = vpop.eup %5029 }
 0x4c6   : > { %v1549_v33 = vmul.f32 %v5030_v32, %v5022_v6 }
 0x4c8   : > { %v1550_v35 = vpack.c.bf16 %v1549_v33, %v1549_v33 }
 0x4ca   : > { %4612 = vmatmul.msk.bf16.vlgmr.msra.gmra.mxu2 %vm1519_vm7, %v1550_v35  ;;  %v6400_v35 = vld [vmem:[%s6299_s20 + $0x8] sm:$0xf] }
 0x4cb   : > { %1735 = vmatpush.bf16.msra.mxu2 %v1726_v36  ;;  %v6403_v36 = vld [vmem:[%s6299_s20 + $0xc] sm:$0xf] }
 0x4cc   : > { %v1604_v37 = vpop.xlane.xlu1 %1603 }
 0x4cd   : > { %5031 = vrcp.f32 %v1604_v37  ;;  %v1928_v37 = vsel %vm1519_vm7, %v6397_v34, 0 }
 0x4d3   : > { %v5032_v38 = vpop.eup %5031 }
 0x4d4   : > { %v1606_v39 = vmul.f32 %v5032_v38, %v5024_v13  ;;  %v1947_v38 = vsel %vm1519_vm7, %v6400_v35, 0 }
 0x4d5   : > { %1956 = vmatpush.bf16.xpose.msra.mxu0 %v1947_v38 }
 0x4d6   : > { %v1607_v40 = vpack.c.bf16 %v1606_v39, %v1606_v39  ;;  %v1966_v39 = vsel %vm1519_vm7, %v6403_v36, 0 }
 0x4da   : > { %4614 = vmatmul.msk.bf16.vlgmr.msrb.gmra.mxu2 %vm1519_vm7, %v1607_v40  ;;  %v6412_v40 = vld [vmem:[%s6299_s20 + $0x10] sm:$0xf] }
 0x4db   : > { %1937 = vmatpush.bf16.xpose.msrb.mxu2 %v1928_v37 }
 0x4dc   : > { %v1716_v41 = vpop.xlane.xlu1 %1715 }
 0x4dd   : > { %5033 = vrcp.f32 %v1716_v41  ;;  %v6415_v41 = vld [vmem:[%s6299_s20 + $0x14] sm:$0xf] }
 0x4e3   : > { %v5034_v42 = vpop.eup %5033 }
 0x4e4   : > { %v1718_v43 = vmul.f32 %v5034_v42, %v5026_v23  ;;  %v1660_v44 = vpop.xlane.xlu1 %1659  ;;  %v6418_v42 = vld [vmem:[%s6299_s20 + $0x18] sm:$0xf] }
 0x4e5   : > { %5035 = vrcp.f32 %v1660_v44  ;;  %v2004_v44 = vsel %vm1519_vm7, %v6415_v41, 0 }
 0x4e6   : > { %v1719_v45 = vpack.c.bf16 %v1718_v43, %v1718_v43  ;;  %v1985_v43 = vsel %vm1519_vm7, %v6412_v40, 0 }
 0x4ea   : > { %4618 = vmatmul.msk.bf16.vlgmr.msra.gmra.mxu2 %vm1519_vm7, %v1719_v45  ;;  %v2023_v45 = vsel %vm1519_vm7, %v6418_v42, 0 }
 0x4eb   : > { %v5036_v46 = vpop.eup %5035  ;;  %2013 = vmatpush.bf16.xpose.msra.mxu2 %v2004_v44 }
 0x4ec   : > { %v1662_v47 = vmul.f32 %v5036_v46, %v5028_v25  ;;  %v6427_v46 = vld [vmem:[%s6299_s20 + $0x1c] sm:$0xf] }
 0x4ee   : > { %v1663_v48 = vpack.c.bf16 %v1662_v47, %v1662_v47  ;;  %v2042_v47 = vsel %vm1519_vm7, %v6427_v46, 0 }
 0x4f0   : > { %4616 = vmatmul.msk.bf16.vlgmr.msra.gmra.mxu1 %vm1519_vm7, %v1663_v48  ;;  %v5011_v48 = vld [vmem:[%s7477_s14] ss:$0 sm:$0xff] }
 0x4f1   : > { %1975 = vmatpush.bf16.xpose.msra.mxu1 %v1966_v39 }
 0x54d   : > { %v1569_v49 = vpop.f32.mrf.mxu2 }
 0x555   : > { %v1571_v50 = vpop.f32.mrf.mxu2 }
 0x55d   : > { %v1625_v51 = vpop.f32.mrf.mxu2 }
 0x55e   : > { %1742 = vrot.lane.b32.xlu1 %v1625_v51, %s5794_s11 }
 0x565   : > { %v1627_v52 = vpop.f32.mrf.mxu2 }
 0x56d   : > { %v1681_v53 = vpop.f32.mrf.mxu1  ;;  %v1737_v54 = vpop.f32.mrf.mxu2 }
 0x56e   : > { %1750 = vrot.lane.b32.xlu0 %v1737_v54, %s5795_s18  ;;  %1746 = vrot.lane.b32.xlu2 %v1681_v53, %s5796_s26 }
 0x575   : > { %v1683_v55 = vpop.f32.mrf.mxu1  ;;  %v1739_v56 = vpop.f32.mrf.mxu2 }
 0x5c8   : > { %v1747_v61 = vpop.permute.xlu2 %1746 }
 0x5d0   : > { %v1743_v59 = vpop.permute.xlu1 %1742 }
 0x5d1   : > { %v1753_v60 = vsel %vm1519_vm7, %v1569_v49, %v1743_v59 }
 0x5d2   : > { %v1755_v63 = vsel %vm1754_vm9, %v1753_v60, %v1747_v61 }
 0x5e0   : > { %v1751_v62 = vpop.permute.xlu0 %1750 }
 0x5e1   : > { %v1757_v0 = vsel %vm1756_vm10, %v1755_v63, %v1751_v62 }
 0x5e2   : > { %v1758_v1 = vpack.c.bf16 %v1757_v0, %v1757_v0 }
 0x5e4   : > { %4627 = vmatmul.msk.bf16.vlgmr.msrb.gmra.mxu0 %vm1440_vm2, %v1758_v1 }
 0x5e5   : > { %2032 = vmatpush.bf16.xpose.msrb.mxu0 %v2023_v45 }
 0x661   : > { %v1787_v3 = vpop.f32.mrf.mxu0 }
 0x662   : > { %v1791_v4 = vadd.f32 %v1787_v3, %v6315_v7  ;;  %v6386_v7 = vld [vmem:[%s6299_s20] sm:$0xf]  ;;  %s7478_s20 = scalar_lea.vmem [#allocation18], %s6200_s12 }
 0x663   : > { %v1909_v18 = vsel %vm1519_vm7, %v6386_v7, 0 }
 0x664   : > { %v6376_v5 = vadd.f32 %v5008_v2, %v1791_v4  ;;  %1918 = vmatpush.bf16.xpose.msra.mxu3 %v1909_v18 }
 0x666   : > { %v1799_v6 = vsel %vm1440_vm2, %v6376_v5, 0.0 }
 0x667   : > { %1800 = vadd.xlane.f32.xlu2 %v1799_v6 }
 0x669   : > { %v1789_v8 = vpop.f32.mrf.mxu0 }
 0x66c   : > { %1994 = vmatpush.bf16.xpose.msrb.mxu3 %v1985_v43 }
 0x6da   : > { %v1801_v9 = vpop.xlane.xlu2 %1800 }
 0x6db   : > { %v1802_v10 = vmul.f32 %v1801_v9, %v6319_v15 }
 0x6dd   : > { %v1803_v11 = vsub.f32 %v6376_v5, %v1802_v10 }
 0x6df   : > { %v1804_v12 = vmul.f32 %v1803_v11, %v1803_v11 }
 0x6e1   : > { %v1805_v13 = vsel %vm1440_vm2, %v1804_v12, 0.0 }
 0x6e2   : > { %1806 = vadd.xlane.f32.xlu0 %v1805_v13 }
 0x755   : > { %v1807_v17 = vpop.xlane.xlu0 %1806 }
 0x756   : > { %v1808_v19 = vmul.f32 %v1807_v17, %v6319_v15 }
 0x758   : > { %v1809_v20 = vadd.f32 1e-05, %v1808_v19 }
 0x75a   : > { %5037 = vrsqrt.f32 %v1809_v20  ;;  %vm1816_vm12 = vweird.f32 %v1809_v20 }
 0x760   : > { %v5038_v21 = vpop.eup %5037 }
 0x761   : > { %v1811_v22 = vmul.f32 %v5038_v21, %v1809_v20  ;;  %vm1817_vm11 = vweird.f32 %v5038_v21 }
 0x762   : > { %vm1818_vm13 = vmor %vm1816_vm12, %vm1817_vm11 }
 0x763   : > { %v1812_v23 = vmul.f32 %v5038_v21, %v1811_v22 }
 0x765   : > { %v1813_v24 = vmul.f32 0.5, %v1812_v23 }
 0x767   : > { %v1814_v25 = vsub.f32 1.5, %v1813_v24 }
 0x769   : > { %v1815_v26 = vmul.f32 %v5038_v21, %v1814_v25 }
 0x76b   : > { %v1819_v28 = vsel %vm1818_vm13, %v5038_v21, %v1815_v26 }
 0x76c   : > { %v1820_v29 = vmul.f32 %v1819_v28, %v1803_v11 }
 0x76e   : > { %v1824_v31 = vmul.f32 %v5009_v27, %v1820_v29  ;;  %v2312_v29 = vunpack.c.l.b16 %v6386_v7 }
 0x770   : > { %v1828_v32 = vadd.f32 %v5010_v30, %v1824_v31  ;;  %v6476_v30 = vpack.c.b16 %v2312_v29, %v2312_v29 }
 0x772   : > { %v1829_v33 = vpack.c.bf16 %v1828_v32, %v1828_v32 }
 0x774   : > { %4636 = vmatmul.msk.bf16.vlgmr.msrb.gmra.mxu1 %vm1440_vm2, %v1829_v33 }
 0x775   : > { %2051 = vmatpush.bf16.xpose.msrb.mxu1 %v2042_v47 }
 0x7f1   : > { %v1862_v49 = vpop.f32.mrf.mxu1 }
 0x7f2   : > { %v1863_v50 = vadd.f32 %v5011_v48, %v1862_v49 }
 0x7f4   : > { %v6433_v51 = vpack.c.bf16 %v1863_v50, %v1863_v50  ;;  %v1883_v52 = vrot.slane %v1863_v50, 1  ;;  %v1884_v53 = vrot.slane %v1863_v50, 2  ;;  %v1885_v54 = vrot.slane %v1863_v50, 3 }
 0x7f5   : > { %v1886_v59 = vrot.slane %v1863_v50, 4  ;;  %v1887_v60 = vrot.slane %v1863_v50, 5  ;;  %v1888_v61 = vrot.slane %v1863_v50, 6  ;;  %v1889_v62 = vrot.slane %v1863_v50, 7 }
 0x7f6   : > { %4637 = vmatmul.msk.bf16.vlgmr.msra.gmra.mxu3 %vm1519_vm7, %v6433_v51  ;;  %v6437_v55 = vpack.c.bf16 %v1883_v52, %v1883_v52  ;;  %v6439_v56 = vpack.c.bf16 %v1884_v53, %v1884_v53  ;;  %v6441_v57 = vpack.c.bf16 %v1885_v54, %v1885_v54 }
 0x7f7   : > { %v6449_v63 = vpack.c.bf16 %v1886_v59, %v1886_v59  ;;  %v6453_v0 = vpack.c.bf16 %v1887_v60, %v1887_v60  ;;  %v6455_v1 = vpack.c.bf16 %v1888_v61, %v1888_v61  ;;  %v6457_v2 = vpack.c.bf16 %v1889_v62, %v1889_v62 }
 0x7f8   : > { %4638 = vmatmul.msk.bf16.vlgmr.msrb.gmra.mxu2 %vm1519_vm7, %v6437_v55  ;;  %4639 = vmatmul.msk.bf16.vlgmr.msra.gmra.mxu0 %vm1519_vm7, %v6439_v56 }
 0x7f9   : > { %4640 = vmatmul.msk.bf16.vlgmr.msra.gmra.mxu1 %vm1519_vm7, %v6441_v57  ;;  %v1864_v58 = vpop.f32.mrf.mxu1 }
 0x806   : > { %4641 = vmatmul.msk.bf16.vlgmr.msrb.gmra.mxu3 %vm1519_vm7, %v6449_v63 }
 0x808   : > { %4642 = vmatmul.msk.bf16.vlgmr.msra.gmra.mxu2 %vm1519_vm7, %v6453_v0  ;;  %4643 = vmatmul.msk.bf16.vlgmr.msrb.gmra.mxu0 %vm1519_vm7, %v6455_v1 }
 0x809   : > { %4644 = vmatmul.msk.bf16.vlgmr.msrb.gmra.mxu1 %vm1519_vm7, %v6457_v2 }
 0x875   : > { %v1958_v3 = vpop.f32.mrf.mxu0 }
 0x876   : > { %v1977_v4 = vpop.f32.mrf.mxu1  ;;  %v2064_v26 = vsel %vm2057_vm14, %v1958_v3, -inf }
 0x877   : > { %v2067_v14 = vsel %vm2057_vm14, %v1977_v4, -inf }
 0x879   : > { %v1920_v6 = vpop.f32.mrf.mxu3 }
 0x87a   : > { %v2058_v8 = vsel %vm2057_vm14, %v1920_v6, -inf }
 0x87b   : > { %2059 = vmax.xlane.f32.xlu1 %v2058_v8  ;;  %v1939_v9 = vpop.f32.mrf.mxu2 }
 0x87c   : > { %v2061_v10 = vsel %vm2057_vm14, %v1939_v9, -inf }
 0x87d   : > { %2062 = vmax.xlane.f32.xlu2 %v2061_v10  ;;  %v1960_v11 = vpop.f32.mrf.mxu0 }
 0x87e   : > { %v1979_v12 = vpop.f32.mrf.mxu1 }
 0x881   : > { %v1922_v13 = vpop.f32.mrf.mxu3 }
 0x883   : > { %2068 = vmax.xlane.f32.xlu1 %v2067_v14  ;;  %v1941_v16 = vpop.f32.mrf.mxu2 }
 0x885   : > { %v2034_v17 = vpop.f32.mrf.mxu0 }
 0x886   : > { %v2053_v18 = vpop.f32.mrf.mxu1  ;;  %v2076_v28 = vsel %vm2057_vm14, %v2034_v17, -inf }
 0x887   : > { %v2079_v31 = vsel %vm2057_vm14, %v2053_v18, -inf }
 0x889   : > { %v1996_v19 = vpop.f32.mrf.mxu3 }
 0x88a   : > { %v2070_v20 = vsel %vm2057_vm14, %v1996_v19, -inf }
 0x88b   : > { %2071 = vmax.xlane.f32.xlu0 %v2070_v20  ;;  %v6469_v21 = vpop.f32.mrf.mxu2 }
 0x88c   : > { %v2073_v22 = vsel %vm2057_vm14, %v6469_v21, -inf }
 0x88d   : > { %2074 = vmax.xlane.f32.xlu2 %v2073_v22  ;;  %v2036_v23 = vpop.f32.mrf.mxu0 }
 0x88e   : > { %v2055_v24 = vpop.f32.mrf.mxu1  ;;  %v2341_v23 = vunpack.c.l.b16 %v6397_v34  ;;  %v2370_v34 = vunpack.c.l.b16 %v6400_v35  ;;  %v2394_v35 = vunpack.c.l.b16 %v6441_v57 }
 0x891   : > { %v1998_v25 = vpop.f32.mrf.mxu3 }
 0x892   : > { %v6516_v25 = vpack.c.b16 %v2341_v23, %v2341_v23 }
 0x893   : > { %v2017_v27 = vpop.f32.mrf.mxu2  ;;  %2065 = vmax.xlane.f32.xlu0 %v2064_v26 }
 0x894   : > { %v2307_v27 = vunpack.c.l.b16 %v6433_v51 }
 0x895   : > { %2077 = vmax.xlane.f32.xlu2 %v2076_v28  ;;  %v2428_v28 = vunpack.c.l.b16 %v6412_v40  ;;  %v2423_v40 = vunpack.c.l.b16 %v6449_v63  ;;  %v2481_v63 = vunpack.c.l.b16 %v6455_v1  ;;  %v6569_v1 = vld [vmem:[%s6304_s9] sm:$0xf] }
 0x896   : > { %v6522_v29 = vpack.c.b16 %v2307_v27, %v2307_v27 }
 0x89b   : > { %2080 = vmax.xlane.f32.xlu0 %v2079_v31  ;;  %v6524_v31 = vpack.c.b16 %v2428_v28, %v2428_v28 }
 0x89c   : > { %2314 = vrot.lane.b32.xlu1 %v6476_v30, %s5784_s25 }
 0x8ee   : > { %v2060_v32 = vpop.xlane.xlu1 %2059 }
 0x8ef   : > { %v2082_v33 = vsub.f32 %v1920_v6, %v2060_v32  ;;  %v2336_v6 = vunpack.c.l.b16 %v6437_v55  ;;  %v6535_v32 = vpack.c.b16 %v2370_v34, %v2370_v34 }
 0x8f0   : > { %v2063_v43 = vpop.xlane.xlu2 %2062 }
 0x8f1   : > { %v2090_v37 = vmul.f32 1.442695, %v2082_v33  ;;  %v2083_v58 = vsub.f32 %v1939_v9, %v2063_v43  ;;  %v6540_v33 = vpack.c.b16 %v2423_v40, %v2423_v40  ;;  %v2486_v43 = vunpack.c.l.b16 %v6418_v42 }
 0x8f2   : > { %v2158_v42 = vsel %vm1556_vm8, %v6569_v1, 0 }
 0x8f3   : > { %5039 = vpow2.f32 %v2090_v37  ;;  %v2092_v62 = vmul.f32 1.442695, %v2083_v58  ;;  %v2399_v37 = vunpack.c.l.b16 %v6403_v36  ;;  %v6558_v57 = vpack.c.b16 %v2486_v43, %v2486_v43  ;;  %2167 = vmatpush.bf16.msra.mxu3 %v2158_v42 }
 0x8f4   : > { %v2457_v36 = vunpack.c.l.b16 %v6415_v41  ;;  %v6576_v41 = vld [vmem:[%s6304_s9 + $0x10] sm:$0xf] }
 0x8f6   : > { %v2069_v38 = vpop.xlane.xlu1 %2068 }
 0x8f7   : > { %v2085_v39 = vsub.f32 %v1977_v4, %v2069_v38  ;;  %v6546_v38 = vpack.c.b16 %v2394_v35, %v2394_v35 }
 0x8f9   : > { %v6481_v44 = vpop.eup %5039  ;;  %v2096_v45 = vmul.f32 1.442695, %v2085_v39  ;;  %v6548_v39 = vpack.c.b16 %v2399_v37, %v2399_v37 }
 0x8fa   : > { %v2106_v7 = vsel %vm2057_vm14, %v6481_v44, 0.0 }
 0x8fb   : > { %5041 = vpow2.f32 %v2096_v45  ;;  %2107 = vadd.xlane.f32.xlu1 %v2106_v7  ;;  %v6556_v45 = vpack.c.b16 %v2481_v63, %v2481_v63  ;;  %v6565_v7 = vpack.c.b16 %v2457_v36, %v2457_v36 }
 0x8fe   : > { %v2072_v47 = vpop.xlane.xlu0 %2071 }
 0x8ff   : > { %v2086_v13 = vsub.f32 %v1996_v19, %v2072_v47  ;;  %v2510_v47 = vunpack.c.l.b16 %v6457_v2 }
 0x900   : > { %v2075_v48 = vpop.xlane.xlu2 %2074 }
 0x901   : > { %v6485_v49 = vpop.eup %5041  ;;  %v2098_v16 = vmul.f32 1.442695, %v2086_v13  ;;  %v2087_v24 = vsub.f32 %v6469_v21, %v2075_v48  ;;  %v6578_v48 = vpack.c.b16 %v2510_v47, %v2510_v47 }
 0x902   : > { %v2115_v50 = vsel %vm2057_vm14, %v6485_v49, 0.0 }
 0x903   : > { %2116 = vadd.xlane.f32.xlu0 %v2115_v50  ;;  %v2100_v26 = vmul.f32 1.442695, %v2087_v24  ;;  %v2452_v50 = vunpack.c.l.b16 %v6453_v0  ;;  %v2365_v0 = vunpack.c.l.b16 %v6439_v56 }
 0x905   : > { %v6585_v2 = vpack.c.b16 %v2452_v50, %v2452_v50  ;;  %v6595_v58 = vpack.c.b16 %v2365_v0, %v2365_v0 }
 0x906   : > { %v2066_v52 = vpop.xlane.xlu0 %2065 }
 0x907   : > { %v2084_v53 = vsub.f32 %v1958_v3, %v2066_v52  ;;  %v6494_v3 = vpack.c.b16 %v2336_v6, %v2336_v6  ;;  %v2234_v52 = vsel %vm1556_vm8, %v6576_v41, 0  ;;  %v6604_v6 = vld [vmem:[%s6304_s9 + $0x8] sm:$0xf] }
 0x908   : > { %v2078_v54 = vpop.xlane.xlu2 %2077  ;;  %2243 = vmatpush.bf16.msrb.mxu3 %v2234_v52 }
 0x909   : > { %v2094_v59 = vmul.f32 1.442695, %v2084_v53  ;;  %v2088_v60 = vsub.f32 %v2034_v17, %v2078_v54  ;;  %v6588_v53 = vld [vmem:[%s6304_s9 + $0xc] sm:$0xf] }
 0x90a   : > { %v2215_v54 = vsel %vm1556_vm8, %v6588_v53, 0 }
 0x90b   : > { %5043 = vpow2.f32 %v2094_v59  ;;  %v2102_v61 = vmul.f32 1.442695, %v2088_v60  ;;  %2224 = vmatpush.bf16.msra.mxu1 %v2215_v54  ;;  %v2515_v60 = vunpack.c.l.b16 %v6427_v46 }
 0x90d   : > { %5045 = vpow2.f32 %v2102_v61  ;;  %v6600_v61 = vpack.c.b16 %v2515_v60, %v2515_v60 }
 0x90e   : > { %v2081_v4 = vpop.xlane.xlu0 %2080  ;;  %5047 = vpow2.f32 %v2092_v62  ;;  %v2315_v59 = vpop.permute.xlu1 %2314  ;;  %v1879_v62 = vld [vmem:[%s6304_s9 + $0x14] sm:$0xf] }
 0x90f   : > { %v2089_v8 = vsub.f32 %v2053_v18, %v2081_v4  ;;  %v2755_v56 = vunpack.c.l.b16 %v1879_v62  ;;  %v2253_v34 = vsel %vm1556_vm8, %v1879_v62, 0 }
 0x911   : > { %v6490_v10 = vpop.eup %5043  ;;  %v2104_v11 = vmul.f32 1.442695, %v2089_v8  ;;  %v2196_v8 = vsel %vm1556_vm8, %v6604_v6, 0 }
 0x912   : > { %v2112_v12 = vsel %vm2057_vm14, %v6490_v10, 0.0  ;;  %2205 = vmatpush.bf16.msra.mxu0 %v2196_v8 }
 0x913   : > { %v6496_v9 = vpop.eup %5045  ;;  %5049 = vpow2.f32 %v2104_v11  ;;  %2113 = vadd.xlane.f32.xlu2 %v2112_v12  ;;  %v6610_v11 = vpack.c.b16 %v2755_v56, %v2755_v56 }
 0x914   : > { %2338 = vrot.lane.b32.xlu1 %v6494_v3, %s5784_s25  ;;  %v2124_v55 = vsel %vm2057_vm14, %v6496_v9, 0.0  ;;  %v6502_v14 = vpop.eup %5047  ;;  %5051 = vpow2.f32 %v2098_v16 }
 0x915   : > { %2125 = vadd.xlane.f32.xlu0 %v2124_v55  ;;  %v2109_v18 = vsel %vm2057_vm14, %v6502_v14, 0.0  ;;  %5053 = vpow2.f32 %v2100_v26  ;;  %v6616_v55 = vld [vmem:[%s6304_s9 + $0x4] sm:$0xf]  ;;  %v6632_v26 = vld [vmem:[%s6304_s9 + $0x18] sm:$0xf] }
 0x916   : > { %v2177_v16 = vsel %vm1556_vm8, %v6616_v55, 0  ;;  %v2272_v27 = vsel %vm1556_vm8, %v6632_v26, 0 }
 0x917   : > { %2186 = vmatpush.bf16.msrb.mxu2 %v2177_v16  ;;  %2281 = vmatpush.bf16.msrb.mxu0 %v2272_v27 }
 0x919   : > { %v6504_v17 = vpop.eup %5049 }
 0x91a   : > { %v2127_v19 = vsel %vm2057_vm14, %v6504_v17, 0.0  ;;  %v6510_v20 = vpop.eup %5051 }
 0x91b   : > { %2110 = vadd.xlane.f32.xlu2 %v2109_v18  ;;  %v2118_v22 = vsel %vm2057_vm14, %v6510_v20, 0.0  ;;  %v6529_v21 = vpop.eup %5053  ;;  %2262 = vmatpush.bf16.msra.mxu2 %v2253_v34 }
 0x91c   : > { %v2121_v51 = vsel %vm2057_vm14, %v6529_v21, 0.0 }
 0x91d   : > { %2128 = vadd.xlane.f32.xlu0 %v2127_v19  ;;  %v1881_v19 = vld [vmem:[%s6304_s9 + $0x1c] sm:$0xf]  ;;  %s7480_s9 = scalar_lea.vmem [#allocation20], %s6200_s12 }
 0x91e   : > { %v2803_v63 = vunpack.c.l.b16 %v1881_v19 }
 0x920   : > { %v6652_v47 = vpack.c.b16 %v2803_v63, %v2803_v63 }
 0x925   : > { %2119 = vadd.xlane.f32.xlu0 %v2118_v22  ;;  %v2291_v22 = vsel %vm1556_vm8, %v1881_v19, 0 }
 0x926   : > { %2300 = vmatpush.bf16.msrb.mxu1 %v2291_v22 }
 0x933   : > { %2343 = vrot.lane.b32.xlu2 %v6516_v25, %s5784_s25 }
 0x939   : > { %2309 = vrot.lane.b32.xlu0 %v6522_v29, %s5784_s25 }
 0x93b   : > { %2430 = vrot.lane.b32.xlu2 %v6524_v31, %s5784_s25 }
 0x93e   : > { %2122 = vadd.xlane.f32.xlu1 %v2121_v51 }
 0x941   : > { %2372 = vrot.lane.b32.xlu0 %v6535_v32, %s5784_s25 }
 0x943   : > { %2425 = vrot.lane.b32.xlu2 %v6540_v33, %s5784_s25 }
 0x949   : > { %2396 = vrot.lane.b32.xlu0 %v6546_v38, %s5784_s25 }
 0x94b   : > { %2401 = vrot.lane.b32.xlu2 %v6548_v39, %s5784_s25 }
 0x951   : > { %2483 = vrot.lane.b32.xlu0 %v6556_v45, %s5784_s25 }
 0x953   : > { %2488 = vrot.lane.b32.xlu2 %v6558_v57, %s5784_s25 }
 0x957   : > { %2459 = vrot.lane.b32.xlu1 %v6565_v7, %s5784_s25 }
 0x95b   : > { %2512 = vrot.lane.b32.xlu2 %v6578_v48, %s5784_s25 }
 0x95f   : > { %2454 = vrot.lane.b32.xlu1 %v6585_v2, %s5784_s25 }
 0x967   : > { %2367 = vrot.lane.b32.xlu1 %v6595_v58, %s5784_s25 }
 0x96e   : > { %v2108_v4 = vpop.xlane.xlu1 %2107 }
 0x96f   : > { %5055 = vrcp.f32 %v2108_v4  ;;  %2517 = vrot.lane.b32.xlu1 %v6600_v61, %s5784_s25 }
 0x975   : > { %v5056_v12 = vpop.eup %5055 }
 0x976   : > { %v6613_v46 = vmul.f32 %v5056_v12, %v6481_v44  ;;  %v2117_v13 = vpop.xlane.xlu0 %2116  ;;  %v2320_v44 = vsel %vm1519_vm7, %v2315_v59, 0 }
 0x977   : > { %5057 = vrcp.f32 %v2117_v13  ;;  %2757 = vrot.lane.b32.xlu1 %v6610_v11, %s5784_s25 }
 0x978   : > { %v2146_v18 = vpack.c.bf16 %v6613_v46, %v6613_v46 }
 0x97a   : > { %4645 = vmatmul.msk.bf16.vlgmr.msra.gmra.mxu3 %vm1519_vm7, %v2146_v18 }
 0x97b   : > { %2329 = vmatpush.bf16.xpose.msra.mxu3 %v2320_v44 }
 0x97d   : > { %v5058_v23 = vpop.eup %5057 }
 0x97e   : > { %v6629_v24 = vmul.f32 %v5058_v23, %v6485_v49 }
 0x97f   : > { %2836 = vrot.lane.b32.xlu1 %v6476_v30, %s5788_s10 }
 0x980   : > { %v2149_v28 = vpack.c.bf16 %v6629_v24, %v6629_v24 }
 0x982   : > { %4648 = vmatmul.msk.bf16.vlgmr.msra.gmra.mxu1 %vm1519_vm7, %v2149_v28 }
 0x986   : > { %v2114_v51 = vpop.xlane.xlu2 %2113  ;;  %v2339_v18 = vpop.permute.xlu1 %2338 }
 0x987   : > { %5059 = vrcp.f32 %v2114_v51  ;;  %2859 = vrot.lane.b32.xlu1 %v6516_v25, %s5788_s10 }
 0x988   : > { %v2126_v49 = vpop.xlane.xlu0 %2125 }
 0x98d   : > { %v5060_v40 = vpop.eup %5059 }
 0x98e   : > { %v6645_v35 = vmul.f32 %v5060_v40, %v6490_v10  ;;  %v2111_v37 = vpop.xlane.xlu2 %2110 }
 0x98f   : > { %5061 = vrcp.f32 %v2111_v37  ;;  %2834 = vrot.lane.b32.xlu1 %v6522_v29, %s5788_s10 }
 0x990   : > { %v2148_v43 = vpack.c.bf16 %v6645_v35, %v6645_v35  ;;  %v2129_v36 = vpop.xlane.xlu0 %2128 }
 0x991   : > { %5063 = vrcp.f32 %v2129_v36  ;;  %v2635_v36 = vunpack.c.l.b16 %v6569_v1  ;;  %v2731_v1 = vunpack.c.l.b16 %v6576_v41  ;;  %v2707_v41 = vunpack.c.l.b16 %v6588_v53 }
 0x992   : > { %4647 = vmatmul.msk.bf16.vlgmr.msra.gmra.mxu0 %vm1519_vm7, %v2148_v43  ;;  %5065 = vrcp.f32 %v2126_v49 }
 0x995   : > { %v5062_v42 = vpop.eup %5061 }
 0x996   : > { %v6655_v10 = vmul.f32 %v5062_v42, %v6502_v14  ;;  %v2344_v50 = vpop.permute.xlu2 %2343  ;;  %v6698_v42 = vpack.c.b16 %v2635_v36, %v2635_v36 }
 0x997   : > { %v5064_v52 = vpop.eup %5063  ;;  %2805 = vrot.lane.b32.xlu1 %v6652_v47, %s5784_s25  ;;  %v2349_v59 = vsel %vm1519_vm7, %v2344_v50, 0  ;;  %v2659_v50 = vunpack.c.l.b16 %v6616_v55  ;;  %v2683_v55 = vunpack.c.l.b16 %v6604_v6 }
 0x998   : > { %v2147_v54 = vpack.c.bf16 %v6655_v10, %v6655_v10  ;;  %v6662_v0 = vmul.f32 %v5064_v52, %v6504_v17  ;;  %v2120_v60 = vpop.xlane.xlu0 %2119  ;;  %v5066_v62 = vpop.eup %5065  ;;  %2637 = vrot.lane.b32.xlu0 %v6698_v42, %s5784_s25 }
 0x999   : > { %5067 = vrcp.f32 %v2120_v60  ;;  %v6669_v4 = vmul.f32 %v5066_v62, %v6496_v9  ;;  %v6711_v60 = vpack.c.b16 %v2731_v1, %v2731_v1 }
 0x99a   : > { %v2153_v14 = vpack.c.bf16 %v6662_v0, %v6662_v0  ;;  %4646 = vmatmul.msk.bf16.vlgmr.msrb.gmra.mxu2 %vm1519_vm7, %v2147_v54  ;;  %v6704_v54 = vpack.c.b16 %v2659_v50, %v2659_v50 }
 0x99b   : > { %2358 = vmatpush.bf16.xpose.msrb.mxu2 %v2349_v59  ;;  %v2152_v17 = vpack.c.bf16 %v6669_v4, %v6669_v4 }
 0x99c   : > { %4652 = vmatmul.msk.bf16.vlgmr.msrb.gmra.mxu1 %vm1519_vm7, %v2153_v14  ;;  %2661 = vrot.lane.b32.xlu2 %v6704_v54, %s5784_s25 }
 0x99e   : > { %v2431_v56 = vpop.permute.xlu2 %2430 }
 0x99f   : > { %v5068_v8 = vpop.eup %5067  ;;  %2857 = vrot.lane.b32.xlu1 %v6494_v3, %s5788_s10  ;;  %v2436_v16 = vsel %vm1519_vm7, %v2431_v56, 0 }
 0x9a0   : > { %v6677_v12 = vmul.f32 %v5068_v8, %v6510_v20  ;;  %v6717_v8 = vpack.c.b16 %v2683_v55, %v2683_v55 }
 0x9a2   : > { %v2150_v13 = vpack.c.bf16 %v6677_v12, %v6677_v12  ;;  %4651 = vmatmul.msk.bf16.vlgmr.msrb.gmra.mxu0 %vm1519_vm7, %v2152_v17  ;;  %v6724_v17 = vpack.c.b16 %v2707_v41, %v2707_v41 }
 0x9a4   : > { %4649 = vmatmul.msk.bf16.vlgmr.msrb.gmra.mxu3 %vm1519_vm7, %v2150_v13  ;;  %2733 = vrot.lane.b32.xlu2 %v6711_v60, %s5784_s25 }
 0x9a5   : > { %2445 = vmatpush.bf16.xpose.msrb.mxu3 %v2436_v16  ;;  %v2779_v16 = vunpack.c.l.b16 %v6632_v26 }
 0x9a6   : > { %v2426_v9 = vpop.permute.xlu2 %2425 }
 0x9ab   : > { %v2310_v19 = vpop.permute.xlu0 %2309 }
 0x9ac   : > { %2685 = vrot.lane.b32.xlu2 %v6717_v8, %s5784_s25 }
 0x9ae   : > { %v2402_v22 = vpop.permute.xlu2 %2401 }
 0x9af   : > { %v2407_v44 = vsel %vm1519_vm7, %v2402_v22, 0 }
 0x9b0   : > { %2416 = vmatpush.bf16.xpose.msra.mxu1 %v2407_v44 }
 0x9b1   : > { %v2123_v23 = vpop.xlane.xlu1 %2122 }
 0x9b2   : > { %5069 = vrcp.f32 %v2123_v23 }
 0x9b3   : > { %v2373_v20 = vpop.permute.xlu0 %2372 }
 0x9b4   : > { %v2378_v27 = vsel %vm1519_vm7, %v2373_v20, 0  ;;  %4653 = vmatmul.msk.bf16.vlgmr.msra.gmra.mxu3 %vm1519_vm7, %v2310_v19  ;;  %2709 = vrot.lane.b32.xlu2 %v6724_v17, %s5784_s25 }
 0x9b5   : > { %2387 = vmatpush.bf16.xpose.msra.mxu0 %v2378_v27 }
 0x9b6   : > { %v2489_v28 = vpop.permute.xlu2 %2488 }
 0x9b7   : > { %v2494_v34 = vsel %vm1519_vm7, %v2489_v28, 0 }
 0x9b8   : > { %v5070_v51 = vpop.eup %5069 }
 0x9b9   : > { %v6689_v49 = vmul.f32 %v5070_v51, %v6529_v21 }
 0x9bb   : > { %v2151_v40 = vpack.c.bf16 %v6689_v49, %v6689_v49  ;;  %v2397_v37 = vpop.permute.xlu0 %2396 }
 0x9bc   : > { %4656 = vmatmul.msk.bf16.vlgmr.msra.gmra.mxu1 %vm1519_vm7, %v2397_v37 }
 0x9bd   : > { %2503 = vmatpush.bf16.xpose.msrb.mxu0 %v2494_v34  ;;  %4650 = vmatmul.msk.bf16.vlgmr.msra.gmra.mxu2 %vm1519_vm7, %v2151_v40 }
 0x9be   : > { %v2513_v14 = vpop.permute.xlu2 %2512 }
 0x9c3   : > { %v2484_v56 = vpop.permute.xlu0 %2483 }
 0x9c4   : > { %4657 = vmatmul.msk.bf16.vlgmr.msrb.gmra.mxu3 %vm1519_vm7, %v2426_v9 }
 0x9c9   : > { %v2460_v63 = vpop.permute.xlu1 %2459 }
 0x9ca   : > { %v2465_v43 = vsel %vm1519_vm7, %v2460_v63, 0 }
 0x9cb   : > { %2474 = vmatpush.bf16.xpose.msra.mxu2 %v2465_v43 }
 0x9cd   : > { %4654 = vmatmul.msk.bf16.vlgmr.msrb.gmra.mxu2 %vm1519_vm7, %v2339_v18  ;;  %v6729_v18 = vpack.c.b16 %v2779_v16, %v2779_v16 }
 0x9cf   : > { %2781 = vrot.lane.b32.xlu0 %v6729_v18, %s5784_s25  ;;  %s7484_s25 = sld [smem:[#allocation75_spill]] (!%p4751_p1) }
 0x9d1   : > { %v2455_v21 = vpop.permute.xlu1 %2454 }
 0x9d7   : > { %2928 = vrot.lane.b32.xlu0 %v6524_v31, %s5788_s10 }
 0x9d9   : > { %v2368_v52 = vpop.permute.xlu1 %2367 }
 0x9da   : > { %4655 = vmatmul.msk.bf16.vlgmr.msra.gmra.mxu0 %vm1519_vm7, %v2368_v52 }
 0x9dd   : > { %4658 = vmatmul.msk.bf16.vlgmr.msra.gmra.mxu2 %vm1519_vm7, %v2455_v21 }
 0x9e1   : > { %v2518_v59 = vpop.permute.xlu1 %2517 }
 0x9e2   : > { %v2523_v62 = vsel %vm1519_vm7, %v2518_v59, 0 }
 0x9e3   : > { %2532 = vmatpush.bf16.xpose.msrb.mxu1 %v2523_v62 }
 0x9e9   : > { %v2758_v21 = vpop.permute.xlu1 %2757 }
 0x9ea   : > { %4659 = vmatmul.msk.bf16.vlgmr.msrb.gmra.mxu0 %vm1519_vm7, %v2484_v56  ;;  %4660 = vmatmul.msk.bf16.vlgmr.msrb.gmra.mxu1 %vm1519_vm7, %v2513_v14  ;;  %v2763_v55 = vsel %vm1556_vm8, %v2758_v21, 0 }
 0x9f1   : > { %v6739_v59 = vpop.permute.xlu1 %2836 }
 0x9f6   : > { %v2662_v56 = vpop.permute.xlu2 %2661 }
 0x9f9   : > { %v6751_v16 = vpop.permute.xlu1 %2859 }
 0x9fd   : > { %v2169_v13 = vpop.f32.mrf.mxu3 }
 0x9ff   : > { %v2226_v6 = vpop.f32.mrf.mxu1 }
 0xa00   : > { %v3760_v26 = vrot.slane %v2226_v6, 5 }
 0xa05   : > { %v2171_v9 = vpop.f32.mrf.mxu3 }
 0xa07   : > { %v2228_v19 = vpop.f32.mrf.mxu1 }
 0xa0f   : > { %v2207_v22 = vpop.f32.mrf.mxu0 }
 0xa10   : > { %v3757_v27 = vrot.slane %v2207_v22, 6  ;;  %v2638_v22 = vpop.permute.xlu0 %2637 }
 0xa17   : > { %v2209_v53 = vpop.f32.mrf.mxu0 }
 0xa19   : > { %v2302_v44 = vpop.f32.mrf.mxu1 }
 0xa1d   : > { %v2188_v23 = vpop.f32.mrf.mxu2 }
 0xa1e   : > { %v3754_v20 = vrot.slane %v2188_v23, 7 }
 0xa1f   : > { %v2283_v28 = vpop.f32.mrf.mxu0 }
 0xa20   : > { %v3756_v34 = vsel %vm3755_vm15, %v3754_v20, %v2169_v13  ;;  %v2667_v13 = vsel %vm1556_vm8, %v2662_v56, 0  ;;  %v2643_v20 = vsel %vm1556_vm8, %v2638_v22, 0 }
 0xa21   : > { %v3759_v51 = vsel %vm3758_vm0, %v3757_v27, %v3756_v34  ;;  %v2304_v40 = vpop.f32.mrf.mxu1  ;;  %2676 = vmatpush.bf16.msrb.mxu2 %v2667_v13  ;;  %v2734_v27 = vpop.permute.xlu2 %2733  ;;  %2652 = vmatpush.bf16.msra.mxu3 %v2643_v20 }
 0xa22   : > { %v3762_v37 = vsel %vm3761_vm1, %v3760_v26, %v3759_v51  ;;  %v3769_v26 = vrot.slane %v2283_v28, 2  ;;  %v2739_v34 = vsel %vm1556_vm8, %v2734_v27, 0  ;;  %v3772_v51 = vrot.slane %v2302_v44, 1 }
 0xa25   : > { %v2190_v63 = vpop.f32.mrf.mxu2  ;;  %2772 = vmatpush.bf16.msra.mxu2 %v2763_v55  ;;  %2748 = vmatpush.bf16.msrb.mxu3 %v2739_v34 }
 0xa27   : > { %v2245_v43 = vpop.f32.mrf.mxu3  ;;  %v2285_v36 = vpop.f32.mrf.mxu0 }
 0xa28   : > { %v3763_v50 = vrot.slane %v2245_v43, 4  ;;  %v6760_v43 = vpop.permute.xlu1 %2834 }
 0xa2a   : > { %v3765_v52 = vsel %vm3764_vm3, %v3763_v50, %v3762_v37  ;;  %v2686_v50 = vpop.permute.xlu2 %2685 }
 0xa2b   : > { %v2691_v44 = vsel %vm1556_vm8, %v2686_v50, 0 }
 0xa2c   : > { %2700 = vmatpush.bf16.msra.mxu0 %v2691_v44 }
 0xa2f   : > { %v2247_v1 = vpop.f32.mrf.mxu3 }
 0xa30   : > { %v2806_v1 = vpop.permute.xlu1 %2805 }
 0xa32   : > { %v2710_v56 = vpop.permute.xlu2 %2709 }
 0xa33   : > { %v2715_v13 = vsel %vm1556_vm8, %v2710_v56, 0 }
 0xa34   : > { %2724 = vmatpush.bf16.msra.mxu1 %v2715_v13 }
 0xa37   : > { %v6741_v62 = vpop.f32.mrf.mxu3 }
 0xa38   : > { %v2538_v14 = vsel %vm2057_vm14, %v6741_v62, -inf  ;;  %v6781_v44 = vpop.permute.xlu1 %2857 }
 0xa39   : > { %2539 = vmax.xlane.f32.xlu1 %v2538_v14  ;;  %v6746_v41 = vpop.f32.mrf.mxu1  ;;  %v2811_v14 = vsel %vm1556_vm8, %v2806_v1, 0 }
 0xa3a   : > { %v2547_v6 = vsel %vm2057_vm14, %v6746_v41, -inf  ;;  %2820 = vmatpush.bf16.msrb.mxu1 %v2811_v14 }
 0xa3b   : > { %2548 = vmax.xlane.f32.xlu2 %v2547_v6 }
 0xa3f   : > { %v2333_v9 = vpop.f32.mrf.mxu3 }
 0xa40   : > { %v2264_v19 = vpop.f32.mrf.mxu2 }
 0xa41   : > { %v3766_v53 = vrot.slane %v2264_v19, 3  ;;  %v2420_v23 = vpop.f32.mrf.mxu1 }
 0xa43   : > { %v3768_v40 = vsel %vm3767_vm4, %v3766_v53, %v3765_v52 }
 0xa44   : > { %v3771_v37 = vsel %vm3770_vm5, %v3769_v26, %v3768_v40 }
 0xa45   : > { %v6758_v63 = vsel %vm3773_vm6, %v3772_v51, %v3771_v37 }
 0xa47   : > { %v6762_v36 = vpop.f32.mrf.mxu3 }
 0xa48   : > { %v2266_v21 = vpop.f32.mrf.mxu2  ;;  %v2550_v28 = vsel %vm2057_vm14, %v6762_v36, -inf }
 0xa49   : > { %2551 = vmax.xlane.f32.xlu2 %v2550_v28  ;;  %v2782_v28 = vpop.permute.xlu0 %2781 }
 0xa4a   : > { %v2787_v50 = vsel %vm1556_vm8, %v2782_v28, 0 }
 0xa4b   : > { %2796 = vmatpush.bf16.msrb.mxu0 %v2787_v50 }
 0xa4f   : > { %v2449_v52 = vpop.f32.mrf.mxu3 }
 0xa50   : > { %v2360_v55 = vpop.f32.mrf.mxu2 }
 0xa51   : > { %v2541_v23 = vsel %vm2057_vm14, %v2360_v55, -inf }
 0xa57   : > { %v2389_v6 = vpop.f32.mrf.mxu0 }
 0xa58   : > { %v2362_v9 = vpop.f32.mrf.mxu2  ;;  %v2544_v19 = vsel %vm2057_vm14, %v2389_v6, -inf }
 0xa59   : > { %2545 = vmax.xlane.f32.xlu0 %v2544_v19 }
 0xa5f   : > { %v2391_v22 = vpop.f32.mrf.mxu0 }
 0xa60   : > { %v6770_v53 = vpop.f32.mrf.mxu2 }
 0xa61   : > { %2542 = vmax.xlane.f32.xlu0 %v2541_v23  ;;  %v2553_v21 = vsel %vm2057_vm14, %v6770_v53, -inf }
 0xa67   : > { %v2505_v20 = vpop.f32.mrf.mxu0  ;;  %v6773_v27 = vpop.f32.mrf.mxu1 }
 0xa68   : > { %v2478_v26 = vpop.f32.mrf.mxu2  ;;  %v2559_v34 = vsel %vm2057_vm14, %v6773_v27, -inf  ;;  %v2556_v51 = vsel %vm2057_vm14, %v2505_v20, -inf }
 0xa69   : > { %2560 = vmax.xlane.f32.xlu0 %v2559_v34  ;;  %2557 = vmax.xlane.f32.xlu1 %v2556_v51 }
 0xa6f   : > { %v2507_v40 = vpop.f32.mrf.mxu0  ;;  %v2536_v37 = vpop.f32.mrf.mxu1 }
 0xa71   : > { %2554 = vmax.xlane.f32.xlu1 %v2553_v21 }
 0xaac   : > { %v2540_v52 = vpop.xlane.xlu1 %2539 }
 0xaad   : > { %v2562_v1 = vsub.f32 %v6741_v62, %v2540_v52  ;;  %v6793_v62 = vpop.permute.xlu0 %2928 }
 0xaae   : > { %v2549_v14 = vpop.xlane.xlu2 %2548 }
 0xaaf   : > { %v2570_v56 = vmul.f32 1.442695, %v2562_v1  ;;  %v2565_v13 = vsub.f32 %v6746_v41, %v2549_v14 }
 0xab1   : > { %5071 = vpow2.f32 %v2570_v56  ;;  %v2576_v9 = vmul.f32 1.442695, %v2565_v13 }
 0xab3   : > { %5073 = vpow2.f32 %v2576_v9 }
 0xab7   : > { %v6785_v19 = vpop.eup %5071 }
 0xab8   : > { %v2586_v22 = vsel %vm2057_vm14, %v6785_v19, 0.0 }
 0xab9   : > { %v6789_v23 = vpop.eup %5073  ;;  %2587 = vadd.xlane.f32.xlu2 %v2586_v22 }
 0xaba   : > { %v2595_v26 = vsel %vm2057_vm14, %v6789_v23, 0.0 }
 0xabb   : > { %2596 = vadd.xlane.f32.xlu1 %v2595_v26 }
 0xabc   : > { %v2552_v14 = vpop.xlane.xlu2 %2551 }
 0xabd   : > { %v2566_v56 = vsub.f32 %v6762_v36, %v2552_v14 }
 0xabf   : > { %v2578_v9 = vmul.f32 1.442695, %v2566_v56 }
 0xacc   : > { %v2546_v34 = vpop.xlane.xlu0 %2545 }
 0xacd   : > { %v2564_v51 = vsub.f32 %v2389_v6, %v2546_v34 }
 0xacf   : > { %v2574_v41 = vmul.f32 1.442695, %v2564_v51 }
 0xad1   : > { %5075 = vpow2.f32 %v2574_v41  ;;  %2951 = vrot.lane.b32.xlu2 %v6565_v7, %s5788_s10 }
 0xad4   : > { %2882 = vrot.lane.b32.xlu1 %v6535_v32, %s5788_s10  ;;  %v2543_v50 = vpop.xlane.xlu0 %2542 }
 0xad5   : > { %v2563_v52 = vsub.f32 %v2360_v55, %v2543_v50 }
 0xad7   : > { %v6799_v40 = vpop.eup %5075  ;;  %v2572_v6 = vmul.f32 1.442695, %v2563_v52 }
 0xad8   : > { %v2592_v37 = vsel %vm2057_vm14, %v6799_v40, 0.0 }
 0xad9   : > { %2593 = vadd.xlane.f32.xlu0 %v2592_v37 }
 0xadc   : > { %v2558_v21 = vpop.xlane.xlu1 %2557  ;;  %v2561_v41 = vpop.xlane.xlu0 %2560 }
 0xadd   : > { %v2568_v28 = vsub.f32 %v2505_v20, %v2558_v21  ;;  %v2569_v37 = vsub.f32 %v6773_v27, %v2561_v41 }
 0xadf   : > { %v2582_v1 = vmul.f32 1.442695, %v2568_v28  ;;  %v2584_v28 = vmul.f32 1.442695, %v2569_v37 }
 0xae1   : > { %5077 = vpow2.f32 %v2582_v1 }
 0xae2   : > { %5079 = vpow2.f32 %v2572_v6 }
 0xae3   : > { %5081 = vpow2.f32 %v2578_v9 }
 0xae4   : > { %v2555_v22 = vpop.xlane.xlu1 %2554 }
 0xae5   : > { %v2567_v55 = vsub.f32 %v6770_v53, %v2555_v22 }
 0xae7   : > { %v6806_v13 = vpop.eup %5077  ;;  %v2580_v51 = vmul.f32 1.442695, %v2567_v55  ;;  %v2842_v55 = vsel %vm1519_vm7, %v6739_v59, 0 }
 0xae8   : > { %v2604_v26 = vsel %vm2057_vm14, %v6806_v13, 0.0  ;;  %v6810_v20 = vpop.eup %5079 }
 0xae9   : > { %v2589_v34 = vsel %vm2057_vm14, %v6810_v20, 0.0  ;;  %v6815_v36 = vpop.eup %5081  ;;  %5083 = vpow2.f32 %v2580_v51 }
 0xaea   : > { %v2598_v21 = vsel %vm2057_vm14, %v6815_v36, 0.0  ;;  %5085 = vpow2.f32 %v2584_v28 }
 0xaed   : > { %2905 = vrot.lane.b32.xlu0 %v6548_v39, %s5788_s10 }
 0xaef   : > { %v6820_v50 = vpop.eup %5083 }
 0xaf0   : > { %v2601_v53 = vsel %vm2057_vm14, %v6820_v50, 0.0  ;;  %v6826_v52 = vpop.eup %5085 }
 0xaf1   : > { %v2607_v27 = vsel %vm2057_vm14, %v6826_v52, 0.0 }
 0xafa   : > { %2605 = vadd.xlane.f32.xlu2 %v2604_v26 }
 0xafe   : > { %2590 = vadd.xlane.f32.xlu1 %v2589_v34 }
 0xb06   : > { %2599 = vadd.xlane.f32.xlu1 %v2598_v21 }
 0xb0e   : > { %2602 = vadd.xlane.f32.xlu1 %v2601_v53 }
 0xb12   : > { %2974 = vrot.lane.b32.xlu2 %v6558_v57, %s5788_s10 }
 0xb17   : > { %2608 = vadd.xlane.f32.xlu0 %v2607_v27 }
 0xb1a   : > { %2995 = vrot.lane.b32.xlu2 %v6578_v48, %s5788_s10 }
 0xb22   : > { %3114 = vrot.lane.b32.xlu2 %v6698_v42, %s5788_s10 }
 0xb27   : > { %2926 = vrot.lane.b32.xlu1 %v6540_v33, %s5788_s10 }
 0xb2a   : > { %3156 = vrot.lane.b32.xlu2 %v6717_v8, %s5788_s10 }
 0xb2b   : > { %2949 = vrot.lane.b32.xlu0 %v6585_v2, %s5788_s10 }
 0xb2c   : > { %v2588_v1 = vpop.xlane.xlu2 %2587 }
 0xb2d   : > { %5087 = vrcp.f32 %v2588_v1 }
 0xb2e   : > { %v2597_v6 = vpop.xlane.xlu1 %2596 }
 0xb2f   : > { %5089 = vrcp.f32 %v2597_v6  ;;  %2880 = vrot.lane.b32.xlu1 %v6595_v58, %s5788_s10 }
 0xb32   : > { %3198 = vrot.lane.b32.xlu2 %v6711_v60, %s5788_s10 }
 0xb33   : > { %v5088_v14 = vpop.eup %5087  ;;  %2903 = vrot.lane.b32.xlu0 %v6546_v38, %s5788_s10 }
 0xb34   : > { %v6847_v56 = vmul.f32 %v5088_v14, %v6785_v19  ;;  %v2952_v28 = vpop.permute.xlu2 %2951 }
 0xb35   : > { %v5090_v9 = vpop.eup %5089 }
 0xb36   : > { %v2626_v22 = vpack.c.bf16 %v6847_v56, %v6847_v56  ;;  %v6852_v26 = vmul.f32 %v5090_v9, %v6789_v23 }
 0xb37   : > { %2997 = vrot.lane.b32.xlu1 %v6600_v61, %s5788_s10 }
 0xb38   : > { %v2629_v34 = vpack.c.bf16 %v6852_v26, %v6852_v26  ;;  %4661 = vmatmul.msk.bf16.vlgmr.msra.gmra.mxu3 %vm1519_vm7, %v2626_v22 }
 0xb39   : > { %2851 = vmatpush.bf16.xpose.msra.mxu3 %v2842_v55 }
 0xb3a   : > { %4664 = vmatmul.msk.bf16.vlgmr.msra.gmra.mxu1 %vm1519_vm7, %v2629_v34  ;;  %3219 = vrot.lane.b32.xlu2 %v6610_v11, %s5788_s10 }
 0xb3b   : > { %2972 = vrot.lane.b32.xlu0 %v6556_v45, %s5788_s10 }
 0xb3f   : > { %3177 = vrot.lane.b32.xlu1 %v6724_v17, %s5788_s10 }
 0xb43   : > { %3135 = vrot.lane.b32.xlu0 %v6704_v54, %s5788_s10 }
 0xb46   : > { %v2883_v51 = vpop.permute.xlu1 %2882 }
 0xb47   : > { %v2888_v37 = vsel %vm1519_vm7, %v2883_v51, 0 }
 0xb4b   : > { %3292 = vrot.lane.b32.xlu0 %v6476_v30, %s5783_s21 }
 0xb4c   : > { %v2594_v59 = vpop.xlane.xlu0 %2593 }
 0xb4d   : > { %5091 = vrcp.f32 %v2594_v59 }
 0xb53   : > { %v5092_v19 = vpop.eup %5091  ;;  %3315 = vrot.lane.b32.xlu0 %v6516_v25, %s5783_s21 }
 0xb54   : > { %v6875_v23 = vmul.f32 %v5092_v19, %v6799_v40 }
 0xb56   : > { %v2628_v41 = vpack.c.bf16 %v6875_v23, %v6875_v23 }
 0xb58   : > { %4663 = vmatmul.msk.bf16.vlgmr.msra.gmra.mxu0 %vm1519_vm7, %v2628_v41  ;;  %v2934_v41 = vsel %vm1519_vm7, %v6793_v62, 0 }
 0xb59   : > { %2897 = vmatpush.bf16.xpose.msra.mxu0 %v2888_v37 }
 0xb5f   : > { %v2906_v21 = vpop.permute.xlu0 %2905 }
 0xb60   : > { %v2911_v30 = vsel %vm1519_vm7, %v2906_v21, 0 }
 0xb61   : > { %2920 = vmatpush.bf16.xpose.msra.mxu1 %v2911_v30  ;;  %v2957_v30 = vsel %vm1519_vm7, %v2952_v28, 0 }
 0xb6d   : > { %v2606_v53 = vpop.xlane.xlu2 %2605 }
 0xb6e   : > { %5093 = vrcp.f32 %v2606_v53 }
 0xb71   : > { %v2591_v25 = vpop.xlane.xlu1 %2590 }
 0xb72   : > { %5095 = vrcp.f32 %v2591_v25 }
 0xb74   : > { %v5094_v40 = vpop.eup %5093 }
 0xb75   : > { %v6883_v27 = vmul.f32 %v5094_v40, %v6806_v13  ;;  %v2975_v1 = vpop.permute.xlu2 %2974  ;;  %v2865_v13 = vsel %vm1519_vm7, %v6751_v16, 0 }
 0xb76   : > { %v2980_v14 = vsel %vm1519_vm7, %v2975_v1, 0 }
 0xb77   : > { %v2632_v6 = vpack.c.bf16 %v6883_v27, %v6883_v27 }
 0xb78   : > { %v5096_v9 = vpop.eup %5095 }
 0xb79   : > { %v6889_v22 = vmul.f32 %v5096_v9, %v6810_v20  ;;  %4667 = vmatmul.msk.bf16.vlgmr.msrb.gmra.mxu0 %vm1519_vm7, %v2632_v6  ;;  %v2600_v55 = vpop.xlane.xlu1 %2599 }
 0xb7a   : > { %5097 = vrcp.f32 %v2600_v55  ;;  %2989 = vmatpush.bf16.xpose.msrb.mxu0 %v2980_v14 }
 0xb7b   : > { %v2627_v34 = vpack.c.bf16 %v6889_v22, %v6889_v22 }
 0xb7d   : > { %4662 = vmatmul.msk.bf16.vlgmr.msrb.gmra.mxu2 %vm1519_vm7, %v2627_v34  ;;  %v2996_v14 = vpop.permute.xlu2 %2995 }
 0xb7e   : > { %2874 = vmatpush.bf16.xpose.msrb.mxu2 %v2865_v13 }
 0xb80   : > { %v5098_v59 = vpop.eup %5097 }
 0xb81   : > { %v6898_v19 = vmul.f32 %v5098_v59, %v6815_v36  ;;  %v2603_v20 = vpop.xlane.xlu1 %2602 }
 0xb82   : > { %5099 = vrcp.f32 %v2603_v20 }
 0xb83   : > { %v2630_v51 = vpack.c.bf16 %v6898_v19, %v6898_v19 }
 0xb85   : > { %4665 = vmatmul.msk.bf16.vlgmr.msrb.gmra.mxu3 %vm1519_vm7, %v2630_v51 }
 0xb86   : > { %2943 = vmatpush.bf16.xpose.msrb.mxu3 %v2934_v41 }
 0xb88   : > { %v5100_v37 = vpop.eup %5099 }
 0xb89   : > { %v6906_v16 = vmul.f32 %v5100_v37, %v6820_v50 }
 0xb8a   : > { %v2609_v21 = vpop.xlane.xlu0 %2608 }
 0xb8b   : > { %v2631_v36 = vpack.c.bf16 %v6906_v16, %v6906_v16  ;;  %5101 = vrcp.f32 %v2609_v21 }
 0xb8d   : > { %4666 = vmatmul.msk.bf16.vlgmr.msra.gmra.mxu2 %vm1519_vm7, %v2631_v36 }
 0xb8e   : > { %2966 = vmatpush.bf16.xpose.msra.mxu2 %v2957_v30 }
 0xb91   : > { %v5102_v53 = vpop.eup %5101 }
 0xb92   : > { %v6913_v62 = vmul.f32 %v5102_v53, %v6826_v52 }
 0xb94   : > { %v2633_v25 = vpack.c.bf16 %v6913_v62, %v6913_v62 }
 0xb95   : > { %4669 = vmatmul.msk.bf16.vlgmr.msra.gmra.mxu3 %vm1519_vm7, %v6760_v43 }
 0xb96   : > { %4668 = vmatmul.msk.bf16.vlgmr.msrb.gmra.mxu1 %vm1519_vm7, %v2633_v25 }
 0xb99   : > { %v2927_v50 = vpop.permute.xlu1 %2926 }
 0xb9d   : > { %v2950_v40 = vpop.permute.xlu0 %2949  ;;  %4670 = vmatmul.msk.bf16.vlgmr.msrb.gmra.mxu2 %vm1519_vm7, %v6781_v44 }
 0xba1   : > { %v2881_v28 = vpop.permute.xlu1 %2880 }
 0xba2   : > { %4671 = vmatmul.msk.bf16.vlgmr.msra.gmra.mxu0 %vm1519_vm7, %v2881_v28 }
 0xba5   : > { %v2904_v1 = vpop.permute.xlu0 %2903  ;;  %4673 = vmatmul.msk.bf16.vlgmr.msrb.gmra.mxu3 %vm1519_vm7, %v2927_v50 }
 0xba6   : > { %4672 = vmatmul.msk.bf16.vlgmr.msra.gmra.mxu1 %vm1519_vm7, %v2904_v1 }
 0xba9   : > { %v2998_v52 = vpop.permute.xlu1 %2997 }
 0xbaa   : > { %v3003_v6 = vsel %vm1519_vm7, %v2998_v52, 0 }
 0xbab   : > { %3012 = vmatpush.bf16.xpose.msrb.mxu1 %v3003_v6 }
 0xbad   : > { %4674 = vmatmul.msk.bf16.vlgmr.msra.gmra.mxu2 %vm1519_vm7, %v2950_v40  ;;  %v2973_v43 = vpop.permute.xlu0 %2972 }
 0xbb2   : > { %4675 = vmatmul.msk.bf16.vlgmr.msrb.gmra.mxu0 %vm1519_vm7, %v2973_v43 }
 0xbb6   : > { %4676 = vmatmul.msk.bf16.vlgmr.msrb.gmra.mxu1 %vm1519_vm7, %v2996_v14 }
 0xbb7   : > { %v2726_v44 = vpop.f32.mrf.mxu1 }
 0xbb8   : > { %v3788_v36 = vrot.slane %v2726_v44, 5 }
 0xbbb   : > { %v2654_v9 = vpop.f32.mrf.mxu3 }
 0xbbf   : > { %v2728_v55 = vpop.f32.mrf.mxu1 }
 0xbc3   : > { %v2656_v34 = vpop.f32.mrf.mxu3 }
 0xbd5   : > { %v2702_v13 = vpop.f32.mrf.mxu0 }
 0xbd6   : > { %v3786_v21 = vrot.slane %v2702_v13, 6 }
 0xbdd   : > { %v2704_v59 = vpop.f32.mrf.mxu0 }
 0xbf6   : > { %v2798_v20 = vpop.f32.mrf.mxu0 }
 0xbf7   : > { %v3794_v14 = vrot.slane %v2798_v20, 2 }
 0xbfe   : > { %v2800_v51 = vpop.f32.mrf.mxu0 }
 0xc00   : > { %v2678_v41 = vpop.f32.mrf.mxu2 }
 0xc01   : > { %v3784_v37 = vrot.slane %v2678_v41, 7 }
 0xc03   : > { %v3785_v30 = vsel %vm3755_vm15, %v3784_v37, %v2654_v9  ;;  %v3115_v37 = vpop.permute.xlu2 %3114 }
 0xc04   : > { %v3787_v53 = vsel %vm3758_vm0, %v3786_v21, %v3785_v30  ;;  %v3136_v21 = vpop.permute.xlu0 %3135 }
 0xc05   : > { %v3789_v25 = vsel %vm3761_vm1, %v3788_v36, %v3787_v53  ;;  %v3120_v36 = vsel %vm1556_vm8, %v3115_v37, 0  ;;  %v3141_v30 = vsel %vm1556_vm8, %v3136_v21, 0 }
 0xc06   : > { %3129 = vmatpush.bf16.msra.mxu3 %v3120_v36  ;;  %3150 = vmatpush.bf16.msrb.mxu2 %v3141_v30 }
 0xc08   : > { %v2680_v50 = vpop.f32.mrf.mxu2  ;;  %v2750_v40 = vpop.f32.mrf.mxu3 }
 0xc09   : > { %v3790_v28 = vrot.slane %v2750_v40, 4 }
 0xc0b   : > { %v3791_v1 = vsel %vm3764_vm3, %v3790_v28, %v3789_v25 }
 0xc10   : > { %v2752_v52 = vpop.f32.mrf.mxu3  ;;  %v2774_v6 = vpop.f32.mrf.mxu2 }
 0xc11   : > { %v3792_v43 = vrot.slane %v2774_v6, 3  ;;  %v3157_v52 = vpop.permute.xlu2 %3156 }
 0xc12   : > { %v3162_v6 = vsel %vm1556_vm8, %v3157_v52, 0 }
 0xc13   : > { %v3793_v55 = vsel %vm3767_vm4, %v3792_v43, %v3791_v1  ;;  %v2822_v34 = vpop.f32.mrf.mxu1  ;;  %3171 = vmatpush.bf16.msra.mxu0 %v3162_v6 }
 0xc14   : > { %v3796_v13 = vrot.slane %v2822_v34, 1  ;;  %v3795_v44 = vsel %vm3770_vm5, %v3794_v14, %v3793_v55 }
 0xc16   : > { %v6936_v9 = vsel %vm3773_vm6, %v3796_v13, %v3795_v44 }
 0xc18   : > { %v2776_v59 = vpop.f32.mrf.mxu2  ;;  %v6938_v51 = vpop.f32.mrf.mxu3 }
 0xc19   : > { %v3018_v13 = vsel %vm2057_vm14, %v6938_v51, -inf  ;;  %v3199_v44 = vpop.permute.xlu2 %3198 }
 0xc1a   : > { %v3204_v59 = vsel %vm1556_vm8, %v3199_v44, 0  ;;  %v6968_v44 = vpop.permute.xlu0 %3292 }
 0xc1b   : > { %v2824_v41 = vpop.f32.mrf.mxu1  ;;  %3213 = vmatpush.bf16.msrb.mxu3 %v3204_v59 }
 0xc1f   : > { %v2899_v20 = vpop.f32.mrf.mxu0 }
 0xc20   : > { %v2855_v53 = vpop.f32.mrf.mxu3  ;;  %v6942_v25 = vpop.f32.mrf.mxu2  ;;  %v3024_v50 = vsel %vm2057_vm14, %v2899_v20, -inf }
 0xc21   : > { %3025 = vmax.xlane.f32.xlu2 %v3024_v50  ;;  %v3021_v40 = vsel %vm2057_vm14, %v6942_v25, -inf  ;;  %v3220_v50 = vpop.permute.xlu2 %3219 }
 0xc22   : > { %3022 = vmax.xlane.f32.xlu0 %v3021_v40  ;;  %v3225_v40 = vsel %vm1556_vm8, %v3220_v50, 0  ;;  %v6970_v50 = vpop.permute.xlu0 %3315 }
 0xc23   : > { %v2922_v28 = vpop.f32.mrf.mxu1  ;;  %3234 = vmatpush.bf16.msra.mxu2 %v3225_v40 }
 0xc24   : > { %v3027_v1 = vsel %vm2057_vm14, %v2922_v28, -inf }
 0xc25   : > { %3028 = vmax.xlane.f32.xlu1 %v3027_v1 }
 0xc27   : > { %v2901_v43 = vpop.f32.mrf.mxu0 }
 0xc28   : > { %v2878_v14 = vpop.f32.mrf.mxu2  ;;  %v6949_v55 = vpop.f32.mrf.mxu3 }
 0xc29   : > { %v3030_v43 = vsel %vm2057_vm14, %v6949_v55, -inf  ;;  %v3178_v14 = vpop.permute.xlu1 %3177 }
 0xc2b   : > { %v2924_v34 = vpop.f32.mrf.mxu1 }
 0xc2c   : > { %v3183_v34 = vsel %vm1556_vm8, %v3178_v14, 0 }
 0xc2d   : > { %3019 = vmax.xlane.f32.xlu1 %v3018_v13  ;;  %3192 = vmatpush.bf16.msra.mxu1 %v3183_v34 }
 0xc2f   : > { %v2991_v41 = vpop.f32.mrf.mxu0 }
 0xc30   : > { %v2947_v37 = vpop.f32.mrf.mxu3  ;;  %v6954_v21 = vpop.f32.mrf.mxu2  ;;  %v3036_v53 = vsel %vm2057_vm14, %v2991_v41, -inf }
 0xc31   : > { %v3033_v13 = vsel %vm2057_vm14, %v6954_v21, -inf }
 0xc33   : > { %v3014_v36 = vpop.f32.mrf.mxu1 }
 0xc34   : > { %v3039_v30 = vsel %vm2057_vm14, %v3014_v36, -inf }
 0xc35   : > { %3040 = vmax.xlane.f32.xlu2 %v3039_v30  ;;  %3037 = vmax.xlane.f32.xlu1 %v3036_v53 }
 0xc36   : > { %3261 = vrot.lane.b32.xlu0 %v6652_v47, %s5788_s10 }
 0xc37   : > { %v2993_v1 = vpop.f32.mrf.mxu0 }
 0xc38   : > { %v2970_v52 = vpop.f32.mrf.mxu2 }
 0xc3b   : > { %v3016_v6 = vpop.f32.mrf.mxu1 }
 0xc3d   : > { %3031 = vmax.xlane.f32.xlu2 %v3030_v43 }
 0xc55   : > { %3240 = vrot.lane.b32.xlu2 %v6729_v18, %s5788_s10 }
 0xc60   : > { %3034 = vmax.xlane.f32.xlu0 %v3033_v13 }
 0xc94   : > { %v3026_v59 = vpop.xlane.xlu2 %3025 }
 0xc95   : > { %v3044_v37 = vsub.f32 %v2899_v20, %v3026_v59  ;;  %v3023_v14 = vpop.xlane.xlu0 %3022 }
 0xc97   : > { %v3054_v30 = vmul.f32 1.442695, %v3044_v37 }
 0xc98   : > { %v3029_v53 = vpop.xlane.xlu1 %3028 }
 0xc99   : > { %5103 = vpow2.f32 %v3054_v30  ;;  %v3045_v40 = vsub.f32 %v2922_v28, %v3029_v53 }
 0xc9b   : > { %v3056_v1 = vmul.f32 1.442695, %v3045_v40 }
 0xc9d   : > { %5105 = vpow2.f32 %v3056_v1 }
 0xc9f   : > { %v6972_v52 = vpop.eup %5103 }
 0xca0   : > { %v3020_v6 = vpop.xlane.xlu1 %3019  ;;  %v3072_v43 = vsel %vm2057_vm14, %v6972_v52, 0.0 }
 0xca1   : > { %v3042_v34 = vsub.f32 %v6938_v51, %v3020_v6  ;;  %3073 = vadd.xlane.f32.xlu1 %v3072_v43  ;;  %v3043_v51 = vsub.f32 %v6942_v25, %v3023_v14 }
 0xca3   : > { %v3050_v13 = vmul.f32 1.442695, %v3042_v34  ;;  %v6977_v20 = vpop.eup %5105 }
 0xca4   : > { %v3075_v28 = vsel %vm2057_vm14, %v6977_v20, 0.0 }
 0xca5   : > { %5107 = vpow2.f32 %v3050_v13  ;;  %v3052_v13 = vmul.f32 1.442695, %v3043_v51 }
 0xca8   : > { %v3041_v59 = vpop.xlane.xlu2 %3040  ;;  %v3038_v37 = vpop.xlane.xlu1 %3037 }
 0xca9   : > { %v3049_v30 = vsub.f32 %v3014_v36, %v3041_v59  ;;  %v3048_v53 = vsub.f32 %v2991_v41, %v3038_v37  ;;  %3076 = vadd.xlane.f32.xlu1 %v3075_v28  ;;  %v3262_v40 = vpop.permute.xlu0 %3261 }
 0xcaa   : > { %v3267_v1 = vsel %vm1556_vm8, %v3262_v40, 0 }
 0xcab   : > { %v6982_v15 = vpop.eup %5107  ;;  %v3064_v6 = vmul.f32 1.442695, %v3049_v30  ;;  %v3062_v43 = vmul.f32 1.442695, %v3048_v53  ;;  %3276 = vmatpush.bf16.msrb.mxu1 %v3267_v1  ;;  %v2828_v1 = vadd.f32 %v6875_v23, %v6645_v35 }
 0xcac   : > { %v3066_v34 = vsel %vm2057_vm14, %v6982_v15, 0.0 }
 0xcad   : > { %5109 = vpow2.f32 %v3064_v6  ;;  %3067 = vadd.xlane.f32.xlu0 %v3066_v34 }
 0xcae   : > { %5111 = vpow2.f32 %v3062_v43 }
 0xcaf   : > { %5113 = vpow2.f32 %v3052_v13 }
 0xcb0   : > { %v3032_v28 = vpop.xlane.xlu2 %3031 }
 0xcb3   : > { %v6987_v36 = vpop.eup %5109 }
 0xcb4   : > { %v6989_v41 = vpop.eup %5111  ;;  %v3087_v59 = vsel %vm2057_vm14, %v6987_v36, 0.0 }
 0xcb5   : > { %3088 = vadd.xlane.f32.xlu1 %v3087_v59  ;;  %v3084_v25 = vsel %vm2057_vm14, %v6989_v41, 0.0  ;;  %v6995_v14 = vpop.eup %5113 }
 0xcb6   : > { %3085 = vadd.xlane.f32.xlu2 %v3084_v25  ;;  %v3069_v37 = vsel %vm2057_vm14, %v6995_v14, 0.0 }
 0xcbd   : > { %3070 = vadd.xlane.f32.xlu1 %v3069_v37 }
 0xcc1   : > { %3313 = vrot.lane.b32.xlu0 %v6494_v3, %s5783_s21  ;;  %v3046_v3 = vsub.f32 %v6949_v55, %v3032_v28  ;;  %v3241_v55 = vpop.permute.xlu2 %3240 }
 0xcc2   : > { %v3246_v53 = vsel %vm1556_vm8, %v3241_v55, 0 }
 0xcc3   : > { %3255 = vmatpush.bf16.msrb.mxu0 %v3246_v53 }
 0xcc9   : > { %3338 = vrot.lane.b32.xlu0 %v6535_v32, %s5783_s21 }
 0xcce   : > { %3361 = vrot.lane.b32.xlu2 %v6548_v39, %s5783_s21  ;;  %v3058_v39 = vmul.f32 1.442695, %v3046_v3 }
 0xcd0   : > { %5115 = vpow2.f32 %v3058_v39 }
 0xcd1   : > { %3384 = vrot.lane.b32.xlu0 %v6524_v31, %s5783_s21 }
 0xcd3   : > { %v3035_v32 = vpop.xlane.xlu0 %3034 }
 0xcd4   : > { %v3047_v30 = vsub.f32 %v6954_v21, %v3035_v32 }
 0xcd6   : > { %3407 = vrot.lane.b32.xlu2 %v6565_v7, %s5783_s21  ;;  %3290 = vrot.lane.b32.xlu1 %v6522_v29, %s5783_s21  ;;  %v3060_v31 = vmul.f32 1.442695, %v3047_v30  ;;  %v7017_v7 = vpop.eup %5115 }
 0xcd7   : > { %v3078_v29 = vsel %vm2057_vm14, %v7017_v7, 0.0 }
 0xcd8   : > { %5117 = vpow2.f32 %v3060_v31 }
 0xcde   : > { %3382 = vrot.lane.b32.xlu2 %v6540_v33, %s5783_s21  ;;  %v7021_v33 = vpop.eup %5117 }
 0xce6   : > { %3453 = vrot.lane.b32.xlu2 %v6600_v61, %s5783_s21  ;;  %v3081_v61 = vsel %vm2057_vm14, %v7021_v33, 0.0 }
 0xcfb   : > { %3079 = vadd.xlane.f32.xlu0 %v3078_v29 }
 0xd00   : > { %3082 = vadd.xlane.f32.xlu1 %v3081_v61  ;;  %v3321_v61 = vsel %vm1519_vm7, %v6970_v50, 0  ;;  %v2830_v50 = vadd.f32 %v6898_v19, %v6677_v12 }
 0xd0f   : > { %3359 = vrot.lane.b32.xlu0 %v6546_v38, %s5783_s21 }
 0xd14   : > { %v3074_v21 = vpop.xlane.xlu1 %3073 }
 0xd15   : > { %5119 = vrcp.f32 %v3074_v21 }
 0xd17   : > { %3430 = vrot.lane.b32.xlu0 %v6558_v57, %s5783_s21 }
 0xd19   : > { %3336 = vrot.lane.b32.xlu1 %v6595_v58, %s5783_s21  ;;  %v2829_v58 = vadd.f32 %v6852_v26, %v6629_v24 }
 0xd1b   : > { %v5120_v40 = vpop.eup %5119 }
 0xd1c   : > { %v3100_v51 = vmul.f32 %v5120_v40, %v6972_v52  ;;  %v3077_v6 = vpop.xlane.xlu1 %3076 }
 0xd1d   : > { %5121 = vrcp.f32 %v3077_v6 }
 0xd1e   : > { %v3108_v43 = vpack.c.bf16 %v3100_v51, %v3100_v51  ;;  %v7035_v34 = vadd.f32 %v3100_v51, %v2828_v1 }
 0xd1f   : > { %3451 = vrot.lane.b32.xlu0 %v6578_v48, %s5783_s21  ;;  %v2826_v48 = vadd.f32 %v6847_v56, %v6613_v46  ;;  %v2833_v56 = vadd.f32 %v6913_v62, %v6662_v0 }
 0xd20   : > { %v3068_v38 = vpop.xlane.xlu0 %3067  ;;  %4679 = vmatmul.msk.bf16.vlgmr.msra.gmra.mxu0 %vm1519_vm7, %v3108_v43 }
 0xd21   : > { %5123 = vrcp.f32 %v3068_v38  ;;  %3405 = vrot.lane.b32.xlu1 %v6585_v2, %s5783_s21 }
 0xd23   : > { %v5122_v57 = vpop.eup %5121 }
 0xd24   : > { %v3101_v35 = vmul.f32 %v5122_v57, %v6977_v20 }
 0xd26   : > { %v3109_v23 = vpack.c.bf16 %v3101_v35, %v3101_v35  ;;  %v7045_v52 = vadd.f32 %v3101_v35, %v2829_v58 }
 0xd27   : > { %v5124_v13 = vpop.eup %5123  ;;  %3570 = vrot.lane.b32.xlu0 %v6698_v42, %s5783_s21  ;;  %v3298_v42 = vsel %vm1519_vm7, %v6968_v44, 0 }
 0xd28   : > { %v3098_v59 = vmul.f32 %v5124_v13, %v6982_v15  ;;  %4680 = vmatmul.msk.bf16.vlgmr.msra.gmra.mxu1 %vm1519_vm7, %v3109_v23  ;;  %v3089_v2 = vpop.xlane.xlu1 %3088  ;;  %v2831_v23 = vadd.f32 %v6906_v16, %v6689_v49 }
 0xd29   : > { %v3086_v25 = vpop.xlane.xlu2 %3085  ;;  %5125 = vrcp.f32 %v3089_v2  ;;  %3428 = vrot.lane.b32.xlu1 %v6556_v45, %s5783_s21  ;;  %v2832_v45 = vadd.f32 %v6883_v27, %v6669_v4  ;;  %v2827_v4 = vadd.f32 %v6889_v22, %v6655_v10 }
 0xd2a   : > { %v3106_v24 = vpack.c.bf16 %v3098_v59, %v3098_v59  ;;  %v7055_v26 = vadd.f32 %v3098_v59, %v2826_v48  ;;  %5127 = vrcp.f32 %v3086_v25 }
 0xd2c   : > { %4677 = vmatmul.msk.bf16.vlgmr.msra.gmra.mxu3 %vm1519_vm7, %v3106_v24 }
 0xd2d   : > { %3307 = vmatpush.bf16.xpose.msra.mxu3 %v3298_v42 }
 0xd2f   : > { %v5126_v46 = vpop.eup %5125 }
 0xd30   : > { %v5128_v15 = vpop.eup %5127  ;;  %v3105_v20 = vmul.f32 %v5126_v46, %v6987_v36  ;;  %v3071_v37 = vpop.xlane.xlu1 %3070 }
 0xd31   : > { %v3104_v28 = vmul.f32 %v5128_v15, %v6989_v41  ;;  %v3362_v3 = vpop.permute.xlu2 %3361  ;;  %5129 = vrcp.f32 %v3071_v37 }
 0xd32   : > { %v7066_v32 = vadd.f32 %v3105_v20, %v2833_v56  ;;  %v3367_v44 = vsel %vm1519_vm7, %v3362_v3, 0  ;;  %v3113_v0 = vpack.c.bf16 %v3105_v20, %v3105_v20 }
 0xd33   : > { %v3112_v39 = vpack.c.bf16 %v3104_v28, %v3104_v28  ;;  %v7069_v30 = vadd.f32 %v3104_v28, %v2832_v45  ;;  %v3314_v31 = vpop.permute.xlu0 %3313  ;;  %3376 = vmatpush.bf16.xpose.msra.mxu1 %v3367_v44 }
 0xd35   : > { %4683 = vmatmul.msk.bf16.vlgmr.msrb.gmra.mxu0 %vm1519_vm7, %v3112_v39 }
 0xd37   : > { %v5130_v62 = vpop.eup %5129 }
 0xd38   : > { %v3099_v27 = vmul.f32 %v5130_v62, %v6995_v14  ;;  %4684 = vmatmul.msk.bf16.vlgmr.msrb.gmra.mxu1 %vm1519_vm7, %v3113_v0 }
 0xd39   : > { %v3408_v53 = vpop.permute.xlu2 %3407 }
 0xd3a   : > { %v3107_v36 = vpack.c.bf16 %v3099_v27, %v3099_v27  ;;  %v7076_v41 = vadd.f32 %v3099_v27, %v2827_v4  ;;  %v3413_v48 = vsel %vm1519_vm7, %v3408_v53, 0 }
 0xd3b   : > { %v3339_v29 = vpop.permute.xlu0 %3338 }
 0xd3c   : > { %4678 = vmatmul.msk.bf16.vlgmr.msrb.gmra.mxu2 %vm1519_vm7, %v3107_v36  ;;  %v3344_v55 = vsel %vm1519_vm7, %v3339_v29, 0 }
 0xd3d   : > { %3330 = vmatpush.bf16.xpose.msrb.mxu2 %v3321_v61  ;;  %3353 = vmatpush.bf16.xpose.msra.mxu0 %v3344_v55 }
 0xd41   : > { %v3383_v21 = vpop.permute.xlu2 %3382 }
 0xd43   : > { %v3385_v10 = vpop.permute.xlu0 %3384 }
 0xd44   : > { %v3390_v35 = vsel %vm1519_vm7, %v3385_v10, 0 }
 0xd48   : > { %v3291_v14 = vpop.permute.xlu1 %3290 }
 0xd49   : > { %v3454_v22 = vpop.permute.xlu2 %3453 }
 0xd4a   : > { %v3459_v40 = vsel %vm1519_vm7, %v3454_v22, 0 }
 0xd4b   : > { %3468 = vmatpush.bf16.xpose.msrb.mxu1 %v3459_v40 }
 0xd6e   : > { %v3080_v1 = vpop.xlane.xlu0 %3079 }
 0xd6f   : > { %5131 = vrcp.f32 %v3080_v1 }
 0xd73   : > { %v3083_v51 = vpop.xlane.xlu1 %3082 }
 0xd74   : > { %5133 = vrcp.f32 %v3083_v51 }
 0xd75   : > { %v5132_v6 = vpop.eup %5131 }
 0xd76   : > { %v3102_v43 = vmul.f32 %v5132_v6, %v7017_v7 }
 0xd78   : > { %v3110_v38 = vpack.c.bf16 %v3102_v43, %v3102_v43  ;;  %v7086_v57 = vadd.f32 %v3102_v43, %v2830_v50 }
 0xd7a   : > { %v5134_v58 = vpop.eup %5133  ;;  %4681 = vmatmul.msk.bf16.vlgmr.msrb.gmra.mxu3 %vm1519_vm7, %v3110_v38 }
 0xd7b   : > { %v3103_v13 = vmul.f32 %v5134_v58, %v7021_v33  ;;  %3399 = vmatpush.bf16.xpose.msrb.mxu3 %v3390_v35 }
 0xd7d   : > { %v3111_v59 = vpack.c.bf16 %v3103_v13, %v3103_v13  ;;  %v7094_v12 = vadd.f32 %v3103_v13, %v2831_v23 }
 0xd7f   : > { %4682 = vmatmul.msk.bf16.vlgmr.msra.gmra.mxu2 %vm1519_vm7, %v3111_v59 }
 0xd80   : > { %3422 = vmatpush.bf16.xpose.msra.mxu2 %v3413_v48 }
 0xd81   : > { %v3360_v19 = vpop.permute.xlu0 %3359 }
 0xd82   : > { %4688 = vmatmul.msk.bf16.vlgmr.msra.gmra.mxu1 %vm1519_vm7, %v3360_v19 }
 0xd89   : > { %v3431_v7 = vpop.permute.xlu0 %3430 }
 0xd8a   : > { %v3436_v2 = vsel %vm1519_vm7, %v3431_v7, 0  ;;  %4685 = vmatmul.msk.bf16.vlgmr.msra.gmra.mxu3 %vm1519_vm7, %v3291_v14 }
 0xd8b   : > { %v3337_v49 = vpop.permute.xlu1 %3336  ;;  %3445 = vmatpush.bf16.xpose.msrb.mxu0 %v3436_v2 }
 0xd8c   : > { %4687 = vmatmul.msk.bf16.vlgmr.msra.gmra.mxu0 %vm1519_vm7, %v3337_v49 }
 0xd8f   : > { %4686 = vmatmul.msk.bf16.vlgmr.msrb.gmra.mxu2 %vm1519_vm7, %v3314_v31 }
 0xd91   : > { %v3452_v16 = vpop.permute.xlu0 %3451 }
 0xd92   : > { %4692 = vmatmul.msk.bf16.vlgmr.msrb.gmra.mxu1 %vm1519_vm7, %v3452_v16 }
 0xd93   : > { %v3406_v33 = vpop.permute.xlu1 %3405 }
 0xd9a   : > { %4689 = vmatmul.msk.bf16.vlgmr.msrb.gmra.mxu3 %vm1519_vm7, %v3383_v21 }
 0xd9b   : > { %v3429_v25 = vpop.permute.xlu1 %3428 }
 0xd9c   : > { %4691 = vmatmul.msk.bf16.vlgmr.msrb.gmra.mxu0 %vm1519_vm7, %v3429_v25 }
 0xd9d   : > { %v3173_v24 = vpop.f32.mrf.mxu0 }
 0xd9e   : > { %v3811_v31 = vrot.slane %v3173_v24, 6 }
 0xd9f   : > { %4690 = vmatmul.msk.bf16.vlgmr.msra.gmra.mxu2 %vm1519_vm7, %v3406_v33 }
 0xda5   : > { %v3175_v42 = vpop.f32.mrf.mxu0  ;;  %v3194_v46 = vpop.f32.mrf.mxu1 }
 0xda6   : > { %v3813_v0 = vrot.slane %v3194_v46, 5 }
 0xdad   : > { %v3196_v15 = vpop.f32.mrf.mxu1 }
 0xdaf   : > { %v3131_v56 = vpop.f32.mrf.mxu3 }
 0xdb2   : > { %v3257_v20 = vpop.f32.mrf.mxu0 }
 0xdb3   : > { %v3819_v14 = vrot.slane %v3257_v20, 2 }
 0xdb5   : > { %v3278_v37 = vpop.f32.mrf.mxu1 }
 0xdb6   : > { %v3821_v40 = vrot.slane %v3278_v37, 1  ;;  %v3571_v37 = vpop.permute.xlu0 %3570 }
 0xdb7   : > { %v3133_v45 = vpop.f32.mrf.mxu3 }
 0xdba   : > { %v3259_v28 = vpop.f32.mrf.mxu0 }
 0xdbb   : > { %v3576_v28 = vsel %vm1556_vm8, %v3571_v37, 0 }
 0xdbc   : > { %3585 = vmatpush.bf16.msra.mxu3 %v3576_v28 }
 0xdbd   : > { %v3280_v3 = vpop.f32.mrf.mxu1 }
 0xdbf   : > { %v3152_v44 = vpop.f32.mrf.mxu2 }
 0xdc0   : > { %v3809_v39 = vrot.slane %v3152_v44, 7 }
 0xdc2   : > { %v3810_v62 = vsel %vm3755_vm15, %v3809_v39, %v3131_v56 }
 0xdc3   : > { %v3812_v4 = vsel %vm3758_vm0, %v3811_v31, %v3810_v62 }
 0xdc4   : > { %v3814_v27 = vsel %vm3761_vm1, %v3813_v0, %v3812_v4 }
 0xdc7   : > { %v3154_v36 = vpop.f32.mrf.mxu2 }
 0xdfd   : > { %v3215_v29 = vpop.f32.mrf.mxu3 }
 0xdfe   : > { %v3815_v61 = vrot.slane %v3215_v29, 4 }
 0xdff   : > { %v3378_v55 = vpop.f32.mrf.mxu1 }
 0xe00   : > { %v3816_v53 = vsel %vm3764_vm3, %v3815_v61, %v3814_v27  ;;  %v3483_v21 = vsel %vm2057_vm14, %v3378_v55, -inf }
 0xe01   : > { %3484 = vmax.xlane.f32.xlu2 %v3483_v21 }
 0xe02   : > { %v3236_v10 = vpop.f32.mrf.mxu2 }
 0xe03   : > { %v3817_v22 = vrot.slane %v3236_v10, 3 }
 0xe05   : > { %v3818_v1 = vsel %vm3767_vm4, %v3817_v22, %v3816_v53  ;;  %v3217_v51 = vpop.f32.mrf.mxu3 }
 0xe06   : > { %v3820_v6 = vsel %vm3770_vm5, %v3819_v14, %v3818_v1 }
 0xe07   : > { %v3380_v50 = vpop.f32.mrf.mxu1  ;;  %v7114_v43 = vsel %vm3773_vm6, %v3821_v40, %v3820_v6 }
 0xe09   : > { %v3355_v38 = vpop.f32.mrf.mxu0 }
 0xe0a   : > { %v3238_v58 = vpop.f32.mrf.mxu2  ;;  %v3480_v35 = vsel %vm2057_vm14, %v3355_v38, -inf }
 0xe0b   : > { %3481 = vmax.xlane.f32.xlu0 %v3480_v35 }
 0xe0d   : > { %v3309_v23 = vpop.f32.mrf.mxu3 }
 0xe0e   : > { %v3474_v56 = vsel %vm2057_vm14, %v3309_v23, -inf }
 0xe0f   : > { %v7117_v13 = vpop.f32.mrf.mxu1 }
 0xe10   : > { %v3495_v48 = vsel %vm2057_vm14, %v7117_v13, -inf }
 0xe11   : > { %3496 = vmax.xlane.f32.xlu1 %v3495_v48  ;;  %v3357_v59 = vpop.f32.mrf.mxu0 }
 0xe12   : > { %v3332_v19 = vpop.f32.mrf.mxu2 }
 0xe13   : > { %v3477_v49 = vsel %vm2057_vm14, %v3332_v19, -inf }
 0xe15   : > { %v3311_v7 = vpop.f32.mrf.mxu3 }
 0xe17   : > { %v3472_v2 = vpop.f32.mrf.mxu1 }
 0xe19   : > { %3478 = vmax.xlane.f32.xlu1 %v3477_v49  ;;  %v3447_v16 = vpop.f32.mrf.mxu0 }
 0xe1a   : > { %v3334_v33 = vpop.f32.mrf.mxu2  ;;  %v3492_v25 = vsel %vm2057_vm14, %v3447_v16, -inf }
 0xe1b   : > { %3493 = vmax.xlane.f32.xlu2 %v3492_v25 }
 0xe1d   : > { %v3401_v24 = vpop.f32.mrf.mxu3 }
 0xe1e   : > { %v3486_v42 = vsel %vm2057_vm14, %v3401_v24, -inf }
 0xe1f   : > { %3612 = vrot.lane.b32.xlu0 %v6717_v8, %s5783_s21 }
 0xe21   : > { %3487 = vmax.xlane.f32.xlu1 %v3486_v42  ;;  %v3449_v46 = vpop.f32.mrf.mxu0 }
 0xe22   : > { %v7126_v15 = vpop.f32.mrf.mxu2 }
 0xe23   : > { %3475 = vmax.xlane.f32.xlu2 %v3474_v56  ;;  %v3489_v8 = vsel %vm2057_vm14, %v7126_v15, -inf }
 0xe25   : > { %v3403_v20 = vpop.f32.mrf.mxu3 }
 0xe2a   : > { %v3426_v45 = vpop.f32.mrf.mxu2 }
 0xe3a   : > { %3591 = vrot.lane.b32.xlu1 %v6704_v54, %s5783_s21 }
 0xe49   : > { %3490 = vmax.xlane.f32.xlu0 %v3489_v8 }
 0xe74   : > { %v3485_v3 = vpop.xlane.xlu2 %3484 }
 0xe75   : > { %v3501_v44 = vsub.f32 %v3378_v55, %v3485_v3 }
 0xe77   : > { %v3512_v39 = vmul.f32 1.442695, %v3501_v44 }
 0xe79   : > { %5135 = vpow2.f32 %v3512_v39 }
 0xe7e   : > { %v3482_v31 = vpop.xlane.xlu0 %3481 }
 0xe7f   : > { %v7134_v0 = vpop.eup %5135  ;;  %v3500_v62 = vsub.f32 %v3355_v38, %v3482_v31 }
 0xe80   : > { %v3531_v4 = vsel %vm2057_vm14, %v7134_v0, 0.0 }
 0xe81   : > { %v3510_v27 = vmul.f32 1.442695, %v3500_v62  ;;  %3532 = vadd.xlane.f32.xlu2 %v3531_v4 }
 0xe83   : > { %5137 = vpow2.f32 %v3510_v27 }
 0xe84   : > { %v3497_v36 = vpop.xlane.xlu1 %3496 }
 0xe89   : > { %v7138_v54 = vpop.eup %5137 }
 0xe8a   : > { %v3528_v29 = vsel %vm2057_vm14, %v7138_v54, 0.0 }
 0xe8b   : > { %3529 = vadd.xlane.f32.xlu1 %v3528_v29 }
 0xe8c   : > { %v3479_v61 = vpop.xlane.xlu1 %3478 }
 0xe8d   : > { %v3499_v21 = vsub.f32 %v3332_v19, %v3479_v61 }
 0xe8e   : > { %v3494_v55 = vpop.xlane.xlu2 %3493 }
 0xe8f   : > { %v3504_v53 = vsub.f32 %v3447_v16, %v3494_v55  ;;  %v3508_v40 = vmul.f32 1.442695, %v3499_v21 }
 0xe91   : > { %v3518_v10 = vmul.f32 1.442695, %v3504_v53  ;;  %v3613_v22 = vpop.permute.xlu0 %3612 }
 0xe92   : > { %v3618_v14 = vsel %vm1556_vm8, %v3613_v22, 0 }
 0xe93   : > { %5139 = vpow2.f32 %v3518_v10  ;;  %3627 = vmatpush.bf16.msra.mxu0 %v3618_v14 }
 0xe94   : > { %v3488_v1 = vpop.xlane.xlu1 %3487  ;;  %5141 = vpow2.f32 %v3508_v40 }
 0xe95   : > { %v3502_v38 = vsub.f32 %v3401_v24, %v3488_v1 }
 0xe96   : > { %v3476_v51 = vpop.xlane.xlu2 %3475 }
 0xe97   : > { %v3498_v6 = vsub.f32 %v3309_v23, %v3476_v51  ;;  %v3514_v48 = vmul.f32 1.442695, %v3502_v38 }
 0xe99   : > { %v5140_v50 = vpop.eup %5139  ;;  %v3506_v58 = vmul.f32 1.442695, %v3498_v6 }
 0xe9a   : > { %v3540_v35 = vsel %vm2057_vm14, %v5140_v50, 0.0  ;;  %v5142_v59 = vpop.eup %5141 }
 0xe9b   : > { %5143 = vpow2.f32 %v3506_v58  ;;  %3541 = vadd.xlane.f32.xlu2 %v3540_v35  ;;  %v3525_v7 = vsel %vm2057_vm14, %v5142_v59, 0.0 }
 0xe9c   : > { %5145 = vpow2.f32 %v3514_v48 }
 0xea1   : > { %v5144_v19 = vpop.eup %5143 }
 0xea2   : > { %v3522_v2 = vsel %vm2057_vm14, %v5144_v19, 0.0  ;;  %v7148_v23 = vpop.eup %5145 }
 0xea3   : > { %3526 = vadd.xlane.f32.xlu2 %v3525_v7  ;;  %3523 = vadd.xlane.f32.xlu0 %v3522_v2  ;;  %v3534_v49 = vsel %vm2057_vm14, %v7148_v23, 0.0 }
 0xea4   : > { %3654 = vrot.lane.b32.xlu1 %v6711_v60, %s5783_s21 }
 0xeab   : > { %3535 = vadd.xlane.f32.xlu2 %v3534_v49 }
 0xeac   : > { %3696 = vrot.lane.b32.xlu1 %v6729_v18, %s5783_s21  ;;  %v3505_v18 = vsub.f32 %v7117_v13, %v3497_v36 }
 0xeb4   : > { %3717 = vrot.lane.b32.xlu1 %v6652_v47, %s5783_s21  ;;  %v3520_v47 = vmul.f32 1.442695, %v3505_v18 }
 0xeb7   : > { %3633 = vrot.lane.b32.xlu0 %v6724_v17, %s5783_s21  ;;  %v3592_v17 = vpop.permute.xlu1 %3591 }
 0xebc   : > { %3798 = vrot.lane.b32.xlu1 %v6936_v9, %s5794_s11  ;;  %v3491_v16 = vpop.xlane.xlu0 %3490  ;;  %v3597_v9 = vsel %vm1556_vm8, %v3592_v17, 0 }
 0xebd   : > { %v3503_v60 = vsub.f32 %v7126_v15, %v3491_v16  ;;  %3606 = vmatpush.bf16.msrb.mxu2 %v3597_v9 }
 0xebf   : > { %v3516_v33 = vmul.f32 1.442695, %v3503_v60 }
 0xec1   : > { %5147 = vpow2.f32 %v3516_v33 }
 0xec2   : > { %5149 = vpow2.f32 %v3520_v47 }
 0xec7   : > { %v7161_v25 = vpop.eup %5147 }
 0xec8   : > { %v3537_v24 = vsel %vm2057_vm14, %v7161_v25, 0.0  ;;  %v7166_v42 = vpop.eup %5149 }
 0xec9   : > { %3538 = vadd.xlane.f32.xlu2 %v3537_v24  ;;  %v3543_v46 = vsel %vm2057_vm14, %v7166_v42, 0.0 }
 0xee1   : > { %3675 = vrot.lane.b32.xlu2 %v6610_v11, %s5783_s21  ;;  %3544 = vadd.xlane.f32.xlu0 %v3543_v46 }
 0xee9   : > { %3823 = vrot.lane.b32.xlu2 %v7114_v43, %s5796_s26 }
 0xef4   : > { %v3533_v15 = vpop.xlane.xlu2 %3532 }
 0xef5   : > { %5151 = vrcp.f32 %v3533_v15 }
 0xefb   : > { %v5152_v13 = vpop.eup %5151 }
 0xefc   : > { %v3557_v56 = vmul.f32 %v5152_v13, %v7134_v0 }
 0xefe   : > { %v7177_v20 = vadd.f32 %v3557_v56, %v7045_v52  ;;  %v3530_v37 = vpop.xlane.xlu1 %3529 }
 0xeff   : > { %5153 = vrcp.f32 %v3530_v37 }
 0xf05   : > { %v5154_v45 = vpop.eup %5153 }
 0xf06   : > { %v3556_v28 = vmul.f32 %v5154_v45, %v7138_v54 }
 0xf08   : > { %v3564_v8 = vpack.c.bf16 %v3556_v28, %v3556_v28  ;;  %v7181_v11 = vadd.f32 %v3556_v28, %v7035_v34 }
 0xf0a   : > { %4695 = vmatmul.msk.bf16.vlgmr.msra.gmra.mxu0 %vm1519_vm7, %v3564_v8 }
 0xf0e   : > { %v3542_v43 = vpop.xlane.xlu2 %3541 }
 0xf0f   : > { %5155 = vrcp.f32 %v3542_v43 }
 0xf15   : > { %v5156_v3 = vpop.eup %5155 }
 0xf16   : > { %v3560_v44 = vmul.f32 %v5156_v3, %v5140_v50  ;;  %v3655_v39 = vpop.permute.xlu1 %3654  ;;  %v3524_v31 = vpop.xlane.xlu0 %3523 }
 0xf17   : > { %v3660_v52 = vsel %vm1556_vm8, %v3655_v39, 0  ;;  %5157 = vrcp.f32 %v3524_v31  ;;  %v3527_v0 = vpop.xlane.xlu2 %3526 }
 0xf18   : > { %v7186_v62 = vadd.f32 %v3560_v44, %v7069_v30  ;;  %5159 = vrcp.f32 %v3527_v0  ;;  %3669 = vmatpush.bf16.msrb.mxu3 %v3660_v52  ;;  %v3568_v21 = vpack.c.bf16 %v3560_v44, %v3560_v44 }
 0xf1d   : > { %v5158_v4 = vpop.eup %5157 }
 0xf1e   : > { %v5160_v34 = vpop.eup %5159  ;;  %v3554_v27 = vmul.f32 %v5158_v4, %v5144_v19  ;;  %v3697_v36 = vpop.permute.xlu1 %3696 }
 0xf1f   : > { %v3555_v54 = vmul.f32 %v5160_v34, %v5142_v59  ;;  %v3702_v29 = vsel %vm1556_vm8, %v3697_v36, 0  ;;  %v3536_v61 = vpop.xlane.xlu2 %3535 }
 0xf20   : > { %v3562_v55 = vpack.c.bf16 %v3554_v27, %v3554_v27  ;;  %v7190_v53 = vadd.f32 %v3554_v27, %v7055_v26  ;;  %5161 = vrcp.f32 %v3536_v61  ;;  %3711 = vmatpush.bf16.msrb.mxu0 %v3702_v29  ;;  %v4780_v29 = vld [vmem:[%s6282_s23] sm:$0xff] }
 0xf21   : > { %v3563_v10 = vpack.c.bf16 %v3555_v54, %v3555_v54  ;;  %v7193_v30 = vadd.f32 %v3555_v54, %v7076_v41  ;;  %v3565_v41 = vpack.c.bf16 %v3557_v56, %v3557_v56 }
 0xf22   : > { %4693 = vmatmul.msk.bf16.vlgmr.msra.gmra.mxu3 %vm1519_vm7, %v3562_v55 }
 0xf23   : > { %4694 = vmatmul.msk.bf16.vlgmr.msrb.gmra.mxu2 %vm1519_vm7, %v3563_v10  ;;  %4699 = vmatmul.msk.bf16.vlgmr.msrb.gmra.mxu0 %vm1519_vm7, %v3568_v21 }
 0xf26   : > { %v5162_v22 = vpop.eup %5161  ;;  %v3718_v40 = vpop.permute.xlu1 %3717 }
 0xf27   : > { %v3558_v14 = vmul.f32 %v5162_v22, %v7148_v23  ;;  %v3723_v1 = vsel %vm1556_vm8, %v3718_v40, 0 }
 0xf29   : > { %v7200_v26 = vadd.f32 %v3558_v14, %v7086_v57  ;;  %v3634_v51 = vpop.permute.xlu0 %3633  ;;  %v3566_v50 = vpack.c.bf16 %v3558_v14, %v3558_v14 }
 0xf2a   : > { %v3639_v6 = vsel %vm1556_vm8, %v3634_v51, 0 }
 0xf2b   : > { %3648 = vmatpush.bf16.msra.mxu1 %v3639_v6 }
 0xf2e   : > { %4696 = vmatmul.msk.bf16.vlgmr.msra.gmra.mxu1 %vm1519_vm7, %v3565_v41  ;;  %v3799_v61 = vpop.permute.xlu1 %3798 }
 0xf2f   : > { %3732 = vmatpush.bf16.msrb.mxu1 %v3723_v1  ;;  %v3851_v21 = vsel %vm1519_vm7, %v6758_v63, %v3799_v61  ;;  %v5012_v1 = vld [vmem:[%s7478_s20] ss:$0 sm:$0xff] }
 0xf32   : > { %4697 = vmatmul.msk.bf16.vlgmr.msrb.gmra.mxu3 %vm1519_vm7, %v3566_v50 }
 0xf3c   : > { %v3539_v38 = vpop.xlane.xlu2 %3538 }
 0xf3d   : > { %5163 = vrcp.f32 %v3539_v38 }
 0xf43   : > { %v5164_v58 = vpop.eup %5163 }
 0xf44   : > { %v3559_v35 = vmul.f32 %v5164_v58, %v7161_v25  ;;  %v3676_v57 = vpop.permute.xlu2 %3675  ;;  %v7479_v58 = vld [vmem:[#allocation51_spill] sm:$0xff] }
 0xf45   : > { %v3681_v48 = vsel %vm1556_vm8, %v3676_v57, 0 }
 0xf46   : > { %v3567_v59 = vpack.c.bf16 %v3559_v35, %v3559_v35  ;;  %v7209_v19 = vadd.f32 %v3559_v35, %v7094_v12  ;;  %3690 = vmatpush.bf16.msra.mxu2 %v3681_v48 }
 0xf49   : > { %4698 = vmatmul.msk.bf16.vlgmr.msra.gmra.mxu2 %vm1519_vm7, %v3567_v59 }
 0xf4c   : > { %v3824_v55 = vpop.permute.xlu2 %3823 }
 0xf4d   : > { %v3852_v10 = vsel %vm1754_vm9, %v3851_v21, %v3824_v55 }
 0xf54   : > { %v3545_v7 = vpop.xlane.xlu0 %3544 }
 0xf55   : > { %5165 = vrcp.f32 %v3545_v7  ;;  %v4783_v7 = vld [vmem:[%s6287_s7 + $0x8] sm:$0xff] }
 0xf56   : > { %3955 = vmatpush.bf16.msrb.mxu2 %v4783_v7 }
 0xf5b   : > { %v5166_v2 = vpop.eup %5165 }
 0xf5c   : > { %v3561_v23 = vmul.f32 %v5166_v2, %v7166_v42  ;;  %v4781_v42 = vld [vmem:[%s6282_s23 + $0x8] sm:$0xff]  ;;  %v4782_v2 = vld [vmem:[%s6287_s7] sm:$0xff]  ;;  %s7481_s23 = scalar_lea.vmem [#allocation21], %s6200_s12  ;;  %s7482_s7 = scalar_lea.vmem [#allocation23], %s6200_s12 }
 0xf5d   : > { %3880 = vmatpush.bf16.msra.mxu3 %v4781_v42  ;;  %3956 = vmatpush.bf16.msrb.mxu2 %v4782_v2  ;;  %v5013_v42 = vld [vmem:[%s7480_s9] ss:$0 sm:$0xff] }
 0xf5e   : > { %v3569_v49 = vpack.c.bf16 %v3561_v23, %v3561_v23  ;;  %v7214_v16 = vadd.f32 %v3561_v23, %v7066_v32 }
 0xf60   : > { %4700 = vmatmul.msk.bf16.vlgmr.msrb.gmra.mxu1 %vm1519_vm7, %v3569_v49 }
 0xf61   : > { %3881 = vmatpush.bf16.msra.mxu3 %v4780_v29 }
 0xf87   : > { %v3629_v60 = vpop.f32.mrf.mxu0 }
 0xf88   : > { %v3836_v8 = vrot.slane %v3629_v60, 6  ;;  %v4790_v60 = vld [vmem:[%s6293_s17 + $0x30] sm:$0xff] }
 0xf8f   : > { %v3631_v33 = vpop.f32.mrf.mxu0 }
 0xfa0   : > { %v3713_v25 = vpop.f32.mrf.mxu0 }
 0xfa1   : > { %v3844_v0 = vrot.slane %v3713_v25, 2  ;;  %v4789_v25 = vld [vmem:[%s6293_s17 + $0x28] sm:$0xff] }
 0xfa5   : > { %v3587_v12 = vpop.f32.mrf.mxu3 }
 0xfa6   : > { %v3608_v24 = vpop.f32.mrf.mxu2 }
 0xfa7   : > { %v3834_v37 = vrot.slane %v3608_v24, 7 }
 0xfa8   : > { %v3715_v18 = vpop.f32.mrf.mxu0 }
 0xfa9   : > { %v3835_v45 = vsel %vm3755_vm15, %v3834_v37, %v3587_v12  ;;  %v4788_v12 = vld [vmem:[%s6293_s17 + $0x20] sm:$0xff] }
 0xfaa   : > { %v3837_v44 = vsel %vm3758_vm0, %v3836_v8, %v3835_v45  ;;  %v5014_v37 = vld [vmem:[%s7481_s23] ss:$0 sm:$0xff] }
 0xfab   : > { %v3650_v47 = vpop.f32.mrf.mxu1 }
 0xfac   : > { %v3838_v28 = vrot.slane %v3650_v47, 5  ;;  %v4787_v47 = vld [vmem:[%s6293_s17 + $0x18] sm:$0xff] }
 0xfad   : > { %v3589_v17 = vpop.f32.mrf.mxu3 }
 0xfae   : > { %v3610_v9 = vpop.f32.mrf.mxu2  ;;  %v3839_v39 = vsel %vm3761_vm1, %v3838_v28, %v3837_v44  ;;  %v5015_v44 = vld [vmem:[%s7482_s7] ss:$0 sm:$0xff] }
 0xfb3   : > { %v3652_v46 = vpop.f32.mrf.mxu1 }
 0xfb4   : > { %v4786_v46 = vld [vmem:[%s6293_s17 + $0x10] sm:$0xff] }
 0xfb5   : > { %v3671_v15 = vpop.f32.mrf.mxu3 }
 0xfb6   : > { %v3840_v43 = vrot.slane %v3671_v15, 4 }
 0xfb8   : > { %v3841_v31 = vsel %vm3764_vm3, %v3840_v43, %v3839_v39  ;;  %v4785_v43 = vld [vmem:[%s6293_s17 + $0x8] sm:$0xff] }
 0xfbd   : > { %v3673_v13 = vpop.f32.mrf.mxu3 }
 0xfcc   : > { %v3692_v56 = vpop.f32.mrf.mxu2 }
 0xfcd   : > { %v3842_v3 = vrot.slane %v3692_v56, 3 }
 0xfcf   : > { %v3843_v52 = vsel %vm3767_vm4, %v3842_v3, %v3841_v31  ;;  %v4784_v3 = vld [vmem:[%s6293_s17] sm:$0xff] }
 0xfd0   : > { %v3845_v27 = vsel %vm3770_vm5, %v3844_v0, %v3843_v52 }
 0xfd4   : > { %v3694_v32 = vpop.f32.mrf.mxu2 }
 0xfdd   : > { %v3734_v4 = vpop.f32.mrf.mxu1 }
 0xfde   : > { %v3846_v34 = vrot.slane %v3734_v4, 1 }
 0xfe0   : > { %v3847_v36 = vsel %vm3773_vm6, %v3846_v34, %v3845_v27  ;;  %v5016_v34 = vld [vmem:[%s7483_s2] ss:$0 sm:$0xff] }
 0xfe1   : > { %3848 = vrot.lane.b32.xlu1 %v3847_v36, %s5795_s18 }
 0xfe5   : > { %v3736_v54 = vpop.f32.mrf.mxu1 }
0x1053   : > { %v3849_v22 = vpop.permute.xlu1 %3848 }
0x1054   : > { %v3853_v14 = vsel %vm1756_vm10, %v3852_v10, %v3849_v22 }
0x1055   : > { %v3854_v40 = vpack.c.bf16 %v3853_v14, %v3853_v14 }
0x1057   : > { %4709 = vmatmul.msk.bf16.vlgmr.msra.gmra.mxu3 %vm1440_vm2, %v3854_v40 }
0x10da   : > { %v3883_v51 = vpop.f32.mrf.mxu3 }
0x10db   : > { %v3887_v6 = vadd.f32 %v3883_v51, %v6376_v5  ;;  %v4791_v5 = vld [vmem:[%s6293_s17 + $0x38] sm:$0xff] }
0x10dc   : > { %4028 = vmatpush.bf16.msra.mxu0 %v4791_v5 }
0x10dd   : > { %v3892_v41 = vadd.f32 %v5012_v1, %v3887_v6 }
0x10df   : > { %v3895_v50 = vsel %vm1440_vm2, %v3892_v41, 0.0 }
0x10e0   : > { %3896 = vadd.xlane.f32.xlu2 %v3895_v50  ;;  %4029 = vmatpush.bf16.msra.mxu0 %v4790_v60 }
0x10e2   : > { %v3885_v63 = vpop.f32.mrf.mxu3 }
0x10e4   : > { %4030 = vmatpush.bf16.msra.mxu0 %v4789_v25 }
0x10e8   : > { %4031 = vmatpush.bf16.msra.mxu0 %v4788_v12 }
0x10ec   : > { %4032 = vmatpush.bf16.msra.mxu0 %v4787_v47 }
0x10f0   : > { %4033 = vmatpush.bf16.msra.mxu0 %v4786_v46 }
0x10f4   : > { %4034 = vmatpush.bf16.msra.mxu0 %v4785_v43 }
0x10f8   : > { %4035 = vmatpush.bf16.msra.mxu0 %v4784_v3 }
0x1153   : > { %v3897_v38 = vpop.xlane.xlu2 %3896 }
0x1154   : > { %v3898_v35 = vmul.f32 %v3897_v38, %v7479_v58 }
0x1156   : > { %v3899_v57 = vsub.f32 %v3892_v41, %v3898_v35 }
0x1158   : > { %v3900_v48 = vmul.f32 %v3899_v57, %v3899_v57 }
0x115a   : > { %v3901_v59 = vsel %vm1440_vm2, %v3900_v48, 0.0 }
0x115b   : > { %3902 = vadd.xlane.f32.xlu1 %v3901_v59 }
0x11ce   : > { %v3903_v23 = vpop.xlane.xlu1 %3902 }
0x11cf   : > { %v3904_v49 = vmul.f32 %v3903_v23, %v7479_v58 }
0x11d1   : > { %v3905_v33 = vadd.f32 1e-05, %v3904_v49 }
0x11d3   : > { %5167 = vrsqrt.f32 %v3905_v33  ;;  %vm3912_vm10 = vweird.f32 %v3905_v33 }
0x11d9   : > { %v5168_v24 = vpop.eup %5167 }
0x11da   : > { %v3907_v18 = vmul.f32 %v5168_v24, %v3905_v33  ;;  %vm3913_vm8 = vweird.f32 %v5168_v24 }
0x11db   : > { %vm3914_vm11 = vmor %vm3912_vm10, %vm3913_vm8 }
0x11dc   : > { %v3908_v17 = vmul.f32 %v5168_v24, %v3907_v18 }
0x11de   : > { %v3909_v9 = vmul.f32 0.5, %v3908_v17 }
0x11e0   : > { %v3910_v15 = vsub.f32 1.5, %v3909_v9 }
0x11e2   : > { %v3911_v13 = vmul.f32 %v5168_v24, %v3910_v15 }
0x11e4   : > { %v3915_v56 = vsel %vm3914_vm11, %v5168_v24, %v3911_v13 }
0x11e5   : > { %v3916_v32 = vmul.f32 %v3915_v56, %v3899_v57 }
0x11e7   : > { %v3920_v45 = vmul.f32 %v5013_v42, %v3916_v32 }
0x11e9   : > { %v3924_v28 = vadd.f32 %v5014_v37, %v3920_v45 }
0x11eb   : > { %v3925_v8 = vpack.c.bf16 %v3924_v28, %v3924_v28 }
0x11ed   : > { %4718 = vmatmul.msk.bf16.vlgmr.msrb.gmra.mxu2 %vm1440_vm2, %v3925_v8 }
0x1270   : > { %v3958_v39 = vpop.f32.mrf.mxu2 }
0x1271   : > { %v3959_v31 = vadd.f32 %v5015_v44, %v3958_v39 }
0x1273   : > { %v3962_v52 = vmax.f32 %v3959_v31, 0.0 }
0x1275   : > { %v3963_v0 = vpack.c.bf16 %v3962_v52, %v3962_v52 }
0x1277   : > { %4036 = vmatmul.bf16.vlgmr.msra.gmra.mxu0 %v3963_v0 }
0x1278   : > { %v3960_v4 = vpop.f32.mrf.mxu2 }
0x12f4   : > { %v4037_v27 = vpop.f32.mrf.mxu0 }
0x12f5   : > { %v4041_v36 = vadd.f32 %v4037_v27, %v3892_v41 }
0x12f7   : > { %v4046_v54 = vadd.f32 %v5016_v34, %v4041_v36 }
0x12f8   : > { %4051 = sbr.rel (%p4751_p1) target bundleno = 5003 (0x138b), region = 188 }
0x12f9   : > { %4047 = vst.msk [vmem:[#allocation2] sm:$0xff] %vm1440_vm2, %v4046_v54 }
0x12fc   : > { %v4039_v29 = vpop.f32.mrf.mxu0 }
0x12fd   : > { %v4793_v61 = vld [vmem:[%s7484_s25 + $0x8] sm:$0xff]  ;;  %v4792_v55 = vld [vmem:[%s7484_s25] sm:$0xff]  ;;  %v4052_v21 = vpack.c.bf16 %v4046_v54, %v4046_v54  ;;  %v4091_v10 = vmul.f32 0.25, %v7193_v30  ;;  %v4092_v22 = vmul.f32 0.25, %v7181_v11  ;;  %v4090_v14 = vmul.f32 0.25, %v7190_v53 }
0x12fe   : > { %4082 = vmatpush.bf16.msra.mxu0 %v4793_v61  ;;  %v4093_v40 = vmul.f32 0.25, %v7177_v20  ;;  %v4094_v51 = vmul.f32 0.25, %v7200_v26  ;;  %v4095_v41 = vmul.f32 0.25, %v7209_v19  ;;  %v4096_v38 = vmul.f32 0.25, %v7186_v62  ;;  %v5169_v62 = vld [vmem:[#allocation26] ss:$0 sm:$0xff] }
0x12ff   : > { %v4106_v1 = vrot.slane %v4091_v10, 7  ;;  %v4108_v6 = vrot.slane %v4092_v22, 6  ;;  %v4097_v53 = vmul.f32 0.25, %v7214_v16 }
0x1300   : > { %v4110_v63 = vrot.slane %v4093_v40, 5  ;;  %v4112_v11 = vrot.slane %v4094_v51, 4  ;;  %v4114_v58 = vrot.slane %v4095_v41, 3  ;;  %v4116_v35 = vrot.slane %v4096_v38, 2 }
0x1301   : > { %v4107_v50 = vsel %vm3755_vm15, %v4106_v1, %v4090_v14  ;;  %v4118_v19 = vrot.slane %v4097_v53, 1 }
0x1302   : > { %4083 = vmatpush.bf16.msra.mxu0 %v4792_v55  ;;  %v4109_v30 = vsel %vm3758_vm0, %v4108_v6, %v4107_v50 }
0x1303   : > { %v4111_v20 = vsel %vm3761_vm1, %v4110_v63, %v4109_v30 }
0x1304   : > { %v4113_v26 = vsel %vm3764_vm3, %v4112_v11, %v4111_v20 }
0x1305   : > { %4760 = vmatmul.msk.bf16.vlgmr.msra.gmra.mxu0 %vm1440_vm2, %v4052_v21  ;;  %v4115_v57 = vsel %vm3767_vm4, %v4114_v58, %v4113_v26 }
0x1306   : > { %v4117_v48 = vsel %vm3770_vm5, %v4116_v35, %v4115_v57 }
0x1307   : > { %v4119_v59 = vsel %vm3773_vm6, %v4118_v19, %v4117_v48 }
0x1308   : > { %4121 = vst.msk [vmem:[%s1349_s16] sm:$0xff] %vm1519_vm7, %v4119_v59 }
0x1382   : > { %v4085_v7 = vpop.f32.mrf.mxu0 }
0x1383   : > { %v4086_v2 = vadd.f32 %v5169_v62, %v4085_v7 }
0x1385   : > { %4089 = vst.msk [vmem:[%s6310_s8] sm:$0xff] %vm1754_vm9, %v4086_v2 }
0x138a   : > { %v4087_v16 = vpop.f32.mrf.mxu0 }
0x138b PF: > { %s4762_s12 = sshll.u32 %s5762_s0, 3  ;;  %s7486_s6 = sld [smem:[#allocation78_spill]] }
0x138c   : > { %s4142_s15 = sshll.u32 %s1349_s16, 4  ;;  %s7487_s13 = sand.u32 1, %s5738_s3   ;;  %s4143_s15 = int_to_ptr.vmem [resolvable:$true] %s4142_s15 }
0x138d   : > { %s4127_s11 = scalar_lea.sflag [#allocation5], %s7487_s13 }
0x1391   : > { %s4140_s24 = scalar_lea.hbm %s7486_s6, %s4762_s12  ;;  %s5640_s5 = scalar_lea.hbm %s7486_s6, 32 }
0x1392   : > { %s4144_s22 = sshll.u32 %s4140_s24, 4  ;;  %s4145_s22 = int_to_ptr.hbm [resolvable:$true] %s4144_s22 }
0x1393   : > { %s5634_s18 = sshra.s32 %s4145_s22, 4  ;;  %s5635_s18 = int_to_ptr.hbm [resolvable:$true] %s5634_s18 }
0x1394   : > { %s5636_s8 = scalar_lea.hbm %s5635_s18, 8  ;;  %p5641_p9 = scmp.lt.s32.totalorder %s5635_s18, %s7486_s6 }
0x1395   : > { %p5637_p2 = scmp.ne.s32.totalorder %s5635_s18, %s5636_s8  ;;  %p5642_p10 = scmp.lt.s32.totalorder %s5640_s5, %s5636_s8 }
0x1397   : > { %p5638_p5 = pnand %p5637_p2, %p6026_p12  ;;  %p5643_p11 = por %p5642_p10, %p5641_p9 }
0x1399   : > { %p5639_p6 = pneg %p5638_p5 }
0x139b   : > { %p5644_p3 = pnand %p5643_p11, %p5639_p6 }
0x139d   : > { %5647 = shalt.err (!%p5644_p3)
}
0x139e   : > { %4832 = dma.vmem_to_hbm [thread:$0]  (%p6026_p12), %s4143_s15, 128, %s4145_s22, %s4127_s11  }
0x139f PF: > { %s7488_s4 = sld [smem:[#allocation44_spill]] }
0x13a0   : > { %s7489_s16 = sld [smem:[#allocation38_spill]] }
0x13a5   : > { %p4894_p13 = scmp.ge.s32.totalorder %s7488_s4, 2 }
0x13a6   : > { %s4163_s20 = sand.u32 1, %s7489_s16  }
0x13a7   : > { %p4882_p8 = pnand %p4894_p13, %p6034_p4  ;;  %s4164_s9 = scalar_lea.sflag [#allocation5], %s4163_s20 }
0x13a9   : > { %p4883_p7 = pneg %p4882_p8 }
0x13ab   : > { %5729 = dma.done.wait (%p4883_p7), %s4164_s9, 128  }
0x13ac   : > { %5731 = vsyncadd (%p4883_p7), %s4164_s9, 4294967168  ;;  %s60_s2 = sadd.s32 1, %s7488_s4   ;;  %s7491_s23 = sld [smem:[#allocation39_spill]] }
0x13ad   : > { %p57_p0 = scmp.ge.s32.totalorder %s60_s2, 10   ;;  %s7492_s7 = sld [smem:[#allocation48_spill]] }
0x13ae   : > { %s7493_s28 = sld [smem:[#allocation40_spill]]  ;;  %s7500_s27 = smov %s5738_s3 }
0x13af   : > { %s7494_s8 = sld [smem:[#allocation41_spill]] }
0x13b0   : > { %s7495_s4 = sld [smem:[#allocation47_spill]]  ;;  %59 = sbr.rel (!%p57_p0) target bundleno = 49 (0x31), region = 349 }
0x13b1   : > { %s7496_s29 = sld [smem:[#allocation42_spill]] }
0x13b2   : > { %s7497_s0 = sld [smem:[#allocation43_spill]]  ;;  %s7501_s3 = smov %s7491_s23 }
0x13b3   : > { %s7498_s9 = sld [smem:[#allocation45_spill]] }
0x13b4   : > { %s7499_s30 = sld [smem:[#allocation46_spill]] }
0x13b5   :  { %4170 = vsyncpa [#allocation4], 1 }
0x13b6   :  { %4172 = vsyncpa [#allocation4 + $0x1], 1 }
0x13b7   :  { %4173 = vsyncpa [#allocation7], 1 }
0x13b8   :  { %4174 = vsyncpa [#allocation10], 1 }
0x13b9   :  { %4176 = vsyncpa [#allocation10 + $0x1], 1 }
0x13ba   :  { %4177 = vsyncpa [#allocation13], 1 }
0x13bb   :  { %4179 = vsyncpa [#allocation13 + $0x1], 1 }
0x13bc   :  { %4180 = vsyncpa [#allocation16], 1 }
0x13bd   :  { %4182 = vsyncpa [#allocation16 + $0x1], 1 }
0x13be   :  { %4183 = vsyncpa [#allocation19], 1 }
0x13bf   :  { %4185 = vsyncpa [#allocation19 + $0x1], 1 }
0x13c0   :  { %4186 = vsyncpa [#allocation22], 1 }
0x13c1   :  { %4188 = vsyncpa [#allocation22 + $0x1], 1 }
0x13c2   :  { %4189 = vsyncpa [#allocation25], 1 }
0x13c3   :  { %4191 = vsyncpa [#allocation25 + $0x1], 1 }
0x13c4   :  { %4192 = vsyncpa [#allocation5], 1 }
0x13c5   :  { %4194 = vsyncpa [#allocation5 + $0x1], 1 }

</bundles_post_ra>
